<compile_context>
chip_gen: v5e
topology: v5e:2x2
jax: 0.10.0
libtpu: 0.0.40
codegen_flags: <defaults>
</compile_context>

<pallas_src>
import jax
import jax.numpy as jnp
from jax import lax
from jax.experimental import pallas as pl
from jax.experimental.pallas import tpu as pltpu

D = 16      # input_size
E = 32      # embed_size
HID = 32    # hidden_size
H = D       # LSTM hidden size == input_size (per Mlp.__init__)


def _round_up(x, m):
    return (x + m - 1) // m * m


def mlp_kernel(uf_ref, hf_ref, ulen_ref, hlen_ref,
               w_ih_ref, w_hh_ref, bg_ref,
               w_qkv1_ref, b_qkv1_ref, w_qkv2_ref, b_qkv2_ref,
               w_o_ref, b_o_ref,
               w1u_ref, w1h_ref, b1_ref, w2_ref, b2_ref,
               out_ref):
    u = uf_ref[...].astype(jnp.float32)           # (BB, Lu, D)
    hfeat = hf_ref[...].astype(jnp.float32)       # (BB, Lh, D)
    u_len = ulen_ref[...]                         # (BB, 1) int32
    h_len = hlen_ref[...]                         # (BB, 1) int32
    BB, Lu, _ = u.shape
    Lh = hfeat.shape[1]

    # ---------------- LSTM branch (batched; input projection hoisted) ----------------
    w_hh = w_hh_ref[...]                          # (H, 4H)
    xg = (jnp.dot(u.reshape(BB * Lu, D), w_ih_ref[...],
                  preferred_element_type=jnp.float32) + bg_ref[...]).reshape(BB, Lu, 4 * H)

    h = jnp.zeros((BB, H), jnp.float32)
    c = jnp.zeros((BB, H), jnp.float32)
    # Fully unrolled: Lu+1 steps; step 0 and step 1 both consume x0 (torch module processes
    # lstm_inputs[0] once to init hidden, then the whole sequence again).
    for s in range(Lu + 1):
        idx = max(s - 1, 0)
        gates = xg[:, idx, :] + jnp.dot(h, w_hh, preferred_element_type=jnp.float32)  # (BB, 4H)
        i_g = jax.nn.sigmoid(gates[:, 0 * H:1 * H])
        f_g = jax.nn.sigmoid(gates[:, 1 * H:2 * H])
        g_g = jnp.tanh(gates[:, 2 * H:3 * H])
        o_g = jax.nn.sigmoid(gates[:, 3 * H:4 * H])
        c_new = f_g * c + i_g * g_g
        h_new = o_g * jnp.tanh(c_new)
        upd = s <= u_len                           # (BB, 1) per-example valid-step mask
        h = jnp.where(upd, h_new, h)
        c = jnp.where(upd, c_new, c)

    # ------------- Self-attention branch (batched; fused QKV / in-proj) -------------
    hf2 = hfeat.reshape(BB * Lh, D)
    qkv1 = jnp.dot(hf2, w_qkv1_ref[...], preferred_element_type=jnp.float32) + b_qkv1_ref[...]
    qkv2 = jnp.dot(qkv1, w_qkv2_ref[...], preferred_element_type=jnp.float32) + b_qkv2_ref[...]
    q2 = qkv2[:, 0 * E:1 * E].reshape(BB, Lh, E)   # 1/sqrt(E) already folded into weights
    k2 = qkv2[:, 1 * E:2 * E].reshape(BB, Lh, E)
    v2 = qkv2[:, 2 * E:3 * E].reshape(BB, Lh, E)

    scores = jnp.einsum('bqe,bke->bqk', q2, k2, preferred_element_type=jnp.float32)  # (BB,Lh,Lh)
    col_ids = lax.broadcasted_iota(jnp.int32, (BB, Lh, Lh), 2)
    scores = jnp.where(col_ids < h_len[:, :, None], scores, -1e30)
    scores = scores - jnp.max(scores, axis=-1, keepdims=True)
    p = jnp.exp(scores)
    p = p * pl.reciprocal(jnp.sum(p, axis=-1, keepdims=True), approx=True)
    attn = jnp.einsum('bqk,bke->bqe', p, v2, preferred_element_type=jnp.float32)     # (BB,Lh,E)
    attn = (jnp.dot(attn.reshape(BB * Lh, E), w_o_ref[...],
                    preferred_element_type=jnp.float32) + b_o_ref[...]).reshape(BB, Lh, E)
    row_ids = lax.broadcasted_iota(jnp.int32, (BB, Lh, 1), 1)
    attn = jnp.where(row_ids < h_len[:, :, None], attn, -1e30)
    pooled = jnp.max(attn, axis=1)                 # (BB, E)   MaxPool2d over the sequence

    # ---------------- MLP head: fc1 -> ReLU -> fc2 -> sigmoid ----------------
    hid = (jnp.dot(h, w1u_ref[...], preferred_element_type=jnp.float32)
           + jnp.dot(pooled, w1h_ref[...], preferred_element_type=jnp.float32)
           + b1_ref[...])
    hid = jnp.maximum(hid, 0.0)                    # (BB, HID)
    # (1,HID) . (BB,HID)^T -> (1,BB): lane-dense row, no masked column stores.
    logit = lax.dot_general(w2_ref[...], hid, (((1,), (1,)), ((), ())),
                            preferred_element_type=jnp.float32) + b2_ref[...]
    out_ref[0] = jax.nn.sigmoid(logit)


def init_params(key):
    ks = iter(jax.random.split(key, 32))

    def w(shape, scale=0.1):
        return scale * jax.random.normal(next(ks), shape, jnp.float32)

    return dict(
        w_ih=w((4 * H, D)), w_hh=w((4 * H, H)), b_ih=w((4 * H,)), b_hh=w((4 * H,)),
        wq=w((E, D)), bq=w((E,)), wk=w((E, D)), bk=w((E,)), wv=w((E, D)), bv=w((E,)),
        w_in=w((3 * E, E)), b_in=w((3 * E,)),
        w_out=w((E, E)), b_out=w((E,)),
        w1=w((HID, D + E)), b1=w((HID,)),
        w2=w((1, HID)), b2=w((1,)),
    )


def build_weight_list(p):
    """Pre-transpose / fuse all weights so the kernel only does x @ W matmuls."""
    scale = 1.0 / (float(E) ** 0.5)

    w_ih = p["w_ih"].T                                   # (D, 4H), gate order i,f,g,o
    w_hh = p["w_hh"].T                                   # (H, 4H)
    bg = (p["b_ih"] + p["b_hh"]).reshape(1, 4 * H)

    w_qkv1 = jnp.concatenate([p["wq"].T, p["wk"].T, p["wv"].T], axis=1)         # (D, 3E)
    b_qkv1 = jnp.concatenate([p["bq"], p["bk"], p["bv"]]).reshape(1, 3 * E)

    # MHA in_proj as a block-diagonal (3E, 3E) matrix; 1/sqrt(E) folded into the q block.
    win, bin_ = p["w_in"], p["b_in"]
    w_qkv2 = jnp.zeros((3 * E, 3 * E), jnp.float32)
    w_qkv2 = w_qkv2.at[0 * E:1 * E, 0 * E:1 * E].set(win[0 * E:1 * E].T * scale)
    w_qkv2 = w_qkv2.at[1 * E:2 * E, 1 * E:2 * E].set(win[1 * E:2 * E].T)
    w_qkv2 = w_qkv2.at[2 * E:3 * E, 2 * E:3 * E].set(win[2 * E:3 * E].T)
    b_qkv2 = jnp.concatenate([bin_[:E] * scale, bin_[E:2 * E], bin_[2 * E:]]).reshape(1, 3 * E)

    return [
        w_ih, w_hh, bg,
        w_qkv1, b_qkv1, w_qkv2, b_qkv2,
        p["w_out"].T, p["b_out"].reshape(1, E),
        p["w1"][:, :D].T, p["w1"][:, D:].T, p["b1"].reshape(1, HID),
        p["w2"].reshape(1, HID), p["b2"].reshape(1, 1),
    ]


def mlp_forward(params, user_features, user_lens, hashtag_features, hashtag_lens, *, block_b=None):
    B, Lu, _ = user_features.shape
    _, Lh, _ = hashtag_features.shape
    weights = build_weight_list(params)

    if block_b is None:
        block_b = min(128, _round_up(B, 8))     # batch block per grid step (sublane-aligned)
    BB = block_b
    B_pad = _round_up(B, BB)
    G = B_pad // BB
    pad = B_pad - B

    uf = jnp.pad(user_features.astype(jnp.float32), ((0, pad), (0, 0), (0, 0)))
    hf = jnp.pad(hashtag_features.astype(jnp.float32), ((0, pad), (0, 0), (0, 0)))
    ul = jnp.pad(user_lens.astype(jnp.int32), (0, pad), constant_values=1).reshape(B_pad, 1)
    hl = jnp.pad(hashtag_lens.astype(jnp.int32), (0, pad), constant_values=1).reshape(B_pad, 1)

    in_specs = [
        pl.BlockSpec((BB, Lu, D), lambda g: (g, 0, 0)),
        pl.BlockSpec((BB, Lh, D), lambda g: (g, 0, 0)),
        pl.BlockSpec((BB, 1), lambda g: (g, 0)),
        pl.BlockSpec((BB, 1), lambda g: (g, 0)),
    ] + [pl.BlockSpec(tuple(w.shape), lambda g: (0, 0)) for w in weights]

    out = pl.pallas_call(
        mlp_kernel,
        out_shape=jax.ShapeDtypeStruct((G, 1, BB), jnp.float32),
        grid=(G,),
        in_specs=in_specs,
        out_specs=pl.BlockSpec((1, 1, BB), lambda g: (g, 0, 0)),
        compiler_params=pltpu.CompilerParams(dimension_semantics=("parallel",)),
    )(uf, hf, ul, hl, *weights)

    return out.reshape(B_pad)[:B].reshape(B, 1)


def torch_like_reference(p, user_features, user_lens, hashtag_features, hashtag_lens):
    """Pure-JAX re-implementation of the torch 'Train' forward (per-example loops)."""
    B = user_features.shape[0]
    outs = []
    for bidx in range(B):
        # ----- Lstm module -----
        Lub = int(user_lens[bidx])
        u = user_features[bidx, :Lub]
        seq = jnp.concatenate([u[:1], u], axis=0)      # first element processed twice
        h = jnp.zeros((H,), jnp.float32)
        c = jnp.zeros((H,), jnp.float32)
        for t in range(seq.shape[0]):
            x = seq[t]
            g = p["w_ih"] @ x + p["b_ih"] + p["w_hh"] @ h + p["b_hh"]
            i_g = jax.nn.sigmoid(g[:H]); f_g = jax.nn.sigmoid(g[H:2 * H])
            g_g = jnp.tanh(g[2 * H:3 * H]); o_g = jax.nn.sigmoid(g[3 * H:])
            c = f_g * c + i_g * g_g
            h = o_g * jnp.tanh(c)
        user_emb = h

        # ----- MultiheadSelfAttention module -----
        Lhb = int(hashtag_lens[bidx])
        hf = hashtag_features[bidx, :Lhb]
        q1 = hf @ p["wq"].T + p["bq"]
        k1 = hf @ p["wk"].T + p["bk"]
        v1 = hf @ p["wv"].T + p["bv"]
        q2 = q1 @ p["w_in"][:E].T + p["b_in"][:E]
        k2 = k1 @ p["w_in"][E:2 * E].T + p["b_in"][E:2 * E]
        v2 = v1 @ p["w_in"][2 * E:].T + p["b_in"][2 * E:]
        s = (q2 / jnp.sqrt(jnp.float32(E))) @ k2.T
        a = jax.nn.softmax(s, axis=-1) @ v2
        a = a @ p["w_out"].T + p["b_out"]
        hashtag_emb = jnp.max(a, axis=0)

        # ----- MLP head -----
        x = jnp.concatenate([user_emb, hashtag_emb])
        hid = jnp.maximum(x @ p["w1"].T + p["b1"], 0.0)
        o = jax.nn.sigmoid(hid @ p["w2"].T + p["b2"])
        outs.append(o)
    return jnp.stack(outs)


if __name__ == "__main__":
    key = jax.random.PRNGKey(0)
    kp, ku, kh = jax.random.split(key, 3)
    params = init_params(kp)

    B, Lu_max, Lh_max = 2, 8, 8
    user_features = jax.random.normal(ku, (B, Lu_max, D), jnp.float32)
    hashtag_features = jax.random.normal(kh, (B, Lh_max, D), jnp.float32)
    user_lens = jnp.array([5, 8], jnp.int32)
    hashtag_lens = jnp.array([4, 7], jnp.int32)

    out = mlp_forward(params, user_features, user_lens, hashtag_features, hashtag_lens)
    out = jax.block_until_ready(out)

    ref = torch_like_reference(params, user_features, user_lens, hashtag_features, hashtag_lens)
    err = float(jnp.max(jnp.abs(out - ref)))
    assert err < 1e-2, f"kernel/reference mismatch: max abs err = {err}"
    print("KERNEL_OK")
</pallas_src>

<mosaic_0001>
module attributes {stable_mosaic.version = 11 : i64} {
  func.func @mlp_kernel(%arg0: i32, %arg1: memref<8x8x16xf32, #tpu.memory_space<vmem>>, %arg2: memref<8x8x16xf32, #tpu.memory_space<vmem>>, %arg3: memref<8x1xi32, #tpu.memory_space<vmem>>, %arg4: memref<8x1xi32, #tpu.memory_space<vmem>>, %arg5: memref<16x64xf32, #tpu.memory_space<vmem>>, %arg6: memref<16x64xf32, #tpu.memory_space<vmem>>, %arg7: memref<1x64xf32, #tpu.memory_space<vmem>>, %arg8: memref<16x96xf32, #tpu.memory_space<vmem>>, %arg9: memref<1x96xf32, #tpu.memory_space<vmem>>, %arg10: memref<96x96xf32, #tpu.memory_space<vmem>>, %arg11: memref<1x96xf32, #tpu.memory_space<vmem>>, %arg12: memref<32x32xf32, #tpu.memory_space<vmem>>, %arg13: memref<1x32xf32, #tpu.memory_space<vmem>>, %arg14: memref<16x32xf32, #tpu.memory_space<vmem>>, %arg15: memref<32x32xf32, #tpu.memory_space<vmem>>, %arg16: memref<1x32xf32, #tpu.memory_space<vmem>>, %arg17: memref<1x32xf32, #tpu.memory_space<vmem>>, %arg18: memref<1x1xf32, #tpu.memory_space<vmem>>, %arg19: memref<1x1x8xf32, #tpu.memory_space<vmem>>) attributes {dimension_semantics = [#tpu.dimension_semantics<parallel>], iteration_bounds = array<i64: 1>, scalar_prefetch = 0 : i64, scratch_operands = 0 : i64, tpu.core_type = #tpu.core_type<tc>, window_params = [{transform_indices = @transform_0, window_bounds = array<i64: 8, 8, 16>}, {transform_indices = @transform_1, window_bounds = array<i64: 8, 8, 16>}, {transform_indices = @transform_2, window_bounds = array<i64: 8, 1>}, {transform_indices = @transform_3, window_bounds = array<i64: 8, 1>}, {pipeline_mode = #tpu.pipeline_mode<synchronous>, transform_indices = @transform_4, window_bounds = array<i64: 16, 64>}, {pipeline_mode = #tpu.pipeline_mode<synchronous>, transform_indices = @transform_5, window_bounds = array<i64: 16, 64>}, {pipeline_mode = #tpu.pipeline_mode<synchronous>, transform_indices = @transform_6, window_bounds = array<i64: 1, 64>}, {pipeline_mode = #tpu.pipeline_mode<synchronous>, transform_indices = @transform_7, window_bounds = array<i64: 16, 96>}, {pipeline_mode = #tpu.pipeline_mode<synchronous>, transform_indices = @transform_8, window_bounds = array<i64: 1, 96>}, {pipeline_mode = #tpu.pipeline_mode<synchronous>, transform_indices = @transform_9, window_bounds = array<i64: 96, 96>}, {pipeline_mode = #tpu.pipeline_mode<synchronous>, transform_indices = @transform_10, window_bounds = array<i64: 1, 96>}, {pipeline_mode = #tpu.pipeline_mode<synchronous>, transform_indices = @transform_11, window_bounds = array<i64: 32, 32>}, {pipeline_mode = #tpu.pipeline_mode<synchronous>, transform_indices = @transform_12, window_bounds = array<i64: 1, 32>}, {pipeline_mode = #tpu.pipeline_mode<synchronous>, transform_indices = @transform_13, window_bounds = array<i64: 16, 32>}, {pipeline_mode = #tpu.pipeline_mode<synchronous>, transform_indices = @transform_14, window_bounds = array<i64: 32, 32>}, {pipeline_mode = #tpu.pipeline_mode<synchronous>, transform_indices = @transform_15, window_bounds = array<i64: 1, 32>}, {pipeline_mode = #tpu.pipeline_mode<synchronous>, transform_indices = @transform_16, window_bounds = array<i64: 1, 32>}, {pipeline_mode = #tpu.pipeline_mode<synchronous>, transform_indices = @transform_17, window_bounds = array<i64: 1, 1>}, {transform_indices = @transform_18, window_bounds = array<i64: 1, 1, 8>}]} {
    %c0 = arith.constant 0 : index
    %c0_0 = arith.constant 0 : index
    %c0_1 = arith.constant 0 : index
    %0 = vector.load %arg1[%c0, %c0_0, %c0_1] : memref<8x8x16xf32, #tpu.memory_space<vmem>>, vector<8x8x16xf32>
    %c0_2 = arith.constant 0 : index
    %c0_3 = arith.constant 0 : index
    %c0_4 = arith.constant 0 : index
    %1 = vector.load %arg2[%c0_2, %c0_3, %c0_4] : memref<8x8x16xf32, #tpu.memory_space<vmem>>, vector<8x8x16xf32>
    %c0_5 = arith.constant 0 : index
    %c0_6 = arith.constant 0 : index
    %2 = vector.load %arg3[%c0_5, %c0_6] : memref<8x1xi32, #tpu.memory_space<vmem>>, vector<8x1xi32>
    %c0_7 = arith.constant 0 : index
    %c0_8 = arith.constant 0 : index
    %3 = vector.load %arg4[%c0_7, %c0_8] : memref<8x1xi32, #tpu.memory_space<vmem>>, vector<8x1xi32>
    %c0_9 = arith.constant 0 : index
    %c0_10 = arith.constant 0 : index
    %4 = vector.load %arg6[%c0_9, %c0_10] : memref<16x64xf32, #tpu.memory_space<vmem>>, vector<16x64xf32>
    %5 = vector.shape_cast %0 : vector<8x8x16xf32> to vector<64x16xf32>
    %c0_11 = arith.constant 0 : index
    %c0_12 = arith.constant 0 : index
    %6 = vector.load %arg5[%c0_11, %c0_12] : memref<16x64xf32, #tpu.memory_space<vmem>>, vector<16x64xf32>
    %cst = arith.constant dense<0.000000e+00> : vector<64x64xf32>
    %7 = tpu.matmul %5, %6, %cst {dimension_numbers = #tpu.dot_dimension_numbers<[1], [0], [0], [1], [0, 0, 1, 1], [], []>} : vector<64x16xf32>, vector<16x64xf32>, vector<64x64xf32> -> vector<64x64xf32>
    %c0_13 = arith.constant 0 : index
    %c0_14 = arith.constant 0 : index
    %8 = vector.load %arg7[%c0_13, %c0_14] : memref<1x64xf32, #tpu.memory_space<vmem>>, vector<1x64xf32>
    %9 = vector.broadcast %8 : vector<1x64xf32> to vector<64x64xf32>
    %10 = arith.addf %7, %9 : vector<64x64xf32>
    %11 = vector.shape_cast %10 : vector<64x64xf32> to vector<8x8x64xf32>
    %cst_15 = arith.constant 0.000000e+00 : f32
    %12 = vector.broadcast %cst_15 : f32 to vector<8x16xf32>
    %cst_16 = arith.constant 0.000000e+00 : f32
    %13 = vector.broadcast %cst_16 : f32 to vector<8x16xf32>
    %14 = vector.extract_strided_slice %11 {offsets = [0, 0, 0], sizes = [8, 1, 64], strides = [1, 1, 1]} : vector<8x8x64xf32> to vector<8x1x64xf32>
    %15 = vector.shape_cast %14 : vector<8x1x64xf32> to vector<8x64xf32>
    %cst_17 = arith.constant dense<0.000000e+00> : vector<8x64xf32>
    %16 = tpu.matmul %12, %4, %cst_17 {dimension_numbers = #tpu.dot_dimension_numbers<[1], [0], [0], [1], [0, 0, 1, 1], [], []>} : vector<8x16xf32>, vector<16x64xf32>, vector<8x64xf32> -> vector<8x64xf32>
    %17 = arith.addf %15, %16 : vector<8x64xf32>
    %18 = vector.extract_strided_slice %17 {offsets = [0, 0], sizes = [8, 16], strides = [1, 1]} : vector<8x64xf32> to vector<8x16xf32>
    %19 = arith.negf %18 : vector<8x16xf32>
    %20 = math.exp %19 : vector<8x16xf32>
    %cst_18 = arith.constant 1.000000e+00 : f32
    %21 = vector.broadcast %cst_18 : f32 to vector<8x16xf32>
    %22 = arith.addf %21, %20 : vector<8x16xf32>
    %23 = arith.divf %21, %22 : vector<8x16xf32>
    %24 = vector.extract_strided_slice %17 {offsets = [0, 16], sizes = [8, 16], strides = [1, 1]} : vector<8x64xf32> to vector<8x16xf32>
    %25 = arith.negf %24 : vector<8x16xf32>
    %26 = math.exp %25 : vector<8x16xf32>
    %cst_19 = arith.constant 1.000000e+00 : f32
    %27 = vector.broadcast %cst_19 : f32 to vector<8x16xf32>
    %28 = arith.addf %27, %26 : vector<8x16xf32>
    %29 = arith.divf %27, %28 : vector<8x16xf32>
    %30 = vector.extract_strided_slice %17 {offsets = [0, 32], sizes = [8, 16], strides = [1, 1]} : vector<8x64xf32> to vector<8x16xf32>
    %31 = math.tanh %30 : vector<8x16xf32>
    %32 = vector.extract_strided_slice %17 {offsets = [0, 48], sizes = [8, 16], strides = [1, 1]} : vector<8x64xf32> to vector<8x16xf32>
    %33 = arith.negf %32 : vector<8x16xf32>
    %34 = math.exp %33 : vector<8x16xf32>
    %cst_20 = arith.constant 1.000000e+00 : f32
    %35 = vector.broadcast %cst_20 : f32 to vector<8x16xf32>
    %36 = arith.addf %35, %34 : vector<8x16xf32>
    %37 = arith.divf %35, %36 : vector<8x16xf32>
    %38 = arith.mulf %29, %13 : vector<8x16xf32>
    %39 = arith.mulf %23, %31 : vector<8x16xf32>
    %40 = arith.addf %38, %39 : vector<8x16xf32>
    %41 = math.tanh %40 : vector<8x16xf32>
    %42 = arith.mulf %37, %41 : vector<8x16xf32>
    %c0_i32 = arith.constant 0 : i32
    %43 = vector.broadcast %c0_i32 : i32 to vector<8x1xi32>
    %44 = arith.cmpi sge, %2, %43 : vector<8x1xi32>
    %45 = vector.shape_cast %44 : vector<8x1xi1> to vector<8x1xi1>
    %46 = vector.broadcast %45 : vector<8x1xi1> to vector<8x16xi1>
    %47 = arith.select %46, %42, %12 : vector<8x16xi1>, vector<8x16xf32>
    %48 = vector.shape_cast %44 : vector<8x1xi1> to vector<8x1xi1>
    %49 = vector.broadcast %48 : vector<8x1xi1> to vector<8x16xi1>
    %50 = arith.select %49, %40, %13 : vector<8x16xi1>, vector<8x16xf32>
    %51 = vector.extract_strided_slice %11 {offsets = [0, 0, 0], sizes = [8, 1, 64], strides = [1, 1, 1]} : vector<8x8x64xf32> to vector<8x1x64xf32>
    %52 = vector.shape_cast %51 : vector<8x1x64xf32> to vector<8x64xf32>
    %cst_21 = arith.constant dense<0.000000e+00> : vector<8x64xf32>
    %53 = tpu.matmul %47, %4, %cst_21 {dimension_numbers = #tpu.dot_dimension_numbers<[1], [0], [0], [1], [0, 0, 1, 1], [], []>} : vector<8x16xf32>, vector<16x64xf32>, vector<8x64xf32> -> vector<8x64xf32>
    %54 = arith.addf %52, %53 : vector<8x64xf32>
    %55 = vector.extract_strided_slice %54 {offsets = [0, 0], sizes = [8, 16], strides = [1, 1]} : vector<8x64xf32> to vector<8x16xf32>
    %56 = arith.negf %55 : vector<8x16xf32>
    %57 = math.exp %56 : vector<8x16xf32>
    %cst_22 = arith.constant 1.000000e+00 : f32
    %58 = vector.broadcast %cst_22 : f32 to vector<8x16xf32>
    %59 = arith.addf %58, %57 : vector<8x16xf32>
    %60 = arith.divf %58, %59 : vector<8x16xf32>
    %61 = vector.extract_strided_slice %54 {offsets = [0, 16], sizes = [8, 16], strides = [1, 1]} : vector<8x64xf32> to vector<8x16xf32>
    %62 = arith.negf %61 : vector<8x16xf32>
    %63 = math.exp %62 : vector<8x16xf32>
    %cst_23 = arith.constant 1.000000e+00 : f32
    %64 = vector.broadcast %cst_23 : f32 to vector<8x16xf32>
    %65 = arith.addf %64, %63 : vector<8x16xf32>
    %66 = arith.divf %64, %65 : vector<8x16xf32>
    %67 = vector.extract_strided_slice %54 {offsets = [0, 32], sizes = [8, 16], strides = [1, 1]} : vector<8x64xf32> to vector<8x16xf32>
    %68 = math.tanh %67 : vector<8x16xf32>
    %69 = vector.extract_strided_slice %54 {offsets = [0, 48], sizes = [8, 16], strides = [1, 1]} : vector<8x64xf32> to vector<8x16xf32>
    %70 = arith.negf %69 : vector<8x16xf32>
    %71 = math.exp %70 : vector<8x16xf32>
    %cst_24 = arith.constant 1.000000e+00 : f32
    %72 = vector.broadcast %cst_24 : f32 to vector<8x16xf32>
    %73 = arith.addf %72, %71 : vector<8x16xf32>
    %74 = arith.divf %72, %73 : vector<8x16xf32>
    %75 = arith.mulf %66, %50 : vector<8x16xf32>
    %76 = arith.mulf %60, %68 : vector<8x16xf32>
    %77 = arith.addf %75, %76 : vector<8x16xf32>
    %78 = math.tanh %77 : vector<8x16xf32>
    %79 = arith.mulf %74, %78 : vector<8x16xf32>
    %c1_i32 = arith.constant 1 : i32
    %80 = vector.broadcast %c1_i32 : i32 to vector<8x1xi32>
    %81 = arith.cmpi sge, %2, %80 : vector<8x1xi32>
    %82 = vector.shape_cast %81 : vector<8x1xi1> to vector<8x1xi1>
    %83 = vector.broadcast %82 : vector<8x1xi1> to vector<8x16xi1>
    %84 = arith.select %83, %79, %47 : vector<8x16xi1>, vector<8x16xf32>
    %85 = vector.shape_cast %81 : vector<8x1xi1> to vector<8x1xi1>
    %86 = vector.broadcast %85 : vector<8x1xi1> to vector<8x16xi1>
    %87 = arith.select %86, %77, %50 : vector<8x16xi1>, vector<8x16xf32>
    %88 = vector.extract_strided_slice %11 {offsets = [0, 1, 0], sizes = [8, 1, 64], strides = [1, 1, 1]} : vector<8x8x64xf32> to vector<8x1x64xf32>
    %89 = vector.shape_cast %88 : vector<8x1x64xf32> to vector<8x64xf32>
    %cst_25 = arith.constant dense<0.000000e+00> : vector<8x64xf32>
    %90 = tpu.matmul %84, %4, %cst_25 {dimension_numbers = #tpu.dot_dimension_numbers<[1], [0], [0], [1], [0, 0, 1, 1], [], []>} : vector<8x16xf32>, vector<16x64xf32>, vector<8x64xf32> -> vector<8x64xf32>
    %91 = arith.addf %89, %90 : vector<8x64xf32>
    %92 = vector.extract_strided_slice %91 {offsets = [0, 0], sizes = [8, 16], strides = [1, 1]} : vector<8x64xf32> to vector<8x16xf32>
    %93 = arith.negf %92 : vector<8x16xf32>
    %94 = math.exp %93 : vector<8x16xf32>
    %cst_26 = arith.constant 1.000000e+00 : f32
    %95 = vector.broadcast %cst_26 : f32 to vector<8x16xf32>
    %96 = arith.addf %95, %94 : vector<8x16xf32>
    %97 = arith.divf %95, %96 : vector<8x16xf32>
    %98 = vector.extract_strided_slice %91 {offsets = [0, 16], sizes = [8, 16], strides = [1, 1]} : vector<8x64xf32> to vector<8x16xf32>
    %99 = arith.negf %98 : vector<8x16xf32>
    %100 = math.exp %99 : vector<8x16xf32>
    %cst_27 = arith.constant 1.000000e+00 : f32
    %101 = vector.broadcast %cst_27 : f32 to vector<8x16xf32>
    %102 = arith.addf %101, %100 : vector<8x16xf32>
    %103 = arith.divf %101, %102 : vector<8x16xf32>
    %104 = vector.extract_strided_slice %91 {offsets = [0, 32], sizes = [8, 16], strides = [1, 1]} : vector<8x64xf32> to vector<8x16xf32>
    %105 = math.tanh %104 : vector<8x16xf32>
    %106 = vector.extract_strided_slice %91 {offsets = [0, 48], sizes = [8, 16], strides = [1, 1]} : vector<8x64xf32> to vector<8x16xf32>
    %107 = arith.negf %106 : vector<8x16xf32>
    %108 = math.exp %107 : vector<8x16xf32>
    %cst_28 = arith.constant 1.000000e+00 : f32
    %109 = vector.broadcast %cst_28 : f32 to vector<8x16xf32>
    %110 = arith.addf %109, %108 : vector<8x16xf32>
    %111 = arith.divf %109, %110 : vector<8x16xf32>
    %112 = arith.mulf %103, %87 : vector<8x16xf32>
    %113 = arith.mulf %97, %105 : vector<8x16xf32>
    %114 = arith.addf %112, %113 : vector<8x16xf32>
    %115 = math.tanh %114 : vector<8x16xf32>
    %116 = arith.mulf %111, %115 : vector<8x16xf32>
    %c2_i32 = arith.constant 2 : i32
    %117 = vector.broadcast %c2_i32 : i32 to vector<8x1xi32>
    %118 = arith.cmpi sge, %2, %117 : vector<8x1xi32>
    %119 = vector.shape_cast %118 : vector<8x1xi1> to vector<8x1xi1>
    %120 = vector.broadcast %119 : vector<8x1xi1> to vector<8x16xi1>
    %121 = arith.select %120, %116, %84 : vector<8x16xi1>, vector<8x16xf32>
    %122 = vector.shape_cast %118 : vector<8x1xi1> to vector<8x1xi1>
    %123 = vector.broadcast %122 : vector<8x1xi1> to vector<8x16xi1>
    %124 = arith.select %123, %114, %87 : vector<8x16xi1>, vector<8x16xf32>
    %125 = vector.extract_strided_slice %11 {offsets = [0, 2, 0], sizes = [8, 1, 64], strides = [1, 1, 1]} : vector<8x8x64xf32> to vector<8x1x64xf32>
    %126 = vector.shape_cast %125 : vector<8x1x64xf32> to vector<8x64xf32>
    %cst_29 = arith.constant dense<0.000000e+00> : vector<8x64xf32>
    %127 = tpu.matmul %121, %4, %cst_29 {dimension_numbers = #tpu.dot_dimension_numbers<[1], [0], [0], [1], [0, 0, 1, 1], [], []>} : vector<8x16xf32>, vector<16x64xf32>, vector<8x64xf32> -> vector<8x64xf32>
    %128 = arith.addf %126, %127 : vector<8x64xf32>
    %129 = vector.extract_strided_slice %128 {offsets = [0, 0], sizes = [8, 16], strides = [1, 1]} : vector<8x64xf32> to vector<8x16xf32>
    %130 = arith.negf %129 : vector<8x16xf32>
    %131 = math.exp %130 : vector<8x16xf32>
    %cst_30 = arith.constant 1.000000e+00 : f32
    %132 = vector.broadcast %cst_30 : f32 to vector<8x16xf32>
    %133 = arith.addf %132, %131 : vector<8x16xf32>
    %134 = arith.divf %132, %133 : vector<8x16xf32>
    %135 = vector.extract_strided_slice %128 {offsets = [0, 16], sizes = [8, 16], strides = [1, 1]} : vector<8x64xf32> to vector<8x16xf32>
    %136 = arith.negf %135 : vector<8x16xf32>
    %137 = math.exp %136 : vector<8x16xf32>
    %cst_31 = arith.constant 1.000000e+00 : f32
    %138 = vector.broadcast %cst_31 : f32 to vector<8x16xf32>
    %139 = arith.addf %138, %137 : vector<8x16xf32>
    %140 = arith.divf %138, %139 : vector<8x16xf32>
    %141 = vector.extract_strided_slice %128 {offsets = [0, 32], sizes = [8, 16], strides = [1, 1]} : vector<8x64xf32> to vector<8x16xf32>
    %142 = math.tanh %141 : vector<8x16xf32>
    %143 = vector.extract_strided_slice %128 {offsets = [0, 48], sizes = [8, 16], strides = [1, 1]} : vector<8x64xf32> to vector<8x16xf32>
    %144 = arith.negf %143 : vector<8x16xf32>
    %145 = math.exp %144 : vector<8x16xf32>
    %cst_32 = arith.constant 1.000000e+00 : f32
    %146 = vector.broadcast %cst_32 : f32 to vector<8x16xf32>
    %147 = arith.addf %146, %145 : vector<8x16xf32>
    %148 = arith.divf %146, %147 : vector<8x16xf32>
    %149 = arith.mulf %140, %124 : vector<8x16xf32>
    %150 = arith.mulf %134, %142 : vector<8x16xf32>
    %151 = arith.addf %149, %150 : vector<8x16xf32>
    %152 = math.tanh %151 : vector<8x16xf32>
    %153 = arith.mulf %148, %152 : vector<8x16xf32>
    %c3_i32 = arith.constant 3 : i32
    %154 = vector.broadcast %c3_i32 : i32 to vector<8x1xi32>
    %155 = arith.cmpi sge, %2, %154 : vector<8x1xi32>
    %156 = vector.shape_cast %155 : vector<8x1xi1> to vector<8x1xi1>
    %157 = vector.broadcast %156 : vector<8x1xi1> to vector<8x16xi1>
    %158 = arith.select %157, %153, %121 : vector<8x16xi1>, vector<8x16xf32>
    %159 = vector.shape_cast %155 : vector<8x1xi1> to vector<8x1xi1>
    %160 = vector.broadcast %159 : vector<8x1xi1> to vector<8x16xi1>
    %161 = arith.select %160, %151, %124 : vector<8x16xi1>, vector<8x16xf32>
    %162 = vector.extract_strided_slice %11 {offsets = [0, 3, 0], sizes = [8, 1, 64], strides = [1, 1, 1]} : vector<8x8x64xf32> to vector<8x1x64xf32>
    %163 = vector.shape_cast %162 : vector<8x1x64xf32> to vector<8x64xf32>
    %cst_33 = arith.constant dense<0.000000e+00> : vector<8x64xf32>
    %164 = tpu.matmul %158, %4, %cst_33 {dimension_numbers = #tpu.dot_dimension_numbers<[1], [0], [0], [1], [0, 0, 1, 1], [], []>} : vector<8x16xf32>, vector<16x64xf32>, vector<8x64xf32> -> vector<8x64xf32>
    %165 = arith.addf %163, %164 : vector<8x64xf32>
    %166 = vector.extract_strided_slice %165 {offsets = [0, 0], sizes = [8, 16], strides = [1, 1]} : vector<8x64xf32> to vector<8x16xf32>
    %167 = arith.negf %166 : vector<8x16xf32>
    %168 = math.exp %167 : vector<8x16xf32>
    %cst_34 = arith.constant 1.000000e+00 : f32
    %169 = vector.broadcast %cst_34 : f32 to vector<8x16xf32>
    %170 = arith.addf %169, %168 : vector<8x16xf32>
    %171 = arith.divf %169, %170 : vector<8x16xf32>
    %172 = vector.extract_strided_slice %165 {offsets = [0, 16], sizes = [8, 16], strides = [1, 1]} : vector<8x64xf32> to vector<8x16xf32>
    %173 = arith.negf %172 : vector<8x16xf32>
    %174 = math.exp %173 : vector<8x16xf32>
    %cst_35 = arith.constant 1.000000e+00 : f32
    %175 = vector.broadcast %cst_35 : f32 to vector<8x16xf32>
    %176 = arith.addf %175, %174 : vector<8x16xf32>
    %177 = arith.divf %175, %176 : vector<8x16xf32>
    %178 = vector.extract_strided_slice %165 {offsets = [0, 32], sizes = [8, 16], strides = [1, 1]} : vector<8x64xf32> to vector<8x16xf32>
    %179 = math.tanh %178 : vector<8x16xf32>
    %180 = vector.extract_strided_slice %165 {offsets = [0, 48], sizes = [8, 16], strides = [1, 1]} : vector<8x64xf32> to vector<8x16xf32>
    %181 = arith.negf %180 : vector<8x16xf32>
    %182 = math.exp %181 : vector<8x16xf32>
    %cst_36 = arith.constant 1.000000e+00 : f32
    %183 = vector.broadcast %cst_36 : f32 to vector<8x16xf32>
    %184 = arith.addf %183, %182 : vector<8x16xf32>
    %185 = arith.divf %183, %184 : vector<8x16xf32>
    %186 = arith.mulf %177, %161 : vector<8x16xf32>
    %187 = arith.mulf %171, %179 : vector<8x16xf32>
    %188 = arith.addf %186, %187 : vector<8x16xf32>
    %189 = math.tanh %188 : vector<8x16xf32>
    %190 = arith.mulf %185, %189 : vector<8x16xf32>
    %c4_i32 = arith.constant 4 : i32
    %191 = vector.broadcast %c4_i32 : i32 to vector<8x1xi32>
    %192 = arith.cmpi sge, %2, %191 : vector<8x1xi32>
    %193 = vector.shape_cast %192 : vector<8x1xi1> to vector<8x1xi1>
    %194 = vector.broadcast %193 : vector<8x1xi1> to vector<8x16xi1>
    %195 = arith.select %194, %190, %158 : vector<8x16xi1>, vector<8x16xf32>
    %196 = vector.shape_cast %192 : vector<8x1xi1> to vector<8x1xi1>
    %197 = vector.broadcast %196 : vector<8x1xi1> to vector<8x16xi1>
    %198 = arith.select %197, %188, %161 : vector<8x16xi1>, vector<8x16xf32>
    %199 = vector.extract_strided_slice %11 {offsets = [0, 4, 0], sizes = [8, 1, 64], strides = [1, 1, 1]} : vector<8x8x64xf32> to vector<8x1x64xf32>
    %200 = vector.shape_cast %199 : vector<8x1x64xf32> to vector<8x64xf32>
    %cst_37 = arith.constant dense<0.000000e+00> : vector<8x64xf32>
    %201 = tpu.matmul %195, %4, %cst_37 {dimension_numbers = #tpu.dot_dimension_numbers<[1], [0], [0], [1], [0, 0, 1, 1], [], []>} : vector<8x16xf32>, vector<16x64xf32>, vector<8x64xf32> -> vector<8x64xf32>
    %202 = arith.addf %200, %201 : vector<8x64xf32>
    %203 = vector.extract_strided_slice %202 {offsets = [0, 0], sizes = [8, 16], strides = [1, 1]} : vector<8x64xf32> to vector<8x16xf32>
    %204 = arith.negf %203 : vector<8x16xf32>
    %205 = math.exp %204 : vector<8x16xf32>
    %cst_38 = arith.constant 1.000000e+00 : f32
    %206 = vector.broadcast %cst_38 : f32 to vector<8x16xf32>
    %207 = arith.addf %206, %205 : vector<8x16xf32>
    %208 = arith.divf %206, %207 : vector<8x16xf32>
    %209 = vector.extract_strided_slice %202 {offsets = [0, 16], sizes = [8, 16], strides = [1, 1]} : vector<8x64xf32> to vector<8x16xf32>
    %210 = arith.negf %209 : vector<8x16xf32>
    %211 = math.exp %210 : vector<8x16xf32>
    %cst_39 = arith.constant 1.000000e+00 : f32
    %212 = vector.broadcast %cst_39 : f32 to vector<8x16xf32>
    %213 = arith.addf %212, %211 : vector<8x16xf32>
    %214 = arith.divf %212, %213 : vector<8x16xf32>
    %215 = vector.extract_strided_slice %202 {offsets = [0, 32], sizes = [8, 16], strides = [1, 1]} : vector<8x64xf32> to vector<8x16xf32>
    %216 = math.tanh %215 : vector<8x16xf32>
    %217 = vector.extract_strided_slice %202 {offsets = [0, 48], sizes = [8, 16], strides = [1, 1]} : vector<8x64xf32> to vector<8x16xf32>
    %218 = arith.negf %217 : vector<8x16xf32>
    %219 = math.exp %218 : vector<8x16xf32>
    %cst_40 = arith.constant 1.000000e+00 : f32
    %220 = vector.broadcast %cst_40 : f32 to vector<8x16xf32>
    %221 = arith.addf %220, %219 : vector<8x16xf32>
    %222 = arith.divf %220, %221 : vector<8x16xf32>
    %223 = arith.mulf %214, %198 : vector<8x16xf32>
    %224 = arith.mulf %208, %216 : vector<8x16xf32>
    %225 = arith.addf %223, %224 : vector<8x16xf32>
    %226 = math.tanh %225 : vector<8x16xf32>
    %227 = arith.mulf %222, %226 : vector<8x16xf32>
    %c5_i32 = arith.constant 5 : i32
    %228 = vector.broadcast %c5_i32 : i32 to vector<8x1xi32>
    %229 = arith.cmpi sge, %2, %228 : vector<8x1xi32>
    %230 = vector.shape_cast %229 : vector<8x1xi1> to vector<8x1xi1>
    %231 = vector.broadcast %230 : vector<8x1xi1> to vector<8x16xi1>
    %232 = arith.select %231, %227, %195 : vector<8x16xi1>, vector<8x16xf32>
    %233 = vector.shape_cast %229 : vector<8x1xi1> to vector<8x1xi1>
    %234 = vector.broadcast %233 : vector<8x1xi1> to vector<8x16xi1>
    %235 = arith.select %234, %225, %198 : vector<8x16xi1>, vector<8x16xf32>
    %236 = vector.extract_strided_slice %11 {offsets = [0, 5, 0], sizes = [8, 1, 64], strides = [1, 1, 1]} : vector<8x8x64xf32> to vector<8x1x64xf32>
    %237 = vector.shape_cast %236 : vector<8x1x64xf32> to vector<8x64xf32>
    %cst_41 = arith.constant dense<0.000000e+00> : vector<8x64xf32>
    %238 = tpu.matmul %232, %4, %cst_41 {dimension_numbers = #tpu.dot_dimension_numbers<[1], [0], [0], [1], [0, 0, 1, 1], [], []>} : vector<8x16xf32>, vector<16x64xf32>, vector<8x64xf32> -> vector<8x64xf32>
    %239 = arith.addf %237, %238 : vector<8x64xf32>
    %240 = vector.extract_strided_slice %239 {offsets = [0, 0], sizes = [8, 16], strides = [1, 1]} : vector<8x64xf32> to vector<8x16xf32>
    %241 = arith.negf %240 : vector<8x16xf32>
    %242 = math.exp %241 : vector<8x16xf32>
    %cst_42 = arith.constant 1.000000e+00 : f32
    %243 = vector.broadcast %cst_42 : f32 to vector<8x16xf32>
    %244 = arith.addf %243, %242 : vector<8x16xf32>
    %245 = arith.divf %243, %244 : vector<8x16xf32>
    %246 = vector.extract_strided_slice %239 {offsets = [0, 16], sizes = [8, 16], strides = [1, 1]} : vector<8x64xf32> to vector<8x16xf32>
    %247 = arith.negf %246 : vector<8x16xf32>
    %248 = math.exp %247 : vector<8x16xf32>
    %cst_43 = arith.constant 1.000000e+00 : f32
    %249 = vector.broadcast %cst_43 : f32 to vector<8x16xf32>
    %250 = arith.addf %249, %248 : vector<8x16xf32>
    %251 = arith.divf %249, %250 : vector<8x16xf32>
    %252 = vector.extract_strided_slice %239 {offsets = [0, 32], sizes = [8, 16], strides = [1, 1]} : vector<8x64xf32> to vector<8x16xf32>
    %253 = math.tanh %252 : vector<8x16xf32>
    %254 = vector.extract_strided_slice %239 {offsets = [0, 48], sizes = [8, 16], strides = [1, 1]} : vector<8x64xf32> to vector<8x16xf32>
    %255 = arith.negf %254 : vector<8x16xf32>
    %256 = math.exp %255 : vector<8x16xf32>
    %cst_44 = arith.constant 1.000000e+00 : f32
    %257 = vector.broadcast %cst_44 : f32 to vector<8x16xf32>
    %258 = arith.addf %257, %256 : vector<8x16xf32>
    %259 = arith.divf %257, %258 : vector<8x16xf32>
    %260 = arith.mulf %251, %235 : vector<8x16xf32>
    %261 = arith.mulf %245, %253 : vector<8x16xf32>
    %262 = arith.addf %260, %261 : vector<8x16xf32>
    %263 = math.tanh %262 : vector<8x16xf32>
    %264 = arith.mulf %259, %263 : vector<8x16xf32>
    %c6_i32 = arith.constant 6 : i32
    %265 = vector.broadcast %c6_i32 : i32 to vector<8x1xi32>
    %266 = arith.cmpi sge, %2, %265 : vector<8x1xi32>
    %267 = vector.shape_cast %266 : vector<8x1xi1> to vector<8x1xi1>
    %268 = vector.broadcast %267 : vector<8x1xi1> to vector<8x16xi1>
    %269 = arith.select %268, %264, %232 : vector<8x16xi1>, vector<8x16xf32>
    %270 = vector.shape_cast %266 : vector<8x1xi1> to vector<8x1xi1>
    %271 = vector.broadcast %270 : vector<8x1xi1> to vector<8x16xi1>
    %272 = arith.select %271, %262, %235 : vector<8x16xi1>, vector<8x16xf32>
    %273 = vector.extract_strided_slice %11 {offsets = [0, 6, 0], sizes = [8, 1, 64], strides = [1, 1, 1]} : vector<8x8x64xf32> to vector<8x1x64xf32>
    %274 = vector.shape_cast %273 : vector<8x1x64xf32> to vector<8x64xf32>
    %cst_45 = arith.constant dense<0.000000e+00> : vector<8x64xf32>
    %275 = tpu.matmul %269, %4, %cst_45 {dimension_numbers = #tpu.dot_dimension_numbers<[1], [0], [0], [1], [0, 0, 1, 1], [], []>} : vector<8x16xf32>, vector<16x64xf32>, vector<8x64xf32> -> vector<8x64xf32>
    %276 = arith.addf %274, %275 : vector<8x64xf32>
    %277 = vector.extract_strided_slice %276 {offsets = [0, 0], sizes = [8, 16], strides = [1, 1]} : vector<8x64xf32> to vector<8x16xf32>
    %278 = arith.negf %277 : vector<8x16xf32>
    %279 = math.exp %278 : vector<8x16xf32>
    %cst_46 = arith.constant 1.000000e+00 : f32
    %280 = vector.broadcast %cst_46 : f32 to vector<8x16xf32>
    %281 = arith.addf %280, %279 : vector<8x16xf32>
    %282 = arith.divf %280, %281 : vector<8x16xf32>
    %283 = vector.extract_strided_slice %276 {offsets = [0, 16], sizes = [8, 16], strides = [1, 1]} : vector<8x64xf32> to vector<8x16xf32>
    %284 = arith.negf %283 : vector<8x16xf32>
    %285 = math.exp %284 : vector<8x16xf32>
    %cst_47 = arith.constant 1.000000e+00 : f32
    %286 = vector.broadcast %cst_47 : f32 to vector<8x16xf32>
    %287 = arith.addf %286, %285 : vector<8x16xf32>
    %288 = arith.divf %286, %287 : vector<8x16xf32>
    %289 = vector.extract_strided_slice %276 {offsets = [0, 32], sizes = [8, 16], strides = [1, 1]} : vector<8x64xf32> to vector<8x16xf32>
    %290 = math.tanh %289 : vector<8x16xf32>
    %291 = vector.extract_strided_slice %276 {offsets = [0, 48], sizes = [8, 16], strides = [1, 1]} : vector<8x64xf32> to vector<8x16xf32>
    %292 = arith.negf %291 : vector<8x16xf32>
    %293 = math.exp %292 : vector<8x16xf32>
    %cst_48 = arith.constant 1.000000e+00 : f32
    %294 = vector.broadcast %cst_48 : f32 to vector<8x16xf32>
    %295 = arith.addf %294, %293 : vector<8x16xf32>
    %296 = arith.divf %294, %295 : vector<8x16xf32>
    %297 = arith.mulf %288, %272 : vector<8x16xf32>
    %298 = arith.mulf %282, %290 : vector<8x16xf32>
    %299 = arith.addf %297, %298 : vector<8x16xf32>
    %300 = math.tanh %299 : vector<8x16xf32>
    %301 = arith.mulf %296, %300 : vector<8x16xf32>
    %c7_i32 = arith.constant 7 : i32
    %302 = vector.broadcast %c7_i32 : i32 to vector<8x1xi32>
    %303 = arith.cmpi sge, %2, %302 : vector<8x1xi32>
    %304 = vector.shape_cast %303 : vector<8x1xi1> to vector<8x1xi1>
    %305 = vector.broadcast %304 : vector<8x1xi1> to vector<8x16xi1>
    %306 = arith.select %305, %301, %269 : vector<8x16xi1>, vector<8x16xf32>
    %307 = vector.shape_cast %303 : vector<8x1xi1> to vector<8x1xi1>
    %308 = vector.broadcast %307 : vector<8x1xi1> to vector<8x16xi1>
    %309 = arith.select %308, %299, %272 : vector<8x16xi1>, vector<8x16xf32>
    %310 = vector.extract_strided_slice %11 {offsets = [0, 7, 0], sizes = [8, 1, 64], strides = [1, 1, 1]} : vector<8x8x64xf32> to vector<8x1x64xf32>
    %311 = vector.shape_cast %310 : vector<8x1x64xf32> to vector<8x64xf32>
    %cst_49 = arith.constant dense<0.000000e+00> : vector<8x64xf32>
    %312 = tpu.matmul %306, %4, %cst_49 {dimension_numbers = #tpu.dot_dimension_numbers<[1], [0], [0], [1], [0, 0, 1, 1], [], []>} : vector<8x16xf32>, vector<16x64xf32>, vector<8x64xf32> -> vector<8x64xf32>
    %313 = arith.addf %311, %312 : vector<8x64xf32>
    %314 = vector.extract_strided_slice %313 {offsets = [0, 0], sizes = [8, 16], strides = [1, 1]} : vector<8x64xf32> to vector<8x16xf32>
    %315 = arith.negf %314 : vector<8x16xf32>
    %316 = math.exp %315 : vector<8x16xf32>
    %cst_50 = arith.constant 1.000000e+00 : f32
    %317 = vector.broadcast %cst_50 : f32 to vector<8x16xf32>
    %318 = arith.addf %317, %316 : vector<8x16xf32>
    %319 = arith.divf %317, %318 : vector<8x16xf32>
    %320 = vector.extract_strided_slice %313 {offsets = [0, 16], sizes = [8, 16], strides = [1, 1]} : vector<8x64xf32> to vector<8x16xf32>
    %321 = arith.negf %320 : vector<8x16xf32>
    %322 = math.exp %321 : vector<8x16xf32>
    %cst_51 = arith.constant 1.000000e+00 : f32
    %323 = vector.broadcast %cst_51 : f32 to vector<8x16xf32>
    %324 = arith.addf %323, %322 : vector<8x16xf32>
    %325 = arith.divf %323, %324 : vector<8x16xf32>
    %326 = vector.extract_strided_slice %313 {offsets = [0, 32], sizes = [8, 16], strides = [1, 1]} : vector<8x64xf32> to vector<8x16xf32>
    %327 = math.tanh %326 : vector<8x16xf32>
    %328 = vector.extract_strided_slice %313 {offsets = [0, 48], sizes = [8, 16], strides = [1, 1]} : vector<8x64xf32> to vector<8x16xf32>
    %329 = arith.negf %328 : vector<8x16xf32>
    %330 = math.exp %329 : vector<8x16xf32>
    %cst_52 = arith.constant 1.000000e+00 : f32
    %331 = vector.broadcast %cst_52 : f32 to vector<8x16xf32>
    %332 = arith.addf %331, %330 : vector<8x16xf32>
    %333 = arith.divf %331, %332 : vector<8x16xf32>
    %334 = arith.mulf %325, %309 : vector<8x16xf32>
    %335 = arith.mulf %319, %327 : vector<8x16xf32>
    %336 = arith.addf %334, %335 : vector<8x16xf32>
    %337 = math.tanh %336 : vector<8x16xf32>
    %338 = arith.mulf %333, %337 : vector<8x16xf32>
    %c8_i32 = arith.constant 8 : i32
    %339 = vector.broadcast %c8_i32 : i32 to vector<8x1xi32>
    %340 = arith.cmpi sge, %2, %339 : vector<8x1xi32>
    %341 = vector.shape_cast %340 : vector<8x1xi1> to vector<8x1xi1>
    %342 = vector.broadcast %341 : vector<8x1xi1> to vector<8x16xi1>
    %343 = arith.select %342, %338, %306 : vector<8x16xi1>, vector<8x16xf32>
    %344 = vector.shape_cast %1 : vector<8x8x16xf32> to vector<64x16xf32>
    %c0_53 = arith.constant 0 : index
    %c0_54 = arith.constant 0 : index
    %345 = vector.load %arg8[%c0_53, %c0_54] : memref<16x96xf32, #tpu.memory_space<vmem>>, vector<16x96xf32>
    %cst_55 = arith.constant dense<0.000000e+00> : vector<64x96xf32>
    %346 = tpu.matmul %344, %345, %cst_55 {dimension_numbers = #tpu.dot_dimension_numbers<[1], [0], [0], [1], [0, 0, 1, 1], [], []>} : vector<64x16xf32>, vector<16x96xf32>, vector<64x96xf32> -> vector<64x96xf32>
    %c0_56 = arith.constant 0 : index
    %c0_57 = arith.constant 0 : index
    %347 = vector.load %arg9[%c0_56, %c0_57] : memref<1x96xf32, #tpu.memory_space<vmem>>, vector<1x96xf32>
    %348 = vector.broadcast %347 : vector<1x96xf32> to vector<64x96xf32>
    %349 = arith.addf %346, %348 : vector<64x96xf32>
    %c0_58 = arith.constant 0 : index
    %c0_59 = arith.constant 0 : index
    %350 = vector.load %arg10[%c0_58, %c0_59] : memref<96x96xf32, #tpu.memory_space<vmem>>, vector<96x96xf32>
    %cst_60 = arith.constant dense<0.000000e+00> : vector<64x96xf32>
    %351 = tpu.matmul %349, %350, %cst_60 {dimension_numbers = #tpu.dot_dimension_numbers<[1], [0], [0], [1], [0, 0, 1, 1], [], []>} : vector<64x96xf32>, vector<96x96xf32>, vector<64x96xf32> -> vector<64x96xf32>
    %c0_61 = arith.constant 0 : index
    %c0_62 = arith.constant 0 : index
    %352 = vector.load %arg11[%c0_61, %c0_62] : memref<1x96xf32, #tpu.memory_space<vmem>>, vector<1x96xf32>
    %353 = vector.broadcast %352 : vector<1x96xf32> to vector<64x96xf32>
    %354 = arith.addf %351, %353 : vector<64x96xf32>
    %355 = vector.extract_strided_slice %354 {offsets = [0, 0], sizes = [64, 32], strides = [1, 1]} : vector<64x96xf32> to vector<64x32xf32>
    %356 = vector.shape_cast %355 : vector<64x32xf32> to vector<8x8x32xf32>
    %357 = vector.extract_strided_slice %354 {offsets = [0, 32], sizes = [64, 32], strides = [1, 1]} : vector<64x96xf32> to vector<64x32xf32>
    %358 = vector.shape_cast %357 : vector<64x32xf32> to vector<8x8x32xf32>
    %359 = vector.extract_strided_slice %354 {offsets = [0, 64], sizes = [64, 32], strides = [1, 1]} : vector<64x96xf32> to vector<64x32xf32>
    %360 = vector.shape_cast %359 : vector<64x32xf32> to vector<8x8x32xf32>
    "tpu.trace_start"() <{level = 10 : i32, message = "bqe,bke->bqk"}> : () -> ()
    %cst_63 = arith.constant dense<0.000000e+00> : vector<8x8x8xf32>
    %361 = tpu.matmul %356, %358, %cst_63 {dimension_numbers = #tpu.dot_dimension_numbers<[2], [2], [1], [1], [0, 0, 0, 1, 1, 1], [0], [0]>} : vector<8x8x32xf32>, vector<8x8x32xf32>, vector<8x8x8xf32> -> vector<8x8x8xf32>
    "tpu.trace_stop"() : () -> ()
    %362 = tpu.iota {dimensions = array<i32: 2>} : vector<8x8x8xi32>
    %363 = vector.shape_cast %3 : vector<8x1xi32> to vector<8x1x1xi32>
    %364 = vector.broadcast %363 : vector<8x1x1xi32> to vector<8x8x8xi32>
    %365 = arith.cmpi slt, %362, %364 : vector<8x8x8xi32>
    %cst_64 = arith.constant -1.000000e+30 : f32
    %366 = vector.broadcast %cst_64 : f32 to vector<8x8x8xf32>
    %367 = arith.select %365, %361, %366 : vector<8x8x8xi1>, vector<8x8x8xf32>
    %cst_65 = arith.constant dense<0xFF800000> : vector<8x8xf32>
    %368 = vector.multi_reduction <maximumf>, %367, %cst_65 [2] : vector<8x8x8xf32> to vector<8x8xf32>
    %369 = vector.shape_cast %368 : vector<8x8xf32> to vector<8x8x1xf32>
    %370 = vector.broadcast %369 : vector<8x8x1xf32> to vector<8x8x8xf32>
    %371 = arith.subf %367, %370 : vector<8x8x8xf32>
    %372 = math.exp %371 : vector<8x8x8xf32>
    %cst_66 = arith.constant dense<0.000000e+00> : vector<8x8xf32>
    %373 = vector.multi_reduction <add>, %372, %cst_66 [2] : vector<8x8x8xf32> to vector<8x8xf32>
    %374 = vector.shape_cast %373 : vector<8x8xf32> to vector<8x8x1xf32>
    %375 = tpu.reciprocal %374 {approx = true} : vector<8x8x1xf32> -> vector<8x8x1xf32>
    %376 = vector.broadcast %375 : vector<8x8x1xf32> to vector<8x8x8xf32>
    %377 = arith.mulf %372, %376 : vector<8x8x8xf32>
    "tpu.trace_start"() <{level = 10 : i32, message = "bqk,bke->bqe"}> : () -> ()
    %cst_67 = arith.constant dense<0.000000e+00> : vector<8x8x32xf32>
    %378 = tpu.matmul %377, %360, %cst_67 {dimension_numbers = #tpu.dot_dimension_numbers<[2], [1], [1], [2], [0, 0, 0, 1, 1, 2], [0], [0]>} : vector<8x8x8xf32>, vector<8x8x32xf32>, vector<8x8x32xf32> -> vector<8x8x32xf32>
    "tpu.trace_stop"() : () -> ()
    %379 = vector.shape_cast %378 : vector<8x8x32xf32> to vector<64x32xf32>
    %c0_68 = arith.constant 0 : index
    %c0_69 = arith.constant 0 : index
    %380 = vector.load %arg12[%c0_68, %c0_69] : memref<32x32xf32, #tpu.memory_space<vmem>>, vector<32x32xf32>
    %cst_70 = arith.constant dense<0.000000e+00> : vector<64x32xf32>
    %381 = tpu.matmul %379, %380, %cst_70 {dimension_numbers = #tpu.dot_dimension_numbers<[1], [0], [0], [1], [0, 0, 1, 1], [], []>} : vector<64x32xf32>, vector<32x32xf32>, vector<64x32xf32> -> vector<64x32xf32>
    %c0_71 = arith.constant 0 : index
    %c0_72 = arith.constant 0 : index
    %382 = vector.load %arg13[%c0_71, %c0_72] : memref<1x32xf32, #tpu.memory_space<vmem>>, vector<1x32xf32>
    %383 = vector.broadcast %382 : vector<1x32xf32> to vector<64x32xf32>
    %384 = arith.addf %381, %383 : vector<64x32xf32>
    %385 = vector.shape_cast %384 : vector<64x32xf32> to vector<8x8x32xf32>
    %386 = tpu.iota {dimensions = array<i32: 1>} : vector<8x8x1xi32>
    %387 = vector.shape_cast %3 : vector<8x1xi32> to vector<8x1x1xi32>
    %388 = vector.broadcast %387 : vector<8x1x1xi32> to vector<8x8x1xi32>
    %389 = arith.cmpi slt, %386, %388 : vector<8x8x1xi32>
    %cst_73 = arith.constant -1.000000e+30 : f32
    %390 = vector.shape_cast %389 : vector<8x8x1xi1> to vector<8x8x1xi1>
    %391 = vector.broadcast %390 : vector<8x8x1xi1> to vector<8x8x32xi1>
    %392 = vector.broadcast %cst_73 : f32 to vector<8x8x32xf32>
    %393 = arith.select %391, %385, %392 : vector<8x8x32xi1>, vector<8x8x32xf32>
    %cst_74 = arith.constant dense<0xFF800000> : vector<8x32xf32>
    %394 = vector.multi_reduction <maximumf>, %393, %cst_74 [1] : vector<8x8x32xf32> to vector<8x32xf32>
    %c0_75 = arith.constant 0 : index
    %c0_76 = arith.constant 0 : index
    %395 = vector.load %arg14[%c0_75, %c0_76] : memref<16x32xf32, #tpu.memory_space<vmem>>, vector<16x32xf32>
    %cst_77 = arith.constant dense<0.000000e+00> : vector<8x32xf32>
    %396 = tpu.matmul %343, %395, %cst_77 {dimension_numbers = #tpu.dot_dimension_numbers<[1], [0], [0], [1], [0, 0, 1, 1], [], []>} : vector<8x16xf32>, vector<16x32xf32>, vector<8x32xf32> -> vector<8x32xf32>
    %c0_78 = arith.constant 0 : index
    %c0_79 = arith.constant 0 : index
    %397 = vector.load %arg15[%c0_78, %c0_79] : memref<32x32xf32, #tpu.memory_space<vmem>>, vector<32x32xf32>
    %cst_80 = arith.constant dense<0.000000e+00> : vector<8x32xf32>
    %398 = tpu.matmul %394, %397, %cst_80 {dimension_numbers = #tpu.dot_dimension_numbers<[1], [0], [0], [1], [0, 0, 1, 1], [], []>} : vector<8x32xf32>, vector<32x32xf32>, vector<8x32xf32> -> vector<8x32xf32>
    %399 = arith.addf %396, %398 : vector<8x32xf32>
    %c0_81 = arith.constant 0 : index
    %c0_82 = arith.constant 0 : index
    %400 = vector.load %arg16[%c0_81, %c0_82] : memref<1x32xf32, #tpu.memory_space<vmem>>, vector<1x32xf32>
    %401 = vector.broadcast %400 : vector<1x32xf32> to vector<8x32xf32>
    %402 = arith.addf %399, %401 : vector<8x32xf32>
    %cst_83 = arith.constant 0.000000e+00 : f32
    %403 = vector.broadcast %cst_83 : f32 to vector<8x32xf32>
    %404 = arith.maximumf %402, %403 : vector<8x32xf32>
    %c0_84 = arith.constant 0 : index
    %c0_85 = arith.constant 0 : index
    %405 = vector.load %arg17[%c0_84, %c0_85] : memref<1x32xf32, #tpu.memory_space<vmem>>, vector<1x32xf32>
    %cst_86 = arith.constant dense<0.000000e+00> : vector<1x8xf32>
    %406 = tpu.matmul %405, %404, %cst_86 {dimension_numbers = #tpu.dot_dimension_numbers<[1], [1], [0], [0], [0, 0, 1, 0], [], []>} : vector<1x32xf32>, vector<8x32xf32>, vector<1x8xf32> -> vector<1x8xf32>
    %c0_87 = arith.constant 0 : index
    %c0_88 = arith.constant 0 : index
    %407 = vector.load %arg18[%c0_87, %c0_88] : memref<1x1xf32, #tpu.memory_space<vmem>>, vector<1x1xf32>
    %408 = vector.broadcast %407 : vector<1x1xf32> to vector<1x8xf32>
    %409 = arith.addf %406, %408 : vector<1x8xf32>
    %410 = arith.negf %409 : vector<1x8xf32>
    %411 = math.exp %410 : vector<1x8xf32>
    %cst_89 = arith.constant 1.000000e+00 : f32
    %412 = vector.broadcast %cst_89 : f32 to vector<1x8xf32>
    %413 = arith.addf %412, %411 : vector<1x8xf32>
    %414 = arith.divf %412, %413 : vector<1x8xf32>
    %c0_90 = arith.constant 0 : index
    %c0_91 = arith.constant 0 : index
    %c0_92 = arith.constant 0 : index
    %415 = vector.load %arg19[%c0_90, %c0_91, %c0_92] : memref<1x1x8xf32, #tpu.memory_space<vmem>>, vector<1x1x8xf32>
    %416 = vector.shape_cast %415 : vector<1x1x8xf32> to vector<1x8xf32>
    %417 = vector.shape_cast %414 : vector<1x8xf32> to vector<1x1x8xf32>
    tpu.vector_store %arg19[%c0_90, %c0_91, %c0_92], %417 {strides = array<i32>} : memref<1x1x8xf32, #tpu.memory_space<vmem>>, vector<1x1x8xf32>,
    return
  }
  func.func @transform_0(%arg0: i32) -> (i32, i32, i32) {
    %c0_i32 = arith.constant 0 : i32
    %c0_i32_0 = arith.constant 0 : i32
    %c0_i32_1 = arith.constant 0 : i32
    return %arg0, %c0_i32, %c0_i32_0 : i32, i32, i32
  }
  func.func @transform_1(%arg0: i32) -> (i32, i32, i32) {
    %c0_i32 = arith.constant 0 : i32
    %c0_i32_0 = arith.constant 0 : i32
    %c0_i32_1 = arith.constant 0 : i32
    return %arg0, %c0_i32, %c0_i32_0 : i32, i32, i32
  }
  func.func @transform_2(%arg0: i32) -> (i32, i32) {
    %c0_i32 = arith.constant 0 : i32
    %c0_i32_0 = arith.constant 0 : i32
    return %arg0, %c0_i32 : i32, i32
  }
  func.func @transform_3(%arg0: i32) -> (i32, i32) {
    %c0_i32 = arith.constant 0 : i32
    %c0_i32_0 = arith.constant 0 : i32
    return %arg0, %c0_i32 : i32, i32
  }
  func.func @transform_4(%arg0: i32) -> (i32, i32) {
    %c0_i32 = arith.constant 0 : i32
    %c0_i32_0 = arith.constant 0 : i32
    %c0_i32_1 = arith.constant 0 : i32
    return %c0_i32, %c0_i32_0 : i32, i32
  }
  func.func @transform_5(%arg0: i32) -> (i32, i32) {
    %c0_i32 = arith.constant 0 : i32
    %c0_i32_0 = arith.constant 0 : i32
    %c0_i32_1 = arith.constant 0 : i32
    return %c0_i32, %c0_i32_0 : i32, i32
  }
  func.func @transform_6(%arg0: i32) -> (i32, i32) {
    %c0_i32 = arith.constant 0 : i32
    %c0_i32_0 = arith.constant 0 : i32
    %c0_i32_1 = arith.constant 0 : i32
    return %c0_i32, %c0_i32_0 : i32, i32
  }
  func.func @transform_7(%arg0: i32) -> (i32, i32) {
    %c0_i32 = arith.constant 0 : i32
    %c0_i32_0 = arith.constant 0 : i32
    %c0_i32_1 = arith.constant 0 : i32
    return %c0_i32, %c0_i32_0 : i32, i32
  }
  func.func @transform_8(%arg0: i32) -> (i32, i32) {
    %c0_i32 = arith.constant 0 : i32
    %c0_i32_0 = arith.constant 0 : i32
    %c0_i32_1 = arith.constant 0 : i32
    return %c0_i32, %c0_i32_0 : i32, i32
  }
  func.func @transform_9(%arg0: i32) -> (i32, i32) {
    %c0_i32 = arith.constant 0 : i32
    %c0_i32_0 = arith.constant 0 : i32
    %c0_i32_1 = arith.constant 0 : i32
    return %c0_i32, %c0_i32_0 : i32, i32
  }
  func.func @transform_10(%arg0: i32) -> (i32, i32) {
    %c0_i32 = arith.constant 0 : i32
    %c0_i32_0 = arith.constant 0 : i32
    %c0_i32_1 = arith.constant 0 : i32
    return %c0_i32, %c0_i32_0 : i32, i32
  }
  func.func @transform_11(%arg0: i32) -> (i32, i32) {
    %c0_i32 = arith.constant 0 : i32
    %c0_i32_0 = arith.constant 0 : i32
    %c0_i32_1 = arith.constant 0 : i32
    return %c0_i32, %c0_i32_0 : i32, i32
  }
  func.func @transform_12(%arg0: i32) -> (i32, i32) {
    %c0_i32 = arith.constant 0 : i32
    %c0_i32_0 = arith.constant 0 : i32
    %c0_i32_1 = arith.constant 0 : i32
    return %c0_i32, %c0_i32_0 : i32, i32
  }
  func.func @transform_13(%arg0: i32) -> (i32, i32) {
    %c0_i32 = arith.constant 0 : i32
    %c0_i32_0 = arith.constant 0 : i32
    %c0_i32_1 = arith.constant 0 : i32
    return %c0_i32, %c0_i32_0 : i32, i32
  }
  func.func @transform_14(%arg0: i32) -> (i32, i32) {
    %c0_i32 = arith.constant 0 : i32
    %c0_i32_0 = arith.constant 0 : i32
    %c0_i32_1 = arith.constant 0 : i32
    return %c0_i32, %c0_i32_0 : i32, i32
  }
  func.func @transform_15(%arg0: i32) -> (i32, i32) {
    %c0_i32 = arith.constant 0 : i32
    %c0_i32_0 = arith.constant 0 : i32
    %c0_i32_1 = arith.constant 0 : i32
    return %c0_i32, %c0_i32_0 : i32, i32
  }
  func.func @transform_16(%arg0: i32) -> (i32, i32) {
    %c0_i32 = arith.constant 0 : i32
    %c0_i32_0 = arith.constant 0 : i32
    %c0_i32_1 = arith.constant 0 : i32
    return %c0_i32, %c0_i32_0 : i32, i32
  }
  func.func @transform_17(%arg0: i32) -> (i32, i32) {
    %c0_i32 = arith.constant 0 : i32
    %c0_i32_0 = arith.constant 0 : i32
    %c0_i32_1 = arith.constant 0 : i32
    return %c0_i32, %c0_i32_0 : i32, i32
  }
  func.func @transform_18(%arg0: i32) -> (i32, i32, i32) {
    %c0_i32 = arith.constant 0 : i32
    %c0_i32_0 = arith.constant 0 : i32
    %c0_i32_1 = arith.constant 0 : i32
    return %arg0, %c0_i32, %c0_i32_0 : i32, i32, i32
  }
}

</mosaic_0001>

<bundles_post_ra>
// kernel: tpu_custom_call.1
= control target key start
LH: loop header
LB: loop body
LE: loop exit
PB: predicated region body
PF: predicated region fallthrough
CT: control target
= control target key end

     0   :  { %s8892_s0 = inlined_call_operand.hbm [shape: f32[8,8,16], index: 0, kind: input, shape index: {}]   ;;  %s8893_s1 = inlined_call_operand.hbm [shape: f32[8,8,16], index: 1, kind: input, shape index: {}]   ;;  %s8894_s2 = inlined_call_operand.vmem [shape: s32[8,1], index: 2, kind: input, shape index: {}]   ;;  %s8895_s3 = inlined_call_operand.vmem [shape: s32[8,1], index: 3, kind: input, shape index: {}]   ;;  %s8896_s4 = inlined_call_operand.vmem [shape: f32[16,64], index: 4, kind: input, shape index: {}]   ;;  %s8897_s5 = inlined_call_operand.hbm [shape: f32[16,64], index: 5, kind: input, shape index: {}]   ;;  %s8898_s6 = inlined_call_operand.vmem [shape: f32[1,64], index: 6, kind: input, shape index: {}]   ;;  %s8899_s7 = inlined_call_operand.hbm [shape: f32[16,96], index: 7, kind: input, shape index: {}]   ;;  %s8900_s8 = inlined_call_operand.vmem [shape: f32[1,96], index: 8, kind: input, shape index: {}]   ;;  %s8901_s9 = inlined_call_operand.hbm [shape: f32[96,96], index: 9, kind: input, shape index: {}]   ;;  %s8902_s10 = inlined_call_operand.vmem [shape: f32[1,96], index: 10, kind: input, shape index: {}]   ;;  %s8903_s11 = inlined_call_operand.hbm [shape: f32[32,32], index: 11, kind: input, shape index: {}]   ;;  %s8904_s12 = inlined_call_operand.vmem [shape: f32[1,32], index: 12, kind: input, shape index: {}]   ;;  %s8905_s13 = inlined_call_operand.hbm [shape: f32[16,32], index: 13, kind: input, shape index: {}]   ;;  %s8906_s14 = inlined_call_operand.hbm [shape: f32[32,32], index: 14, kind: input, shape index: {}]   ;;  %s8907_s15 = inlined_call_operand.vmem [shape: f32[1,32], index: 15, kind: input, shape index: {}]   ;;  %s8908_s16 = inlined_call_operand.vmem [shape: f32[1,32], index: 16, kind: input, shape index: {}]   ;;  %s8909_s17 = inlined_call_operand.<no memory space> [shape: f32[1,1], index: 17, kind: input, shape index: {}]   ;;  %s8910_s18 = inlined_call_operand.hbm [shape: f32[1,1,8], index: 18, kind: output, shape index: {}]  }
   0x1   :  { %8913 = sst [smem:[#allocation24_spill]] %s8892_s0  ;;  %v23_v0 = vstv %s8909_s17 }
   0x2   :  { %8914 = sst [smem:[#allocation25_spill]] %s8893_s1  ;;  %24 = vst [vmem:[#allocation2] sm:$0x1] %v23_v0 }
   0x3   :  { %8915 = sst [smem:[#allocation26_spill]] %s8894_s2 }
   0x4   :  { %25 = vsyncpa [#allocation4], 0 }
   0x5   :  { %26 = vsyncpa [#allocation7], 0 }
   0x6   :  { %27 = vsyncpa [#allocation10], 0 }
   0x7   :  { %28 = vsyncpa [#allocation13], 0 }
   0x8   :  { %29 = vsyncpa [#allocation16], 0 }
   0x9   :  { %30 = vsyncpa [#allocation5], 0  ;;  %s8916_s0 = sld [smem:[#allocation25_spill]]  ;;  %s6219_s1 = smov [#allocation6]  }
   0xa   :  { %s50_s20 = sshll.u32 %s6219_s1, 4  ;;  %s82_s2 = sshll.u32 %s8899_s7, 4  ;;  %s51_s20 = int_to_ptr.vmem [resolvable:$true] %s50_s20  ;;  %s83_s2 = int_to_ptr.hbm [resolvable:$true] %s82_s2 }
   0xb   :  { %s6220_s17 = smov 128   ;;  %s6221_s23 = smov 8  }
   0xc   :  { %s6222_s24 = smov [#allocation9]   ;;  %s112_s28 = sshll.u32 %s8903_s11, 4  ;;  %s113_s28 = int_to_ptr.hbm [resolvable:$true] %s112_s28 }
   0xd   :  { %s84_s25 = sshll.u32 %s6222_s24, 4  ;;  %s8917_s30 = sld [smem:[#allocation24_spill]]  ;;  %s85_s25 = int_to_ptr.vmem [resolvable:$true] %s84_s25 }
   0xe   :  { %90 = dma.hbm_to_vmem [thread:$0]  %s83_s2, 256, %s85_s25, [#allocation10], %s6220_s17, %s6220_s17, %s6221_s23  }
   0xf   :  { %s48_s19 = sshll.u32 %s8916_s0, 4  ;;  %s6223_s1 = smov [#allocation12]   ;;  %s49_s19 = int_to_ptr.hbm [resolvable:$true] %s48_s19 }
  0x10   :  { %56 = dma.hbm_to_vmem [thread:$0]  %s49_s19, 1024, %s51_s20, [#allocation7], %s6220_s17, %s6220_s17, %s6221_s23  }
  0x11   :  { %s114_s21 = sshll.u32 %s6223_s1, 4  ;;  %s6224_s19 = smov [#allocation3]   ;;  %s115_s21 = int_to_ptr.vmem [resolvable:$true] %s114_s21 }
  0x12   :  { %120 = dma.hbm_to_vmem [thread:$0]  %s113_s28, 512, %s115_s21, [#allocation13], %s6220_s17, %s6220_s17, %s6221_s23  }
  0x13   :  { %s35_s0 = sshll.u32 %s8917_s30, 4  ;;  %s37_s11 = sshll.u32 %s6224_s19, 4  ;;  %s36_s0 = int_to_ptr.hbm [resolvable:$true] %s35_s0  ;;  %s38_s11 = int_to_ptr.vmem [resolvable:$true] %s37_s11 }
  0x14   :  { %s67_s24 = sshll.u32 %s8897_s5, 4  ;;  %s97_s26 = sshll.u32 %s8901_s9, 4  ;;  %s68_s24 = int_to_ptr.hbm [resolvable:$true] %s67_s24  ;;  %s98_s26 = int_to_ptr.hbm [resolvable:$true] %s97_s26 }
  0x15   :  { %43 = dma.hbm_to_vmem [thread:$0]  %s36_s0, 1024, %s38_s11, [#allocation4], %s6220_s17, %s6220_s17, %s6221_s23  }
  0x16   :  { %s6225_s27 = smov [#allocation8]   ;;  %s6226_s28 = smov [#allocation11]  }
  0x17   :  { %s69_s7 = sshll.u32 %s6225_s27, 4  ;;  %s99_s5 = sshll.u32 %s6226_s28, 4  ;;  %s70_s7 = int_to_ptr.vmem [resolvable:$true] %s69_s7  ;;  %s100_s5 = int_to_ptr.vmem [resolvable:$true] %s99_s5 }
  0x18   :  { %75 = dma.hbm_to_vmem [thread:$0]  %s68_s24, 256, %s70_s7, [#allocation7], %s6220_s17, %s6220_s17, %s6221_s23  }
  0x19   :  { %s127_s1 = sshll.u32 %s8905_s13, 4  ;;  %s140_s21 = sshll.u32 %s8906_s14, 4  ;;  %s128_s1 = int_to_ptr.hbm [resolvable:$true] %s127_s1  ;;  %s141_s21 = int_to_ptr.hbm [resolvable:$true] %s140_s21 }
  0x1a   :  { %105 = dma.hbm_to_vmem [thread:$0]  %s98_s26, 1536, %s100_s5, [#allocation10], %s6220_s17, %s6220_s17, %s6221_s23  }
  0x1b   :  { %s6227_s19 = smov [#allocation14]   ;;  %s6228_s20 = smov [#allocation15]  }
  0x1c   :  { %s129_s11 = sshll.u32 %s6227_s19, 4  ;;  %s142_s13 = sshll.u32 %s6228_s20, 4  ;;  %s130_s11 = int_to_ptr.vmem [resolvable:$true] %s129_s11  ;;  %s143_s13 = int_to_ptr.vmem [resolvable:$true] %s142_s13 }
  0x1d   :  { %135 = dma.hbm_to_vmem [thread:$0]  %s128_s1, 256, %s130_s11, [#allocation13], %s6220_s17, %s6220_s17, %s6221_s23  }
  0x1e   :  { %148 = dma.hbm_to_vmem [thread:$0]  %s141_s21, 512, %s143_s13, [#allocation16], %s6220_s17, %s6220_s17, %s6221_s23  }
  0x1f   :  { %6207 = dma.done.wait [#allocation4], 1024  }
  0x20   :  { %6208 = vsyncadd [#allocation4], 4294966272 }
  0x21   :  { %6209 = dma.done.wait [#allocation7], 1280  }
  0x22   :  { %6210 = vsyncadd [#allocation7], 4294966016 }
  0x23   :  { %6211 = dma.done.wait [#allocation10], 1792  }
  0x24   :  { %6212 = vsyncadd [#allocation10], 4294965504 }
  0x25   :  { %6213 = dma.done.wait [#allocation13], 768  }
  0x26   :  { %6214 = vsyncadd [#allocation13], 4294966528 }
  0x27   :  { %6215 = dma.done.wait [#allocation16], 512  }
  0x28   :  { %6216 = vsyncadd [#allocation16], 4294966784  ;;  %v208_v1 = vld [vmem:[%s8896_s4 + $0x8] sm:$0xff]  ;;  %v207_v2 = vld [vmem:[%s8896_s4] sm:$0xff]  ;;  %vm8912_vm0 = vcmask 130048   ;;  %v6229_v10 = vmov 0.0  }
  0x29   :  { %252 = vmatpush.msra.mxu0 %v208_v1  ;;  %5325 = vmatpush.msra.mxu1 %v208_v1  ;;  %v187_v3 = vld [vmem:[#allocation3] sm:$0xff]  ;;  %v193_v4 = vld [vmem:[#allocation3 + $0x30] sm:$0xff]  ;;  %v6390_v5 = vld [vmem:[#allocation8 + $0x8] sm:$0xff]  ;;  %s6231_s23 = smov 16   ;;  %s6232_s25 = smov 32  }
  0x2a   :  { %v6394_v6 = vld [vmem:[#allocation8] sm:$0xff]  ;;  %704 = vmatpush.msra.mxu2 %v6390_v5  ;;  %1137 = vmatpush.msra.mxu3 %v6390_v5  ;;  %v188_v7 = vld [vmem:[#allocation3 + $0x8] sm:$0xff]  ;;  %v194_v8 = vld [vmem:[#allocation3 + $0x38] sm:$0xff]  ;;  %s8924_s7 = sld [smem:[#allocation26_spill]]  ;;  %s6234_s28 = smov 112  }
  0x2b   :  { %253 = vmatpush.msra.mxu0 %v207_v2  ;;  %5326 = vmatpush.msra.mxu1 %v207_v2  ;;  %v189_v9 = vld [vmem:[#allocation3 + $0x10] sm:$0xff]  ;;  %v190_v11 = vld [vmem:[#allocation3 + $0x18] sm:$0xff]  ;;  %v191_v12 = vld [vmem:[#allocation3 + $0x20] sm:$0xff]  ;;  %s6235_s5 = smov 80   ;;  %s5170_s26 = sshll.u32 %s8910_s18, 4  ;;  %s5171_s26 = int_to_ptr.hbm [resolvable:$true] %s5170_s26 }
  0x2c   :  { %5184 = vmatmul.msk.f32.vlgmr.msra.gmra.mxu0 %vm8912_vm0, %v187_v3  ;;  %5190 = vmatmul.msk.f32.vlgmr.msra.gmra.mxu1 %vm8912_vm0, %v193_v4  ;;  %v192_v13 = vld [vmem:[#allocation3 + $0x28] sm:$0xff]  ;;  %v5368_v18 = vld [vmem:[%s8898_s6] ss:$0 sm:$0xff]  ;;  %s6230_s6 = smov 96  }
  0x2d   :  { %296 = vmatpush.msrb.mxu1 %v6390_v5  ;;  %705 = vmatpush.msra.mxu2 %v6394_v6 }
  0x2e   :  { %1138 = vmatpush.msra.mxu3 %v6394_v6 }
  0x2f   :  { %297 = vmatpush.msrb.mxu1 %v6394_v6  ;;  %2003 = vmatpush.msrb.mxu2 %v6390_v5 }
  0x30   :  { %2436 = vmatpush.msrb.mxu3 %v6390_v5 }
  0x31   :  { %1570 = vmatpush.msra.mxu1 %v6390_v5  ;;  %2004 = vmatpush.msrb.mxu2 %v6394_v6 }
  0x32   :  { %2437 = vmatpush.msrb.mxu3 %v6394_v6 }
  0x33   :  { %1571 = vmatpush.msra.mxu1 %v6394_v6 }
  0x34   :  { %5185 = vmatmul.msk.f32.gmra.mxu0 %vm8912_vm0, %v188_v7  ;;  %5191 = vmatmul.msk.f32.gmra.mxu1 %vm8912_vm0, %v194_v8 }
  0x3c   :  { %5186 = vmatmul.msk.f32.gmra.mxu0 %vm8912_vm0, %v189_v9  ;;  %298 = vmatmul.f32.vlgmr.msrb.gmra.mxu1 %v6229_v10 }
  0x3d   :  { %2869 = vmatpush.msrb.mxu1 %v6390_v5 }
  0x3f   :  { %2870 = vmatpush.msrb.mxu1 %v6394_v6 }
  0x44   :  { %5187 = vmatmul.msk.f32.gmra.mxu0 %vm8912_vm0, %v190_v11 }
  0x4c   :  { %5188 = vmatmul.msk.f32.gmra.mxu0 %vm8912_vm0, %v191_v12 }
  0x54   :  { %5189 = vmatmul.msk.f32.gmra.mxu0 %vm8912_vm0, %v192_v13 }
  0xa9   :  { %v255_v14 = vpop.f32.mrf.mxu0  ;;  %v273_v15 = vpop.f32.mrf.mxu1 }
  0xaa   :  { %v6419_v19 = vadd.f32 %v5368_v18, %v255_v14  ;;  %v6435_v38 = vadd.f32 %v5368_v18, %v273_v15 }
  0xb1   :  { %v258_v16 = vpop.f32.mrf.mxu0  ;;  %v276_v17 = vpop.f32.mrf.mxu1 }
  0xb2   :  { %v6421_v22 = vadd.f32 %v5368_v18, %v258_v16  ;;  %v6433_v36 = vadd.f32 %v5368_v18, %v276_v17 }
  0xb9   :  { %v261_v20 = vpop.f32.mrf.mxu0  ;;  %v299_v21 = vpop.f32.mrf.mxu1 }
  0xba   :  { %v318_v23 = vadd.f32 %v299_v21, %v6419_v19  ;;  %v303_v24 = vrot.slane %v299_v21, 1  ;;  %v6425_v26 = vadd.f32 %v5368_v18, %v261_v20  ;;  %v304_v27 = vrot.slane %v299_v21, 2 }
  0xbb   :  { %v305_v31 = vrot.slane %v299_v21, 3  ;;  %v309_v35 = vrot.slane %v299_v21, 7  ;;  %v308_v37 = vrot.slane %v299_v21, 6  ;;  %v306_v42 = vrot.slane %v299_v21, 4 }
  0xbc   :  { %5373 = vtanh.f32 %v318_v23  ;;  %v319_v25 = vadd.f32 %v303_v24, %v6421_v22  ;;  %v320_v32 = vadd.f32 %v304_v27, %v6425_v26  ;;  %v307_v49 = vrot.slane %v299_v21, 5 }
  0xbd   :  { %v325_v40 = vadd.f32 %v309_v35, %v6433_v36  ;;  %v324_v43 = vadd.f32 %v308_v37, %v6435_v38  ;;  %v5192_v55 = vmul.f32 -1.442695, %v318_v23 }
  0xbe   :  { %5375 = vtanh.f32 %v319_v25  ;;  %v5193_v56 = vmul.f32 -1.442695, %v319_v25  ;;  %v5194_v60 = vmul.f32 -1.442695, %v320_v32 }
  0xbf   :  { %v5198_v1 = vmul.f32 -1.442695, %v324_v43  ;;  %v5199_v13 = vmul.f32 -1.442695, %v325_v40 }
  0xc1   :  { %v264_v28 = vpop.f32.mrf.mxu0 }
  0xc2   :  { %v5374_v29 = vpop.eup %5373  ;;  %v6427_v30 = vadd.f32 %v5368_v18, %v264_v28 }
  0xc3   :  { %502 = vrot.lane.b32.xlu1 %v5374_v29, %s6230_s6 }
  0xc4   :  { %v321_v33 = vadd.f32 %v305_v31, %v6427_v30  ;;  %v5376_v34 = vpop.eup %5375 }
  0xc5   :  { %504 = vrot.lane.b32.xlu0 %v5376_v34, %s6230_s6 }
  0xc6   :  { %5377 = vtanh.f32 %v321_v33  ;;  %v5195_v59 = vmul.f32 -1.442695, %v321_v33 }
  0xc7   :  { %5379 = vtanh.f32 %v320_v32 }
  0xc8   :  { %5381 = vtanh.f32 %v325_v40 }
  0xc9   :  { %v267_v39 = vpop.f32.mrf.mxu0 }
  0xca   :  { %v6438_v41 = vadd.f32 %v5368_v18, %v267_v39 }
  0xcc   :  { %v5378_v44 = vpop.eup %5377  ;;  %v322_v45 = vadd.f32 %v306_v42, %v6438_v41 }
  0xcd   :  { %v5380_v46 = vpop.eup %5379  ;;  %508 = vrot.lane.b32.xlu1 %v5378_v44, %s6230_s6 }
  0xce   :  { %506 = vrot.lane.b32.xlu0 %v5380_v46, %s6230_s6  ;;  %5383 = vtanh.f32 %v322_v45  ;;  %v5382_v50 = vpop.eup %5381  ;;  %v5196_v2 = vmul.f32 -1.442695, %v322_v45 }
  0xcf   :  { %5385 = vtanh.f32 %v324_v43 }
  0xd1   :  { %v270_v47 = vpop.f32.mrf.mxu0 }
  0xd2   :  { %v6444_v48 = vadd.f32 %v5368_v18, %v270_v47 }
  0xd4   :  { %v5384_v51 = vpop.eup %5383  ;;  %v323_v52 = vadd.f32 %v307_v49, %v6444_v48 }
  0xd5   :  { %v5386_v53 = vpop.eup %5385  ;;  %510 = vrot.lane.b32.xlu2 %v5384_v51, %s6230_s6  ;;  %516 = vrot.lane.b32.xlu1 %v5382_v50, %s6230_s6 }
  0xd6   :  { %514 = vrot.lane.b32.xlu0 %v5386_v53, %s6230_s6  ;;  %5387 = vtanh.f32 %v323_v52  ;;  %v5197_v57 = vmul.f32 -1.442695, %v323_v52 }
  0xd7   :  { %5389 = vpow2.f32 %v5192_v55 }
  0xd8   :  { %5391 = vpow2.f32 %v5193_v56 }
  0xd9   :  { %5393 = vpow2.f32 %v5197_v57 }
  0xda   :  { %5395 = vpow2.f32 %v5195_v59 }
  0xdb   :  { %5397 = vpow2.f32 %v5194_v60 }
  0xdc   :  { %v5388_v54 = vpop.eup %5387 }
  0xdd   :  { %512 = vrot.lane.b32.xlu2 %v5388_v54, %s6230_s6  ;;  %v5390_v58 = vpop.eup %5389 }
  0xde   :  { %v5392_v61 = vpop.eup %5391  ;;  %v6451_v62 = vadd.f32 1.0, %v5390_v58 }
  0xdf   :  { %v6453_v63 = vadd.f32 1.0, %v5392_v61  ;;  %v5394_v0 = vpop.eup %5393 }
  0xe0   :  { %5399 = vrcp.f32 %v6451_v62  ;;  %v5396_v3 = vpop.eup %5395  ;;  %v6457_v7 = vadd.f32 1.0, %v5394_v0  ;;  %vm363_vm2 = vweird.f32 %v6451_v62  ;;  %v367_v37 = vand.u32 2147483647, %v6451_v62 }
  0xe1   :  { %5401 = vrcp.f32 %v6453_v63  ;;  %v5398_v4 = vpop.eup %5397  ;;  %v6459_v9 = vadd.f32 1.0, %v5396_v3  ;;  %v369_v39 = vand.u32 2147483648, %v6451_v62  ;;  %v384_v47 = vand.u32 2147483648, %v6453_v63 }
  0xe2   :  { %5403 = vpow2.f32 %v5198_v1  ;;  %v6461_v10 = vadd.f32 1.0, %v5398_v4  ;;  %vm378_vm5 = vweird.f32 %v6453_v63  ;;  %v382_v53 = vand.u32 2147483647, %v6453_v63 }
  0xe3   :  { %5405 = vpow2.f32 %v5196_v2  ;;  %vm368_vm6 = vcmp.eq.f32.partialorder %v367_v37, 8.507059e+37  ;;  %v370_v54 = vor.u32 1.1754944e-38, %v369_v39  ;;  %v444_v2 = vand.u32 2147483648, %v6457_v7 }
  0xe4   :  { %5407 = vrcp.f32 %v6457_v7  ;;  %vm383_vm9 = vcmp.eq.f32.partialorder %v382_v53, 8.507059e+37  ;;  %v414_v4 = vand.u32 2147483648, %v6459_v9  ;;  %vm438_vm11 = vweird.f32 %v6457_v7 }
  0xe5   :  { %5409 = vrcp.f32 %v6459_v9  ;;  %vm408_vm14 = vweird.f32 %v6459_v9  ;;  %vm393_vm15 = vweird.f32 %v6461_v10 }
  0xe6   :  { %v5400_v8 = vpop.eup %5399  ;;  %5411 = vrcp.f32 %v6461_v10 }
  0xe7   :  { %v6463_v11 = vpop.eup %5401  ;;  %v359_v12 = vmul.f32 %v5400_v8, %v6451_v62  ;;  %5413 = vpow2.f32 %v5199_v13  ;;  %vm364_vm1 = vweird.f32 %v5400_v8  ;;  %v385_v62 = vor.u32 1.1754944e-38, %v384_v47 }
  0xe8   :  { %v5404_v14 = vpop.eup %5403  ;;  %v374_v15 = vmul.f32 %v6463_v11, %v6453_v63  ;;  %vm379_vm3 = vweird.f32 %v6463_v11  ;;  %vm6501_vm4 = vmor %vm363_vm2, %vm364_vm1 }
  0xe9   :  { %v5406_v16 = vpop.eup %5405  ;;  %v360_v17 = vsub.f32 1.0, %v359_v12  ;;  %v6473_v20 = vadd.f32 1.0, %v5404_v14  ;;  %vm6515_vm7 = vmor %vm378_vm5, %vm379_vm3 }
  0xea   :  { %v6471_v18 = vpop.eup %5407  ;;  %v6475_v21 = vadd.f32 1.0, %v5406_v16  ;;  %v375_v23 = vsub.f32 1.0, %v374_v15 }
  0xeb   :  { %v6477_v24 = vpop.eup %5409  ;;  %v361_v27 = vmul.f32 %v5400_v8, %v360_v17  ;;  %v434_v28 = vmul.f32 %v6471_v18, %v6457_v7  ;;  %5415 = vrcp.f32 %v6473_v20  ;;  %vm439_vm8 = vweird.f32 %v6471_v18 }
  0xec   :  { %v6479_v25 = vpop.eup %5411  ;;  %5417 = vrcp.f32 %v6475_v21  ;;  %v376_v29 = vmul.f32 %v6463_v11, %v375_v23  ;;  %v404_v31 = vmul.f32 %v6477_v24, %v6459_v9  ;;  %vm409_vm10 = vweird.f32 %v6477_v24  ;;  %vm6543_vm12 = vmor %vm438_vm11, %vm439_vm8 }
  0xed   :  { %v5414_v32 = vpop.eup %5413  ;;  %v389_v33 = vmul.f32 %v6479_v25, %v6461_v10  ;;  %v362_v34 = vadd.f32 %v5400_v8, %v361_v27  ;;  %v435_v35 = vsub.f32 1.0, %v434_v28  ;;  %vm394_vm13 = vweird.f32 %v6479_v25  ;;  %vm410_vm1 = vmor %vm408_vm14, %vm409_vm10 }
  0xee   :  { %v377_v40 = vadd.f32 %v6463_v11, %v376_v29  ;;  %v405_v42 = vsub.f32 1.0, %v404_v31  ;;  %v6495_v43 = vadd.f32 1.0, %v5414_v32  ;;  %v399_v27 = vand.u32 2147483648, %v6461_v10  ;;  %vm395_vm3 = vmor %vm393_vm15, %vm394_vm13 }
  0xef   :  { %v390_v49 = vsub.f32 1.0, %v389_v33  ;;  %v366_v51 = vsel %vm6501_vm4, %v5400_v8, %v362_v34  ;;  %v436_v52 = vmul.f32 %v6471_v18, %v435_v35  ;;  %v442_v8 = vand.u32 2147483647, %v6457_v7 }
  0xf0   :  { %v381_v56 = vsel %vm6515_vm7, %v6463_v11, %v377_v40  ;;  %v406_v57 = vmul.f32 %v6477_v24, %v405_v42  ;;  %5419 = vrcp.f32 %v6495_v43  ;;  %v6528_v61 = vsel %vm368_vm6, %v370_v54, %v366_v51 }
  0xf1   :  { %v6497_v44 = vpop.eup %5415  ;;  %v391_v63 = vmul.f32 %v6479_v25, %v390_v49  ;;  %v437_v1 = vadd.f32 %v6471_v18, %v436_v52  ;;  %v6535_v3 = vsel %vm383_vm9, %v385_v62, %v381_v56  ;;  %v412_v28 = vand.u32 2147483647, %v6459_v9 }
  0xf2   :  { %v6506_v50 = vpop.eup %5417  ;;  %v449_v58 = vmul.f32 %v6497_v44, %v6473_v20  ;;  %v407_v12 = vadd.f32 %v6477_v24, %v406_v57  ;;  %v445_v29 = vor.u32 1.1754944e-38, %v444_v2  ;;  %v397_v32 = vand.u32 2147483647, %v6461_v10 }
  0xf3   :  { %v419_v59 = vmul.f32 %v6506_v50, %v6475_v21  ;;  %v392_v17 = vadd.f32 %v6479_v25, %v391_v63  ;;  %v441_v7 = vsel %vm6543_vm12, %v6471_v18, %v437_v1  ;;  %vm443_vm2 = vcmp.eq.f32.partialorder %v442_v8, 8.507059e+37 }
  0xf4   :  { %v450_v13 = vsub.f32 1.0, %v449_v58  ;;  %v411_v18 = vsel %vm410_vm1, %v6477_v24, %v407_v12  ;;  %v415_v33 = vor.u32 1.1754944e-38, %v414_v4  ;;  %v6566_v35 = vsel %vm443_vm2, %v445_v29, %v441_v7 }
  0xf5   :  { %v420_v14 = vsub.f32 1.0, %v419_v59  ;;  %v396_v37 = vsel %vm395_vm3, %v6479_v25, %v392_v17  ;;  %v400_v40 = vor.u32 1.1754944e-38, %v399_v27  ;;  %vm413_vm4 = vcmp.eq.f32.partialorder %v412_v28, 8.507059e+37 }
  0xf6   :  { %v6550_v23 = vpop.eup %5419  ;;  %v451_v34 = vmul.f32 %v6497_v44, %v450_v13  ;;  %vm398_vm5 = vcmp.eq.f32.partialorder %v397_v32, 8.507059e+37  ;;  %v6572_v42 = vsel %vm413_vm4, %v415_v33, %v411_v18  ;;  %vm454_vm6 = vweird.f32 %v6497_v44 }
  0xf7   :  { %v421_v9 = vmul.f32 %v6506_v50, %v420_v14  ;;  %v464_v39 = vmul.f32 %v6550_v23, %v6495_v43  ;;  %v6574_v46 = vsel %vm398_vm5, %v400_v40, %v396_v37  ;;  %vm424_vm7 = vweird.f32 %v6506_v50 }
  0xf8   :  { %v452_v25 = vadd.f32 %v6497_v44, %v451_v34  ;;  %v429_v54 = vand.u32 2147483648, %v6475_v21  ;;  %vm453_vm8 = vweird.f32 %v6473_v20  ;;  %v459_v55 = vand.u32 2147483648, %v6473_v20 }
  0xf9   :  { %v422_v51 = vadd.f32 %v6506_v50, %v421_v9  ;;  %v465_v53 = vsub.f32 1.0, %v464_v39  ;;  %vm423_vm9 = vweird.f32 %v6475_v21  ;;  %v427_v56 = vand.u32 2147483647, %v6475_v21  ;;  %vm455_vm10 = vmor %vm453_vm8, %vm454_vm6 }
  0xfa   :  { %v457_v57 = vand.u32 2147483647, %v6473_v20  ;;  %vm425_vm11 = vmor %vm423_vm9, %vm424_vm7  ;;  %v456_v59 = vsel %vm455_vm10, %v6497_v44, %v452_v25  ;;  %v430_v62 = vor.u32 1.1754944e-38, %v429_v54  ;;  %v460_v63 = vor.u32 1.1754944e-38, %v459_v55 }
  0xfb   :  { %v426_v58 = vsel %vm425_vm11, %v6506_v50, %v422_v51  ;;  %vm428_vm12 = vcmp.eq.f32.partialorder %v427_v56, 8.507059e+37  ;;  %vm469_vm14 = vweird.f32 %v6550_v23  ;;  %v474_v44 = vand.u32 2147483648, %v6495_v43  ;;  %v6629_v51 = vld [vmem:[%s8924_s7] sm:$0xff] }
  0xfc   :  { %vm458_vm13 = vcmp.eq.f32.partialorder %v457_v57, 8.507059e+37  ;;  %vm468_vm15 = vweird.f32 %v6495_v43  ;;  %v472_v4 = vand.u32 2147483647, %v6495_v43  ;;  %v487_v14 = vmul.f32 0.0, %v6535_v3 }
  0xfd   :  { %v6596_v21 = vsel %vm458_vm13, %v460_v63, %v456_v59  ;;  %vm470_vm1 = vmor %vm468_vm15, %vm469_vm14  ;;  %v486_v18 = vmul.f32 0.0, %v6528_v61  ;;  %v491_v37 = vmul.f32 0.0, %v6566_v35  ;;  %vm622_vm3 = vcmp.ge.s32.totalorder %v6629_v51, 0 }
  0xfe   :  { %vm473_vm2 = vcmp.eq.f32.partialorder %v472_v4, 8.507059e+37  ;;  %v492_v28 = vmul.f32 0.0, %v6596_v21  ;;  %vm637_vm4 = vcmask 1041409   ;;  %vm640_vm5 = vcmask 1042434  }
  0xff   :  { %vm643_vm6 = vcmask 1043459   ;;  %vm646_vm7 = vcmask 1044484   ;;  %vm649_vm8 = vcmask 1045509   ;;  %vm652_vm9 = vcmask 1046534  }
 0x100   :  { %vm655_vm10 = vcmask 1047559  }
 0x12f   :  { %v6499_v45 = vpop.permute.xlu2 %510 }
 0x135   :  { %v503_v60 = vpop.permute.xlu1 %502 }
 0x136   :  { %v526_v0 = vmul.f32 %v503_v60, %v6528_v61  ;;  %v466_v60 = vmul.f32 %v6550_v23, %v465_v53 }
 0x137   :  { %v505_v11 = vpop.permute.xlu0 %504  ;;  %v513_v31 = vpop.permute.xlu2 %512 }
 0x138   :  { %542 = vrot.lane.b32.xlu1 %v526_v0, %s6231_s23  ;;  %v527_v16 = vmul.f32 %v505_v11, %v6535_v3  ;;  %v531_v10 = vmul.f32 %v513_v31, %v6566_v35  ;;  %v6594_v0 = vsel %vm428_vm12, %v430_v62, %v426_v58  ;;  %v467_v50 = vadd.f32 %v6550_v23, %v466_v60 }
 0x139   :  { %v530_v2 = vmul.f32 %v6499_v45, %v6594_v0  ;;  %v475_v45 = vor.u32 1.1754944e-38, %v474_v44 }
 0x13a   :  { %544 = vrot.lane.b32.xlu2 %v527_v16, %s6231_s23  ;;  %v471_v8 = vsel %vm470_vm1, %v6550_v23, %v467_v50  ;;  %v489_v16 = vmul.f32 0.0, %v6572_v42  ;;  %v6233_v23 = vmov 0  }
 0x13b   :  { %v6609_v12 = vsel %vm473_vm2, %v475_v45, %v471_v8  ;;  %5350 = vset.pattern.permute.xlu0 %v6233_v23  ;;  %5351 = vset.pattern.permute.xlu2 %v6233_v23  ;;  %v623_v56 = vsel %vm622_vm3, 1, %v6233_v23 }
 0x13c   :  { %5352 = vset.pattern.permute.xlu1 %v6233_v23  ;;  %v493_v57 = vmul.f32 0.0, %v6609_v12 }
 0x13f   :  { %v509_v24 = vpop.permute.xlu1 %508 }
 0x140   :  { %v507_v47 = vpop.permute.xlu0 %506  ;;  %v529_v49 = vmul.f32 %v509_v24, %v6572_v42  ;;  %552 = vrot.lane.b32.xlu1 %v531_v10, %s6231_s23  ;;  %v488_v24 = vmul.f32 0.0, %v6574_v46 }
 0x141   :  { %v528_v52 = vmul.f32 %v507_v47, %v6574_v46 }
 0x142   :  { %548 = vrot.lane.b32.xlu2 %v529_v49, %s6231_s23 }
 0x143   :  { %546 = vrot.lane.b32.xlu0 %v528_v52, %s6231_s23  ;;  %v490_v52 = vmul.f32 0.0, %v6594_v0 }
 0x147   :  { %v517_v11 = vpop.permute.xlu1 %516 }
 0x148   :  { %v515_v1 = vpop.permute.xlu0 %514  ;;  %v533_v13 = vmul.f32 %v517_v11, %v6609_v12 }
 0x149   :  { %v532_v20 = vmul.f32 %v515_v1, %v6596_v21 }
 0x14b   :  { %550 = vrot.lane.b32.xlu0 %v530_v2, %s6231_s23  ;;  %554 = vrot.lane.b32.xlu2 %v532_v20, %s6231_s23 }
 0x153   :  { %556 = vrot.lane.b32.xlu0 %v533_v13, %s6231_s23 }
 0x194   :  { %v545_v15 = vpop.permute.xlu2 %544 }
 0x195   :  { %v567_v43 = vadd.f32 %v545_v15, %v487_v14 }
 0x197   :  { %5421 = vtanh.f32 %v567_v43  ;;  %v669_v63 = vrot.slane %v567_v43, 7 }
 0x19c   :  { %v549_v17 = vpop.permute.xlu2 %548 }
 0x19d   :  { %v5422_v7 = vpop.eup %5421  ;;  %v569_v27 = vadd.f32 %v549_v17, %v489_v16 }
 0x19e   :  { %592 = vrot.lane.b32.xlu1 %v5422_v7, %s6232_s25 }
 0x19f   :  { %5423 = vtanh.f32 %v569_v27  ;;  %v673_v50 = vrot.slane %v569_v27, 5 }
 0x1a5   :  { %v555_v29 = vpop.permute.xlu2 %554  ;;  %v5424_v31 = vpop.eup %5423 }
 0x1a6   :  { %v572_v32 = vadd.f32 %v555_v29, %v492_v28  ;;  %596 = vrot.lane.b32.xlu1 %v5424_v31, %s6232_s25 }
 0x1a8   :  { %5425 = vtanh.f32 %v572_v32  ;;  %v679_v14 = vrot.slane %v572_v32, 2 }
 0x1aa   :  { %v543_v33 = vpop.permute.xlu1 %542 }
 0x1ab   :  { %v566_v34 = vadd.f32 %v543_v33, %v486_v18 }
 0x1ad   :  { %5427 = vtanh.f32 %v566_v34  ;;  %v670_v1 = vsel %vm637_vm4, %v669_v63, %v566_v34 }
 0x1ae   :  { %v5426_v9 = vpop.eup %5425 }
 0x1af   :  { %602 = vrot.lane.b32.xlu1 %v5426_v9, %s6232_s25 }
 0x1b2   :  { %v553_v39 = vpop.permute.xlu1 %552 }
 0x1b3   :  { %v5428_v10 = vpop.eup %5427  ;;  %v571_v40 = vadd.f32 %v553_v39, %v491_v37 }
 0x1b4   :  { %590 = vrot.lane.b32.xlu0 %v5428_v10, %s6232_s25 }
 0x1b5   :  { %5429 = vtanh.f32 %v571_v40  ;;  %v547_v47 = vpop.permute.xlu0 %546  ;;  %v677_v45 = vrot.slane %v571_v40, 3 }
 0x1b6   :  { %v568_v49 = vadd.f32 %v547_v47, %v488_v24 }
 0x1b8   :  { %5431 = vtanh.f32 %v568_v49  ;;  %v671_v62 = vrot.slane %v568_v49, 6 }
 0x1ba   :  { %v672_v2 = vsel %vm640_vm5, %v671_v62, %v670_v1 }
 0x1bb   :  { %v5430_v25 = vpop.eup %5429  ;;  %v674_v4 = vsel %vm643_vm6, %v673_v50, %v672_v2 }
 0x1bc   :  { %600 = vrot.lane.b32.xlu0 %v5430_v25, %s6232_s25 }
 0x1bd   :  { %v551_v53 = vpop.permute.xlu0 %550 }
 0x1be   :  { %v5432_v54 = vpop.eup %5431  ;;  %v570_v55 = vadd.f32 %v551_v53, %v490_v52 }
 0x1bf   :  { %594 = vrot.lane.b32.xlu2 %v5432_v54, %s6232_s25 }
 0x1c0   :  { %5433 = vtanh.f32 %v570_v55  ;;  %v675_v20 = vrot.slane %v570_v55, 4 }
 0x1c2   :  { %v676_v8 = vsel %vm646_vm7, %v675_v20, %v674_v4 }
 0x1c3   :  { %v678_v13 = vsel %vm649_vm8, %v677_v45, %v676_v8 }
 0x1c4   :  { %625 = vperm.xlu0 %5350, %v623_v56   ;;  %v680_v15 = vsel %vm652_vm9, %v679_v14, %v678_v13 }
 0x1c5   :  { %v557_v58 = vpop.permute.xlu0 %556 }
 0x1c6   :  { %v5434_v59 = vpop.eup %5433  ;;  %v573_v60 = vadd.f32 %v557_v58, %v493_v57 }
 0x1c7   :  { %598 = vrot.lane.b32.xlu2 %v5434_v59, %s6232_s25 }
 0x1c8   :  { %5435 = vtanh.f32 %v573_v60  ;;  %v681_v11 = vrot.slane %v573_v60, 1 }
 0x1ca   :  { %v682_v43 = vsel %vm655_vm10, %v681_v11, %v680_v15 }
 0x1ce   :  { %v5436_v44 = vpop.eup %5435 }
 0x1cf   :  { %604 = vrot.lane.b32.xlu2 %v5436_v44, %s6232_s25 }
 0x1d7   :  { %683 = vrot.lane.b32.xlu2 %v682_v43, %s6234_s28 }
 0x210   :  { %v593_v16 = vpop.permute.xlu1 %592 }
 0x211   :  { %v615_v28 = vmul.f32 %v593_v16, %v6535_v3 }
 0x213   :  { %v636_v18 = vrot.slane %v615_v28, 7 }
 0x218   :  { %v597_v7 = vpop.permute.xlu1 %596 }
 0x219   :  { %v595_v17 = vpop.permute.xlu2 %594  ;;  %v617_v33 = vmul.f32 %v597_v7, %v6572_v42 }
 0x21a   :  { %v616_v29 = vmul.f32 %v595_v17, %v6574_v46 }
 0x21b   :  { %v642_v24 = vrot.slane %v617_v33, 5 }
 0x21c   :  { %v639_v9 = vrot.slane %v616_v29, 6 }
 0x221   :  { %v599_v27 = vpop.permute.xlu2 %598  ;;  %v603_v37 = vpop.permute.xlu1 %602 }
 0x222   :  { %v618_v39 = vmul.f32 %v599_v27, %v6594_v0  ;;  %v620_v3 = vmul.f32 %v603_v37, %v6596_v21 }
 0x224   :  { %v645_v42 = vrot.slane %v618_v39, 4  ;;  %v651_v52 = vrot.slane %v620_v3, 2 }
 0x226   :  { %v591_v31 = vpop.permute.xlu0 %590 }
 0x227   :  { %v614_v32 = vmul.f32 %v591_v31, %v6528_v61 }
 0x229   :  { %v638_v34 = vsel %vm637_vm4, %v636_v18, %v614_v32  ;;  %v605_v40 = vpop.permute.xlu2 %604 }
 0x22a   :  { %v641_v10 = vsel %vm640_vm5, %v639_v9, %v638_v34  ;;  %v621_v46 = vmul.f32 %v605_v40, %v6609_v12 }
 0x22b   :  { %v644_v61 = vsel %vm643_vm6, %v642_v24, %v641_v10 }
 0x22c   :  { %v647_v53 = vsel %vm646_vm7, %v645_v42, %v644_v61  ;;  %v654_v54 = vrot.slane %v621_v46, 1 }
 0x22e   :  { %v601_v47 = vpop.permute.xlu0 %600 }
 0x22f   :  { %v619_v49 = vmul.f32 %v601_v47, %v6566_v35 }
 0x231   :  { %v648_v25 = vrot.slane %v619_v49, 3  ;;  %v684_v43 = vpop.permute.xlu2 %683 }
 0x233   :  { %v650_v0 = vsel %vm649_vm8, %v648_v25, %v647_v53 }
 0x234   :  { %v653_v55 = vsel %vm652_vm9, %v651_v52, %v650_v0 }
 0x235   :  { %v656_v56 = vsel %vm655_vm10, %v654_v54, %v653_v55 }
 0x236   :  { %657 = vrot.lane.b32.xlu1 %v656_v56, %s6235_s5  ;;  %v626_v21 = vpop.permute.xlu0 %625 }
 0x237   :  { %vm627_vm11 = vcmp.eq.s32.totalorder %v626_v21, 1 }
 0x238   :  { %v6683_v17 = vsel %vm627_vm11, %v684_v43, 0.0 }
 0x239   :  { %v895_v27 = vrot.slane %v6683_v17, 1  ;;  %v897_v31 = vrot.slane %v6683_v17, 3  ;;  %v896_v18 = vrot.slane %v6683_v17, 2  ;;  %v901_v32 = vrot.slane %v6683_v17, 7 }
 0x23a   :  { %v898_v33 = vrot.slane %v6683_v17, 4  ;;  %v899_v34 = vrot.slane %v6683_v17, 5  ;;  %v900_v9 = vrot.slane %v6683_v17, 6 }
 0x2a8   :  { %v658_v35 = vpop.permute.xlu1 %657 }
 0x2a9   :  { %v6664_v12 = vsel %vm627_vm11, %v658_v35, 0.0 }
 0x2aa   :  { %5200 = vmatmul.msk.f32.vlgmr.msra.gmra.mxu2 %vm8912_vm0, %v6664_v12 }
 0x2ab   :  { %3302 = vmatpush.msra.mxu2 %v6390_v5 }
 0x2ad   :  { %3303 = vmatpush.msra.mxu2 %v6394_v6 }
 0x32d   :  { %v707_v57 = vpop.f32.mrf.mxu2 }
 0x32e   :  { %v726_v58 = vadd.f32 %v707_v57, %v6419_v19  ;;  %v712_v59 = vrot.slane %v707_v57, 2  ;;  %v711_v60 = vrot.slane %v707_v57, 1  ;;  %v715_v63 = vrot.slane %v707_v57, 5 }
 0x32f   :  { %v714_v2 = vrot.slane %v707_v57, 4  ;;  %v713_v50 = vrot.slane %v707_v57, 3  ;;  %v717_v45 = vrot.slane %v707_v57, 7  ;;  %v716_v11 = vrot.slane %v707_v57, 6 }
 0x330   :  { %5437 = vtanh.f32 %v726_v58  ;;  %v728_v62 = vadd.f32 %v712_v59, %v6425_v26  ;;  %v727_v1 = vadd.f32 %v711_v60, %v6421_v22  ;;  %v731_v20 = vadd.f32 %v715_v63, %v6444_v48 }
 0x331   :  { %v730_v6 = vadd.f32 %v714_v2, %v6438_v41  ;;  %v729_v4 = vadd.f32 %v713_v50, %v6427_v30  ;;  %v733_v14 = vadd.f32 %v717_v45, %v6433_v36  ;;  %v732_v16 = vadd.f32 %v716_v11, %v6435_v38 }
 0x332   :  { %5439 = vtanh.f32 %v728_v62  ;;  %v5203_v37 = vmul.f32 -1.442695, %v728_v62  ;;  %v5201_v40 = vmul.f32 -1.442695, %v726_v58  ;;  %v5202_v3 = vmul.f32 -1.442695, %v727_v1 }
 0x333   :  { %5441 = vtanh.f32 %v727_v1  ;;  %v5205_v46 = vmul.f32 -1.442695, %v730_v6  ;;  %v5206_v42 = vmul.f32 -1.442695, %v731_v20  ;;  %v5204_v25 = vmul.f32 -1.442695, %v729_v4 }
 0x334   :  { %5443 = vtanh.f32 %v731_v20  ;;  %v5208_v35 = vmul.f32 -1.442695, %v733_v14  ;;  %v5207_v58 = vmul.f32 -1.442695, %v732_v16 }
 0x335   :  { %5445 = vtanh.f32 %v730_v6 }
 0x336   :  { %v5438_v5 = vpop.eup %5437  ;;  %5447 = vtanh.f32 %v729_v4 }
 0x337   :  { %942 = vrot.lane.b32.xlu0 %v5438_v5, %s6230_s6  ;;  %5449 = vtanh.f32 %v733_v14 }
 0x338   :  { %v5440_v44 = vpop.eup %5439  ;;  %5451 = vtanh.f32 %v732_v16 }
 0x339   :  { %946 = vrot.lane.b32.xlu2 %v5440_v44, %s6230_s6  ;;  %v5442_v8 = vpop.eup %5441  ;;  %5453 = vpow2.f32 %v5203_v37 }
 0x33a   :  { %944 = vrot.lane.b32.xlu1 %v5442_v8, %s6230_s6  ;;  %v5444_v13 = vpop.eup %5443 }
 0x33b   :  { %v5446_v15 = vpop.eup %5445 }
 0x33c   :  { %v5448_v7 = vpop.eup %5447 }
 0x33d   :  { %v5450_v28 = vpop.eup %5449 }
 0x33e   :  { %v5452_v29 = vpop.eup %5451 }
 0x33f   :  { %952 = vrot.lane.b32.xlu0 %v5444_v13, %s6230_s6  ;;  %v5454_v39 = vpop.eup %5453 }
 0x340   :  { %v760_v10 = vadd.f32 1.0, %v5454_v39 }
 0x341   :  { %950 = vrot.lane.b32.xlu2 %v5446_v15, %s6230_s6 }
 0x342   :  { %948 = vrot.lane.b32.xlu1 %v5448_v7, %s6230_s6  ;;  %5455 = vrcp.f32 %v760_v10  ;;  %v807_v56 = vand.u32 2147483648, %v760_v10  ;;  %vm801_vm13 = vweird.f32 %v760_v10  ;;  %v805_v57 = vand.u32 2147483647, %v760_v10 }
 0x343   :  { %5457 = vpow2.f32 %v5201_v40 }
 0x344   :  { %5459 = vpow2.f32 %v5202_v3  ;;  %v808_v1 = vor.u32 1.1754944e-38, %v807_v56  ;;  %vm806_vm15 = vcmp.eq.f32.partialorder %v805_v57, 8.507059e+37 }
 0x345   :  { %5461 = vpow2.f32 %v5205_v46 }
 0x346   :  { %5463 = vpow2.f32 %v5206_v42 }
 0x347   :  { %904 = vrot.lane.b32.xlu0 %v895_v27, %s6231_s23  ;;  %5465 = vpow2.f32 %v5204_v25 }
 0x348   :  { %v5456_v24 = vpop.eup %5455 }
 0x349   :  { %956 = vrot.lane.b32.xlu2 %v5450_v28, %s6230_s6  ;;  %v797_v47 = vmul.f32 %v5456_v24, %v760_v10  ;;  %v5458_v61 = vpop.eup %5457  ;;  %vm802_vm12 = vweird.f32 %v5456_v24 }
 0x34a   :  { %954 = vrot.lane.b32.xlu1 %v5452_v29, %s6230_s6  ;;  %v6705_v53 = vadd.f32 1.0, %v5458_v61  ;;  %v5460_v54 = vpop.eup %5459  ;;  %vm803_vm14 = vmor %vm801_vm13, %vm802_vm12 }
 0x34b   :  { %v798_v49 = vsub.f32 1.0, %v797_v47  ;;  %v5462_v55 = vpop.eup %5461  ;;  %v6708_v21 = vadd.f32 1.0, %v5460_v54 }
 0x34c   :  { %5467 = vrcp.f32 %v6705_v53  ;;  %v5464_v59 = vpop.eup %5463  ;;  %v6710_v62 = vadd.f32 1.0, %v5462_v55  ;;  %vm771_vm2 = vweird.f32 %v6705_v53  ;;  %v775_v39 = vand.u32 2147483647, %v6705_v53 }
 0x34d   :  { %v799_v52 = vmul.f32 %v5456_v24, %v798_v49  ;;  %v5466_v63 = vpop.eup %5465  ;;  %5469 = vrcp.f32 %v6708_v21  ;;  %v6717_v6 = vadd.f32 1.0, %v5464_v59  ;;  %v792_v42 = vand.u32 2147483648, %v6708_v21 }
 0x34e   :  { %5471 = vpow2.f32 %v5208_v35  ;;  %v6720_v4 = vadd.f32 1.0, %v5466_v63  ;;  %vm776_vm12 = vcmp.eq.f32.partialorder %v775_v39, 8.507059e+37  ;;  %v837_v25 = vand.u32 2147483648, %v6710_v62 }
 0x34f   :  { %908 = vrot.lane.b32.xlu0 %v897_v31, %s6231_s23  ;;  %v800_v0 = vadd.f32 %v5456_v24, %v799_v52  ;;  %5473 = vpow2.f32 %v5207_v58  ;;  %vm786_vm13 = vweird.f32 %v6708_v21  ;;  %v790_v54 = vand.u32 2147483647, %v6708_v21 }
 0x350   :  { %5475 = vrcp.f32 %v6710_v62  ;;  %v793_v63 = vor.u32 1.1754944e-38, %v792_v42 }
 0x351   :  { %902 = vrot.lane.b32.xlu2 %v6683_v17, %s6231_s23  ;;  %v804_v60 = vsel %vm803_vm14, %v5456_v24, %v800_v0  ;;  %5477 = vrcp.f32 %v6717_v6 }
 0x352   :  { %906 = vrot.lane.b32.xlu1 %v896_v18, %s6231_s23  ;;  %v5468_v2 = vpop.eup %5467  ;;  %v6713_v50 = vsel %vm806_vm15, %v808_v1, %v804_v60  ;;  %5479 = vrcp.f32 %v6720_v4  ;;  %v777_v18 = vand.u32 2147483648, %v6705_v53  ;;  %v835_v60 = vand.u32 2147483647, %v6710_v62 }
 0x353   :  { %v767_v44 = vmul.f32 %v5468_v2, %v6705_v53  ;;  %v6723_v8 = vpop.eup %5469  ;;  %vm772_vm1 = vweird.f32 %v5468_v2 }
 0x354   :  { %v5472_v45 = vpop.eup %5471  ;;  %v782_v15 = vmul.f32 %v6723_v8, %v6708_v21  ;;  %vm773_vm3 = vmor %vm771_vm2, %vm772_vm1  ;;  %v778_v24 = vor.u32 1.1754944e-38, %v777_v18  ;;  %vm787_vm11 = vweird.f32 %v6723_v8  ;;  %vm831_vm1 = vweird.f32 %v6710_v62 }
 0x355   :  { %v5474_v11 = vpop.eup %5473  ;;  %v768_v13 = vsub.f32 1.0, %v767_v44  ;;  %v6731_v43 = vadd.f32 1.0, %v5472_v45  ;;  %vm6771_vm15 = vmor %vm786_vm13, %vm787_vm11  ;;  %vm836_vm13 = vcmp.eq.f32.partialorder %v835_v60, 8.507059e+37  ;;  %v850_v18 = vand.u32 2147483647, %v6717_v6 }
 0x356   :  { %v6727_v14 = vpop.eup %5475  ;;  %v6735_v27 = vadd.f32 1.0, %v5474_v11  ;;  %v783_v29 = vsub.f32 1.0, %v782_v15 }
 0x357   :  { %916 = vrot.lane.b32.xlu0 %v901_v32, %s6231_s23  ;;  %v827_v16 = vmul.f32 %v6727_v14, %v6710_v62  ;;  %v769_v7 = vmul.f32 %v5468_v2, %v768_v13  ;;  %v6737_v28 = vpop.eup %5477  ;;  %5481 = vrcp.f32 %v6731_v43  ;;  %vm832_vm14 = vweird.f32 %v6727_v14 }
 0x358   :  { %v6739_v31 = vpop.eup %5479  ;;  %5483 = vrcp.f32 %v6735_v27  ;;  %vm6785_vm2 = vmor %vm831_vm1, %vm832_vm14  ;;  %vm847_vm11 = vweird.f32 %v6737_v28  ;;  %vm846_vm14 = vweird.f32 %v6717_v6  ;;  %vm816_vm1 = vweird.f32 %v6720_v4 }
 0x359   :  { %910 = vrot.lane.b32.xlu2 %v898_v33, %s6231_s23  ;;  %v828_v32 = vsub.f32 1.0, %v827_v16  ;;  %v770_v33 = vadd.f32 %v5468_v2, %v769_v7  ;;  %v812_v37 = vmul.f32 %v6739_v31, %v6720_v4  ;;  %v852_v16 = vand.u32 2147483648, %v6717_v6 }
 0x35a   :  { %912 = vrot.lane.b32.xlu1 %v899_v34, %s6231_s23  ;;  %v784_v34 = vmul.f32 %v6723_v8, %v783_v29  ;;  %v882_v42 = vand.u32 2147483648, %v6731_v43 }
 0x35b   :  { %v829_v10 = vmul.f32 %v6727_v14, %v828_v32  ;;  %v774_v40 = vsel %vm773_vm3, %v5468_v2, %v770_v33  ;;  %v813_v49 = vsub.f32 1.0, %v812_v37  ;;  %v838_v2 = vor.u32 1.1754944e-38, %v837_v25 }
 0x35c   :  { %v785_v47 = vadd.f32 %v6723_v8, %v784_v34  ;;  %v6760_v53 = vsel %vm776_vm12, %v778_v24, %v774_v40  ;;  %vm791_vm3 = vcmp.eq.f32.partialorder %v790_v54, 8.507059e+37  ;;  %vm817_vm12 = vweird.f32 %v6739_v31 }
 0x35d   :  { %v6752_v3 = vpop.eup %5481  ;;  %v830_v0 = vadd.f32 %v6727_v14, %v829_v10  ;;  %v814_v58 = vmul.f32 %v6739_v31, %v813_v49  ;;  %v820_v32 = vand.u32 2147483647, %v6720_v4  ;;  %v853_v10 = vor.u32 1.1754944e-38, %v852_v16 }
 0x35e   :  { %v6756_v61 = vpop.eup %5483  ;;  %v872_v55 = vmul.f32 %v6752_v3, %v6731_v43  ;;  %v789_v57 = vsel %vm6771_vm15, %v6723_v8, %v785_v47  ;;  %vm6807_vm15 = vmor %vm846_vm14, %vm847_vm11  ;;  %vm876_vm14 = vweird.f32 %v6731_v43  ;;  %v867_v25 = vand.u32 2147483648, %v6735_v27 }
 0x35f   :  { %v857_v59 = vmul.f32 %v6756_v61, %v6735_v27  ;;  %v6793_v8 = vsel %vm791_vm3, %v793_v63, %v789_v57  ;;  %v815_v13 = vadd.f32 %v6739_v31, %v814_v58  ;;  %vm851_vm3 = vcmp.eq.f32.partialorder %v850_v18, 8.507059e+37 }
 0x360   :  { %vm821_vm11 = vcmp.eq.f32.partialorder %v820_v32, 8.507059e+37  ;;  %v865_v54 = vand.u32 2147483647, %v6735_v27  ;;  %v868_v57 = vor.u32 1.1754944e-38, %v867_v25 }
 0x361   :  { %v858_v15 = vsub.f32 1.0, %v857_v59 }
 0x362   :  { %914 = vrot.lane.b32.xlu1 %v900_v9, %s6231_s23  ;;  %v842_v9 = vmul.f32 %v6737_v28, %v6717_v6 }
 0x363   :  { %v859_v39 = vmul.f32 %v6756_v61, %v858_v15 }
 0x364   :  { %v843_v46 = vsub.f32 1.0, %v842_v9 }
 0x365   :  { %v860_v49 = vadd.f32 %v6756_v61, %v859_v39 }
 0x366   :  { %v844_v21 = vmul.f32 %v6737_v28, %v843_v46 }
 0x368   :  { %v845_v11 = vadd.f32 %v6737_v28, %v844_v21 }
 0x36a   :  { %v849_v9 = vsel %vm6807_vm15, %v6737_v28, %v845_v11 }
 0x36b   :  { %v6826_v24 = vsel %vm851_vm3, %v853_v10, %v849_v9 }
 0x393   :  { %v947_v20 = vpop.permute.xlu2 %946 }
 0x394   :  { %v968_v5 = vmul.f32 %v947_v20, %v6713_v50  ;;  %v834_v20 = vsel %vm6785_vm2, %v6727_v14, %v830_v0  ;;  %v822_v14 = vand.u32 2147483648, %v6720_v4  ;;  %vm818_vm2 = vmor %vm816_vm1, %vm817_vm12  ;;  %vm862_vm12 = vweird.f32 %v6756_v61 }
 0x395   :  { %v6802_v7 = vsel %vm836_vm13, %v838_v2, %v834_v20  ;;  %v819_v37 = vsel %vm818_vm2, %v6739_v31, %v815_v13  ;;  %vm877_vm13 = vweird.f32 %v6752_v3  ;;  %vm861_vm1 = vweird.f32 %v6735_v27 }
 0x396   :  { %986 = vrot.lane.b32.xlu0 %v968_v5, %s6231_s23  ;;  %v873_v5 = vsub.f32 1.0, %v872_v55  ;;  %v823_v40 = vor.u32 1.1754944e-38, %v822_v14  ;;  %vm878_vm15 = vmor %vm876_vm14, %vm877_vm13  ;;  %vm1062_vm13 = vcmp.ge.s32.totalorder %v6629_v51, 1 }
 0x397   :  { %vm863_vm2 = vmor %vm861_vm1, %vm862_vm12 }
 0x398   :  { %v874_v34 = vmul.f32 %v6752_v3, %v873_v5  ;;  %v6828_v47 = vsel %vm821_vm11, %v823_v40, %v819_v37  ;;  %v864_v55 = vsel %vm863_vm2, %v6756_v61, %v860_v49  ;;  %vm866_vm11 = vcmp.eq.f32.partialorder %v865_v54, 8.507059e+37 }
 0x39a   :  { %v875_v4 = vadd.f32 %v6752_v3, %v874_v34 }
 0x39b   :  { %v951_v62 = vpop.permute.xlu2 %950 }
 0x39c   :  { %v970_v33 = vmul.f32 %v951_v62, %v6802_v7  ;;  %v879_v0 = vsel %vm878_vm15, %v6752_v3, %v875_v4 }
 0x3a3   :  { %v957_v35 = vpop.permute.xlu2 %956 }
 0x3a9   :  { %v943_v52 = vpop.permute.xlu0 %942 }
 0x3aa   :  { %v966_v56 = vmul.f32 %v943_v52, %v6760_v53  ;;  %v880_v52 = vand.u32 2147483647, %v6731_v43  ;;  %v6846_v43 = vsel %vm866_vm11, %v868_v57, %v864_v55 }
 0x3ab   :  { %v903_v3 = vpop.permute.xlu2 %902 }
 0x3ac   :  { %982 = vrot.lane.b32.xlu2 %v966_v56, %s6231_s23  ;;  %v945_v44 = vpop.permute.xlu1 %944  ;;  %v883_v56 = vor.u32 1.1754944e-38, %v882_v42  ;;  %vm881_vm3 = vcmp.eq.f32.partialorder %v880_v52, 8.507059e+37  ;;  %v926_v2 = vmul.f32 %v903_v3, %v6760_v53 }
 0x3ad   :  { %v967_v45 = vmul.f32 %v945_v44, %v6793_v8 }
 0x3ae   :  { %v6844_v21 = vsel %vm881_vm3, %v883_v56, %v879_v0 }
 0x3af   :  { %984 = vrot.lane.b32.xlu1 %v967_v45, %s6231_s23  ;;  %v973_v59 = vmul.f32 %v957_v35, %v6844_v21 }
 0x3b1   :  { %v953_v6 = vpop.permute.xlu0 %952 }
 0x3b2   :  { %v971_v31 = vmul.f32 %v953_v6, %v6826_v24 }
 0x3b3   :  { %v911_v63 = vpop.permute.xlu2 %910 }
 0x3b4   :  { %990 = vrot.lane.b32.xlu2 %v970_v33, %s6231_s23  ;;  %v949_v28 = vpop.permute.xlu1 %948  ;;  %v930_v13 = vmul.f32 %v911_v63, %v6802_v7 }
 0x3b5   :  { %v969_v46 = vmul.f32 %v949_v28, %v6828_v47 }
 0x3b7   :  { %988 = vrot.lane.b32.xlu0 %v969_v46, %s6231_s23  ;;  %992 = vrot.lane.b32.xlu1 %v971_v31, %s6231_s23 }
 0x3b9   :  { %v905_v27 = vpop.permute.xlu0 %904 }
 0x3ba   :  { %v927_v34 = vmul.f32 %v905_v27, %v6793_v8 }
 0x3bc   :  { %v955_v58 = vpop.permute.xlu1 %954 }
 0x3bd   :  { %v972_v60 = vmul.f32 %v955_v58, %v6846_v43 }
 0x3bf   :  { %996 = vrot.lane.b32.xlu0 %v973_v59, %s6231_s23  ;;  %994 = vrot.lane.b32.xlu2 %v972_v60, %s6231_s23 }
 0x3c1   :  { %v909_v61 = vpop.permute.xlu0 %908 }
 0x3c2   :  { %v929_v39 = vmul.f32 %v909_v61, %v6828_v47  ;;  %v1063_v61 = vsel %vm1062_vm13, 1, %v6233_v23 }
 0x3c4   :  { %v907_v20 = vpop.permute.xlu1 %906 }
 0x3c5   :  { %v928_v62 = vmul.f32 %v907_v20, %v6713_v50 }
 0x3c9   :  { %v917_v1 = vpop.permute.xlu0 %916 }
 0x3ca   :  { %v933_v25 = vmul.f32 %v917_v1, %v6844_v21 }
 0x3cc   :  { %v913_v29 = vpop.permute.xlu1 %912 }
 0x3cd   :  { %v931_v6 = vmul.f32 %v913_v29, %v6826_v24 }
 0x3d4   :  { %v915_v33 = vpop.permute.xlu1 %914 }
 0x3d5   :  { %v932_v49 = vmul.f32 %v915_v33, %v6846_v43 }
 0x406   :  { %v983_v5 = vpop.permute.xlu2 %982 }
 0x407   :  { %v1006_v44 = vadd.f32 %v983_v5, %v926_v2 }
 0x408   :  { %v987_v45 = vpop.permute.xlu0 %986 }
 0x409   :  { %5485 = vtanh.f32 %v1006_v44  ;;  %v1008_v11 = vadd.f32 %v987_v45, %v928_v62 }
 0x40b   :  { %5487 = vtanh.f32 %v1008_v11  ;;  %v1104_v58 = vrot.slane %v1008_v11, 6 }
 0x40e   :  { %v991_v15 = vpop.permute.xlu2 %990 }
 0x40f   :  { %v5486_v16 = vpop.eup %5485  ;;  %v1010_v14 = vadd.f32 %v991_v15, %v930_v13 }
 0x410   :  { %1030 = vrot.lane.b32.xlu0 %v5486_v16, %s6232_s25 }
 0x411   :  { %v5488_v18 = vpop.eup %5487  ;;  %5489 = vtanh.f32 %v1010_v14  ;;  %v1108_v3 = vrot.slane %v1010_v14, 4 }
 0x412   :  { %1034 = vrot.lane.b32.xlu2 %v5488_v18, %s6232_s25 }
 0x417   :  { %v5490_v32 = vpop.eup %5489 }
 0x419   :  { %v995_v46 = vpop.permute.xlu2 %994 }
 0x41a   :  { %1038 = vrot.lane.b32.xlu2 %v5490_v32, %s6232_s25  ;;  %v1012_v42 = vadd.f32 %v995_v46, %v932_v49 }
 0x41c   :  { %v1112_v5 = vrot.slane %v1012_v42, 2 }
 0x421   :  { %v985_v9 = vpop.permute.xlu1 %984 }
 0x422   :  { %v1007_v37 = vadd.f32 %v985_v9, %v927_v34 }
 0x424   :  { %5491 = vtanh.f32 %v1007_v37  ;;  %v1102_v52 = vrot.slane %v1007_v37, 7 }
 0x426   :  { %v1103_v35 = vsel %vm637_vm4, %v1102_v52, %v1006_v44 }
 0x427   :  { %v1105_v59 = vsel %vm640_vm5, %v1104_v58, %v1103_v35 }
 0x429   :  { %v989_v10 = vpop.permute.xlu0 %988  ;;  %v993_v40 = vpop.permute.xlu1 %992 }
 0x42a   :  { %v5492_v4 = vpop.eup %5491  ;;  %v1009_v28 = vadd.f32 %v989_v10, %v929_v39  ;;  %v1011_v31 = vadd.f32 %v993_v40, %v931_v6 }
 0x42b   :  { %1032 = vrot.lane.b32.xlu1 %v5492_v4, %s6232_s25 }
 0x42c   :  { %5493 = vtanh.f32 %v1009_v28  ;;  %v1106_v57 = vrot.slane %v1009_v28, 5  ;;  %v1110_v2 = vrot.slane %v1011_v31, 3 }
 0x42d   :  { %5495 = vtanh.f32 %v1011_v31 }
 0x42e   :  { %5497 = vtanh.f32 %v1012_v42  ;;  %v1107_v60 = vsel %vm643_vm6, %v1106_v57, %v1105_v59 }
 0x42f   :  { %v1109_v1 = vsel %vm646_vm7, %v1108_v3, %v1107_v60 }
 0x430   :  { %v1111_v51 = vsel %vm649_vm8, %v1110_v2, %v1109_v1 }
 0x431   :  { %v997_v54 = vpop.permute.xlu0 %996  ;;  %v1113_v44 = vsel %vm652_vm9, %v1112_v5, %v1111_v51 }
 0x432   :  { %v5494_v0 = vpop.eup %5493  ;;  %v1013_v55 = vadd.f32 %v997_v54, %v933_v25 }
 0x433   :  { %v5496_v56 = vpop.eup %5495  ;;  %1036 = vrot.lane.b32.xlu1 %v5494_v0, %s6232_s25  ;;  %v5986_v0 = vld [vmem:[#allocation8] sm:$0xff] }
 0x434   :  { %5499 = vtanh.f32 %v1013_v55  ;;  %1040 = vrot.lane.b32.xlu0 %v5496_v56, %s6232_s25  ;;  %v5498_v27 = vpop.eup %5497  ;;  %v1114_v20 = vrot.slane %v1013_v55, 1 }
 0x436   :  { %v1115_v62 = vsel %vm655_vm10, %v1114_v20, %v1113_v44 }
 0x43a   :  { %v5500_v63 = vpop.eup %5499 }
 0x43b   :  { %1044 = vrot.lane.b32.xlu2 %v5500_v63, %s6232_s25  ;;  %1042 = vrot.lane.b32.xlu1 %v5498_v27, %s6232_s25 }
 0x43c   :  { %1065 = vperm.xlu0 %5350, %v1063_v61  }
 0x443   :  { %1116 = vrot.lane.b32.xlu2 %v1115_v62, %s6234_s28 }
 0x46c   :  { %v1035_v45 = vpop.permute.xlu2 %1034 }
 0x46d   :  { %v1056_v29 = vmul.f32 %v1035_v45, %v6713_v50 }
 0x46f   :  { %v1078_v9 = vrot.slane %v1056_v29, 6 }
 0x474   :  { %v1039_v16 = vpop.permute.xlu2 %1038 }
 0x475   :  { %v1058_v37 = vmul.f32 %v1039_v16, %v6802_v7 }
 0x477   :  { %v1082_v50 = vrot.slane %v1058_v37, 4 }
 0x482   :  { %v1031_v15 = vpop.permute.xlu0 %1030 }
 0x483   :  { %v1054_v18 = vmul.f32 %v1031_v15, %v6760_v53 }
 0x495   :  { %v1045_v10 = vpop.permute.xlu2 %1044 }
 0x496   :  { %v1061_v53 = vmul.f32 %v1045_v10, %v6844_v21 }
 0x498   :  { %v1088_v7 = vrot.slane %v1061_v53, 1 }
 0x49d   :  { %v1033_v11 = vpop.permute.xlu1 %1032 }
 0x49e   :  { %v1055_v13 = vmul.f32 %v1033_v11, %v6793_v8  ;;  %v1117_v11 = vpop.permute.xlu2 %1116 }
 0x4a0   :  { %v1076_v14 = vrot.slane %v1055_v13, 7 }
 0x4a2   :  { %v1077_v34 = vsel %vm637_vm4, %v1076_v14, %v1054_v18 }
 0x4a3   :  { %v1079_v8 = vsel %vm640_vm5, %v1078_v9, %v1077_v34 }
 0x4a5   :  { %v1037_v32 = vpop.permute.xlu1 %1036 }
 0x4a6   :  { %v1057_v33 = vmul.f32 %v1037_v32, %v6828_v47  ;;  %v1041_v39 = vpop.permute.xlu0 %1040 }
 0x4a7   :  { %v1059_v40 = vmul.f32 %v1041_v39, %v6826_v24 }
 0x4a8   :  { %v1080_v6 = vrot.slane %v1057_v33, 5 }
 0x4a9   :  { %v1084_v46 = vrot.slane %v1059_v40, 3 }
 0x4aa   :  { %v1081_v4 = vsel %vm643_vm6, %v1080_v6, %v1079_v8 }
 0x4ab   :  { %v1083_v31 = vsel %vm646_vm7, %v1082_v50, %v1081_v4 }
 0x4ac   :  { %v1085_v42 = vsel %vm649_vm8, %v1084_v46, %v1083_v31 }
 0x4ad   :  { %v1043_v28 = vpop.permute.xlu1 %1042 }
 0x4ae   :  { %v1060_v47 = vmul.f32 %v1043_v28, %v6846_v43  ;;  %v1066_v24 = vpop.permute.xlu0 %1065  ;;  %v5985_v43 = vld [vmem:[#allocation8 + $0x8] sm:$0xff] }
 0x4af   :  { %vm1067_vm12 = vcmp.eq.s32.totalorder %v1066_v24, 1 }
 0x4b0   :  { %v1086_v49 = vrot.slane %v1060_v47, 2  ;;  %v6914_v15 = vsel %vm1067_vm12, %v1117_v11, %v6683_v17 }
 0x4b1   :  { %v1328_v14 = vrot.slane %v6914_v15, 7  ;;  %v1330_v17 = vrot.slane %v6914_v15, 2  ;;  %v1329_v32 = vrot.slane %v6914_v15, 1  ;;  %v1334_v33 = vrot.slane %v6914_v15, 6 }
 0x4b2   :  { %v1087_v25 = vsel %vm652_vm9, %v1086_v49, %v1085_v42  ;;  %v1331_v34 = vrot.slane %v6914_v15, 3  ;;  %v1332_v9 = vrot.slane %v6914_v15, 4  ;;  %v1333_v37 = vrot.slane %v6914_v15, 5 }
 0x4b3   :  { %v1089_v52 = vsel %vm655_vm10, %v1088_v7, %v1087_v25 }
 0x4b4   :  { %1090 = vrot.lane.b32.xlu1 %v1089_v52, %s6235_s5 }
 0x526   :  { %v1091_v54 = vpop.permute.xlu1 %1090 }
 0x527   :  { %v6896_v21 = vsel %vm1067_vm12, %v1091_v54, %v6664_v12 }
 0x528   :  { %5209 = vmatmul.msk.f32.vlgmr.msra.gmra.mxu3 %vm8912_vm0, %v6896_v21 }
 0x529   :  { %3735 = vmatpush.msra.mxu3 %v5985_v43 }
 0x52b   :  { %3736 = vmatpush.msra.mxu3 %v5986_v0 }
 0x5ab   :  { %v1140_v55 = vpop.f32.mrf.mxu3 }
 0x5ac   :  { %v1160_v56 = vadd.f32 %v1140_v55, %v6421_v22  ;;  %v1145_v35 = vrot.slane %v1140_v55, 1  ;;  %v1144_v57 = vrot.slane %v1140_v55, 7  ;;  %v1148_v59 = vrot.slane %v1140_v55, 4 }
 0x5ad   :  { %v1147_v12 = vrot.slane %v1140_v55, 3  ;;  %v1146_v3 = vrot.slane %v1140_v55, 2  ;;  %v1150_v51 = vrot.slane %v1140_v55, 6  ;;  %v1149_v5 = vrot.slane %v1140_v55, 5 }
 0x5ae   :  { %5501 = vtanh.f32 %v1160_v56  ;;  %v1161_v58 = vadd.f32 %v1145_v35, %v6425_v26  ;;  %v1159_v60 = vadd.f32 %v1144_v57, %v6419_v19  ;;  %v1164_v27 = vadd.f32 %v1148_v59, %v6444_v48 }
 0x5af   :  { %v1163_v63 = vadd.f32 %v1147_v12, %v6438_v41  ;;  %v1162_v2 = vadd.f32 %v1146_v3, %v6427_v30  ;;  %v1166_v62 = vadd.f32 %v1150_v51, %v6433_v36  ;;  %v1165_v13 = vadd.f32 %v1149_v5, %v6435_v38 }
 0x5b0   :  { %5503 = vtanh.f32 %v1161_v58  ;;  %v5211_v39 = vmul.f32 -1.442695, %v1160_v56  ;;  %v5212_v4 = vmul.f32 -1.442695, %v1161_v58  ;;  %v5210_v50 = vmul.f32 -1.442695, %v1159_v60 }
 0x5b1   :  { %5505 = vtanh.f32 %v1159_v60  ;;  %v5214_v47 = vmul.f32 -1.442695, %v1163_v63  ;;  %v5215_v31 = vmul.f32 -1.442695, %v1164_v27  ;;  %v5213_v49 = vmul.f32 -1.442695, %v1162_v2 }
 0x5b2   :  { %5507 = vtanh.f32 %v1164_v27  ;;  %v5217_v0 = vmul.f32 -1.442695, %v1166_v62  ;;  %v5216_v35 = vmul.f32 -1.442695, %v1165_v13 }
 0x5b3   :  { %5509 = vtanh.f32 %v1163_v63 }
 0x5b4   :  { %v5502_v61 = vpop.eup %5501  ;;  %5511 = vtanh.f32 %v1162_v2 }
 0x5b5   :  { %1377 = vrot.lane.b32.xlu2 %v5502_v61, %s6230_s6  ;;  %5513 = vtanh.f32 %v1166_v62 }
 0x5b6   :  { %v5504_v1 = vpop.eup %5503  ;;  %5515 = vtanh.f32 %v1165_v13 }
 0x5b7   :  { %1379 = vrot.lane.b32.xlu1 %v5504_v1, %s6230_s6  ;;  %v5506_v20 = vpop.eup %5505  ;;  %5517 = vpow2.f32 %v5211_v39 }
 0x5b8   :  { %1375 = vrot.lane.b32.xlu0 %v5506_v20, %s6230_s6  ;;  %v5508_v44 = vpop.eup %5507 }
 0x5b9   :  { %v5510_v45 = vpop.eup %5509 }
 0x5ba   :  { %v5512_v16 = vpop.eup %5511 }
 0x5bb   :  { %v5514_v29 = vpop.eup %5513 }
 0x5bc   :  { %v5516_v18 = vpop.eup %5515 }
 0x5bd   :  { %1385 = vrot.lane.b32.xlu2 %v5508_v44, %s6230_s6  ;;  %v5518_v6 = vpop.eup %5517 }
 0x5be   :  { %v1192_v10 = vadd.f32 1.0, %v5518_v6 }
 0x5bf   :  { %1383 = vrot.lane.b32.xlu1 %v5510_v45, %s6230_s6 }
 0x5c0   :  { %1381 = vrot.lane.b32.xlu0 %v5512_v16, %s6230_s6  ;;  %5519 = vrcp.f32 %v1192_v10  ;;  %v1225_v25 = vand.u32 2147483648, %v1192_v10  ;;  %vm1219_vm15 = vweird.f32 %v1192_v10  ;;  %v1223_v52 = vand.u32 2147483647, %v1192_v10 }
 0x5c1   :  { %5521 = vpow2.f32 %v5212_v4 }
 0x5c2   :  { %5523 = vpow2.f32 %v5210_v50  ;;  %v1226_v55 = vor.u32 1.1754944e-38, %v1225_v25  ;;  %vm1224_vm2 = vcmp.eq.f32.partialorder %v1223_v52, 8.507059e+37 }
 0x5c3   :  { %5525 = vpow2.f32 %v5214_v47 }
 0x5c4   :  { %5527 = vpow2.f32 %v5215_v31 }
 0x5c5   :  { %1335 = vrot.lane.b32.xlu2 %v1328_v14, %s6231_s23  ;;  %5529 = vpow2.f32 %v5213_v49 }
 0x5c6   :  { %v5520_v8 = vpop.eup %5519 }
 0x5c7   :  { %1389 = vrot.lane.b32.xlu1 %v5514_v29, %s6230_s6  ;;  %v1215_v40 = vmul.f32 %v5520_v8, %v1192_v10  ;;  %v5522_v46 = vpop.eup %5521  ;;  %vm1220_vm14 = vweird.f32 %v5520_v8 }
 0x5c8   :  { %1387 = vrot.lane.b32.xlu0 %v5516_v18, %s6230_s6  ;;  %v5524_v42 = vpop.eup %5523  ;;  %v6936_v24 = vadd.f32 1.0, %v5522_v46  ;;  %vm1221_vm1 = vmor %vm1219_vm15, %vm1220_vm14 }
 0x5c9   :  { %v1216_v53 = vsub.f32 1.0, %v1215_v40  ;;  %v6938_v43 = vadd.f32 1.0, %v5524_v42  ;;  %v5526_v56 = vpop.eup %5525 }
 0x5ca   :  { %5531 = vrcp.f32 %v6936_v24  ;;  %v5528_v59 = vpop.eup %5527  ;;  %v6946_v27 = vadd.f32 1.0, %v5526_v56  ;;  %vm1234_vm11 = vweird.f32 %v6936_v24  ;;  %v1238_v6 = vand.u32 2147483647, %v6936_v24 }
 0x5cb   :  { %v1217_v28 = vmul.f32 %v5520_v8, %v1216_v53  ;;  %5533 = vrcp.f32 %v6938_v43  ;;  %v5530_v12 = vpop.eup %5529  ;;  %v6948_v3 = vadd.f32 1.0, %v5528_v59  ;;  %v1208_v39 = vand.u32 2147483647, %v6938_v43 }
 0x5cc   :  { %5535 = vpow2.f32 %v5217_v0  ;;  %v6950_v63 = vadd.f32 1.0, %v5530_v12  ;;  %v1240_v10 = vand.u32 2147483648, %v6936_v24  ;;  %v1210_v53 = vand.u32 2147483648, %v6938_v43 }
 0x5cd   :  { %1341 = vrot.lane.b32.xlu2 %v1330_v17, %s6231_s23  ;;  %v1218_v7 = vadd.f32 %v5520_v8, %v1217_v28  ;;  %5537 = vpow2.f32 %v5216_v35  ;;  %vm1204_vm14 = vweird.f32 %v6938_v43  ;;  %v1283_v49 = vand.u32 2147483647, %v6948_v3 }
 0x5ce   :  { %5539 = vrcp.f32 %v6946_v27  ;;  %v1241_v25 = vor.u32 1.1754944e-38, %v1240_v10  ;;  %v1211_v0 = vor.u32 1.1754944e-38, %v1210_v53  ;;  %v1268_v35 = vand.u32 2147483647, %v6946_v27 }
 0x5cf   :  { %1337 = vrot.lane.b32.xlu1 %v6914_v15, %s6231_s23  ;;  %v1222_v54 = vsel %vm1221_vm1, %v5520_v8, %v1218_v7  ;;  %5541 = vrcp.f32 %v6948_v3  ;;  %vm6999_vm1 = vcmp.eq.f32.partialorder %v1208_v39, 8.507059e+37 }
 0x5d0   :  { %1339 = vrot.lane.b32.xlu0 %v1329_v32, %s6231_s23  ;;  %v6941_v58 = vsel %vm1224_vm2, %v1226_v55, %v1222_v54  ;;  %v5532_v61 = vpop.eup %5531  ;;  %5543 = vrcp.f32 %v6950_v63  ;;  %vm1239_vm2 = vcmp.eq.f32.partialorder %v1238_v6, 8.507059e+37 }
 0x5d1   :  { %v5534_v1 = vpop.eup %5533  ;;  %v1230_v20 = vmul.f32 %v5532_v61, %v6936_v24  ;;  %vm1235_vm3 = vweird.f32 %v5532_v61 }
 0x5d2   :  { %v5536_v2 = vpop.eup %5535  ;;  %v1200_v5 = vmul.f32 %v5534_v1, %v6938_v43  ;;  %vm1205_vm13 = vweird.f32 %v5534_v1  ;;  %vm6984_vm12 = vmor %vm1234_vm11, %vm1235_vm3  ;;  %vm1264_vm3 = vweird.f32 %v6946_v27 }
 0x5d3   :  { %v5538_v51 = vpop.eup %5537  ;;  %v6957_v44 = vadd.f32 1.0, %v5536_v2  ;;  %v1231_v62 = vsub.f32 1.0, %v1230_v20  ;;  %vm6995_vm15 = vmor %vm1204_vm14, %vm1205_vm13  ;;  %vm1279_vm14 = vweird.f32 %v6948_v3 }
 0x5d4   :  { %v6959_v45 = vpop.eup %5539  ;;  %v6961_v11 = vadd.f32 1.0, %v5538_v51  ;;  %v1201_v16 = vsub.f32 1.0, %v1200_v5 }
 0x5d5   :  { %1349 = vrot.lane.b32.xlu2 %v1334_v33, %s6231_s23  ;;  %v6963_v13 = vpop.eup %5541  ;;  %5545 = vrcp.f32 %v6957_v44  ;;  %v1232_v29 = vmul.f32 %v5532_v61, %v1231_v62  ;;  %v1260_v18 = vmul.f32 %v6959_v45, %v6946_v27  ;;  %vm1265_vm11 = vweird.f32 %v6959_v45 }
 0x5d6   :  { %v6965_v14 = vpop.eup %5543  ;;  %5547 = vrcp.f32 %v6961_v11  ;;  %v1275_v17 = vmul.f32 %v6963_v13, %v6948_v3  ;;  %v1202_v32 = vmul.f32 %v5534_v1, %v1201_v16  ;;  %vm1280_vm13 = vweird.f32 %v6963_v13 }
 0x5d7   :  { %1343 = vrot.lane.b32.xlu1 %v1331_v34, %s6231_s23  ;;  %v1245_v33 = vmul.f32 %v6965_v14, %v6950_v63  ;;  %v1233_v34 = vadd.f32 %v5532_v61, %v1232_v29  ;;  %v1285_v62 = vand.u32 2147483648, %v6948_v3  ;;  %v1253_v16 = vand.u32 2147483647, %v6950_v63 }
 0x5d8   :  { %1345 = vrot.lane.b32.xlu0 %v1332_v9, %s6231_s23  ;;  %v1261_v9 = vsub.f32 1.0, %v1260_v18  ;;  %v1276_v8 = vsub.f32 1.0, %v1275_v17  ;;  %v1203_v40 = vadd.f32 %v5534_v1, %v1202_v32  ;;  %v1255_v29 = vand.u32 2147483648, %v6950_v63 }
 0x5d9   :  { %v1246_v4 = vsub.f32 1.0, %v1245_v33  ;;  %v1237_v47 = vsel %vm6984_vm12, %v5532_v61, %v1233_v34  ;;  %vm1250_vm12 = vweird.f32 %v6965_v14  ;;  %v1286_v6 = vor.u32 1.1754944e-38, %v1285_v62 }
 0x5da   :  { %v1262_v46 = vmul.f32 %v6959_v45, %v1261_v9  ;;  %v1277_v52 = vmul.f32 %v6963_v13, %v1276_v8  ;;  %v1207_v24 = vsel %vm6995_vm15, %v5534_v1, %v1203_v40  ;;  %v7009_v56 = vsel %vm1239_vm2, %v1241_v25, %v1237_v47  ;;  %vm7035_vm15 = vmor %vm1264_vm3, %vm1265_vm11 }
 0x5db   :  { %v1247_v54 = vmul.f32 %v6965_v14, %v1246_v4  ;;  %v7019_v12 = vsel %vm6999_vm1, %v1211_v0, %v1207_v24  ;;  %v1270_v1 = vand.u32 2147483648, %v6946_v27  ;;  %vm7041_vm1 = vmor %vm1279_vm14, %vm1280_vm13  ;;  %vm1249_vm2 = vweird.f32 %v6950_v63 }
 0x5dc   :  { %v1278_v2 = vadd.f32 %v6963_v13, %v1277_v52  ;;  %vm7051_vm3 = vcmp.eq.f32.partialorder %v1283_v49, 8.507059e+37  ;;  %vm7057_vm11 = vmor %vm1249_vm2, %vm1250_vm12  ;;  %vm1269_vm13 = vcmp.eq.f32.partialorder %v1268_v35, 8.507059e+37  ;;  %vm1254_vm14 = vcmp.eq.f32.partialorder %v1253_v16, 8.507059e+37 }
 0x5dd   :  { %v1248_v20 = vadd.f32 %v6965_v14, %v1247_v54  ;;  %v1271_v34 = vor.u32 1.1754944e-38, %v1270_v1  ;;  %v1256_v10 = vor.u32 1.1754944e-38, %v1255_v29  ;;  %vm1309_vm12 = vweird.f32 %v6957_v44 }
 0x5de   :  { %v1282_v63 = vsel %vm7041_vm1, %v6963_v13, %v1278_v2  ;;  %v1313_v28 = vand.u32 2147483647, %v6957_v44  ;;  %v1315_v47 = vand.u32 2147483648, %v6957_v44  ;;  %v1300_v42 = vand.u32 2147483648, %v6961_v11 }
 0x5df   :  { %v1252_v9 = vsel %vm7057_vm11, %v6965_v14, %v1248_v20  ;;  %v7076_v14 = vsel %vm7051_vm3, %v1286_v6, %v1282_v63  ;;  %vm1294_vm3 = vweird.f32 %v6961_v11 }
 0x5e0   :  { %1347 = vrot.lane.b32.xlu0 %v1333_v37, %s6231_s23  ;;  %v6975_v37 = vpop.eup %5545  ;;  %v7078_v53 = vsel %vm1254_vm14, %v1256_v10, %v1252_v9  ;;  %v1316_v52 = vor.u32 1.1754944e-38, %v1315_v47  ;;  %v1301_v0 = vor.u32 1.1754944e-38, %v1300_v42 }
 0x5e1   :  { %v6981_v50 = vpop.eup %5547  ;;  %v1305_v31 = vmul.f32 %v6975_v37, %v6957_v44  ;;  %v1298_v44 = vand.u32 2147483647, %v6961_v11 }
 0x5e2   :  { %v1290_v43 = vmul.f32 %v6981_v50, %v6961_v11  ;;  %vm1295_vm1 = vweird.f32 %v6981_v50 }
 0x5e3   :  { %v1306_v59 = vsub.f32 1.0, %v1305_v31  ;;  %vm1296_vm11 = vmor %vm1294_vm3, %vm1295_vm1  ;;  %vm1299_vm14 = vcmp.eq.f32.partialorder %v1298_v44, 8.507059e+37 }
 0x5e4   :  { %v1291_v5 = vsub.f32 1.0, %v1290_v43 }
 0x5e5   :  { %v1307_v3 = vmul.f32 %v6975_v37, %v1306_v59 }
 0x5e7   :  { %v1308_v4 = vadd.f32 %v6975_v37, %v1307_v3 }
 0x60f   :  { %v1378_v57 = vpop.permute.xlu2 %1377 }
 0x610   :  { %v1400_v60 = vmul.f32 %v1378_v57, %v6941_v58 }
 0x612   :  { %1417 = vrot.lane.b32.xlu1 %v1400_v60, %s6231_s23  ;;  %v1263_v60 = vadd.f32 %v6959_v45, %v1262_v46 }
 0x614   :  { %v1267_v27 = vsel %vm7035_vm15, %v6959_v45, %v1263_v60  ;;  %v1292_v45 = vmul.f32 %v6981_v50, %v1291_v5  ;;  %vm1310_vm15 = vweird.f32 %v6975_v37 }
 0x615   :  { %v7068_v8 = vsel %vm1269_vm13, %v1271_v34, %v1267_v27  ;;  %vm1311_vm2 = vmor %vm1309_vm12, %vm1310_vm15  ;;  %vm1314_vm13 = vcmp.eq.f32.partialorder %v1313_v28, 8.507059e+37 }
 0x616   :  { %v1293_v7 = vadd.f32 %v6981_v50, %v1292_v45  ;;  %v1312_v25 = vsel %vm1311_vm2, %v6975_v37, %v1308_v4 }
 0x617   :  { %v1386_v39 = vpop.permute.xlu2 %1385  ;;  %v7094_v54 = vsel %vm1314_vm13, %v1316_v52, %v1312_v25 }
 0x618   :  { %v1404_v46 = vmul.f32 %v1386_v39, %v7076_v14  ;;  %v1297_v24 = vsel %vm1296_vm11, %v6981_v50, %v1293_v7 }
 0x619   :  { %v7097_v37 = vsel %vm1299_vm14, %v1301_v0, %v1297_v24 }
 0x61f   :  { %v1336_v11 = vpop.permute.xlu2 %1335 }
 0x620   :  { %v1359_v27 = vmul.f32 %v1336_v11, %v7019_v12 }
 0x627   :  { %v1342_v60 = vpop.permute.xlu2 %1341 }
 0x628   :  { %v1362_v63 = vmul.f32 %v1342_v60, %v7078_v53 }
 0x629   :  { %v1380_v55 = vpop.permute.xlu1 %1379 }
 0x62a   :  { %v1401_v57 = vmul.f32 %v1380_v55, %v7009_v56  ;;  %v1376_v61 = vpop.permute.xlu0 %1375 }
 0x62b   :  { %v1399_v51 = vmul.f32 %v1376_v61, %v7019_v12 }
 0x62c   :  { %1419 = vrot.lane.b32.xlu2 %v1401_v57, %s6231_s23 }
 0x62d   :  { %1415 = vrot.lane.b32.xlu0 %v1399_v51, %s6231_s23 }
 0x62f   :  { %v1350_v61 = vpop.permute.xlu2 %1349 }
 0x630   :  { %v1366_v47 = vmul.f32 %v1350_v61, %v7094_v54 }
 0x631   :  { %v1384_v40 = vpop.permute.xlu1 %1383 }
 0x632   :  { %v1403_v13 = vmul.f32 %v1384_v40, %v7068_v8  ;;  %v1382_v31 = vpop.permute.xlu0 %1381 }
 0x633   :  { %v1402_v49 = vmul.f32 %v1382_v31, %v7078_v53 }
 0x634   :  { %1423 = vrot.lane.b32.xlu1 %v1403_v13, %s6231_s23 }
 0x635   :  { %1421 = vrot.lane.b32.xlu2 %v1402_v49, %s6231_s23  ;;  %1425 = vrot.lane.b32.xlu0 %v1404_v46, %s6231_s23 }
 0x639   :  { %v1390_v43 = vpop.permute.xlu1 %1389 }
 0x63a   :  { %v1406_v55 = vmul.f32 %v1390_v43, %v7094_v54  ;;  %v1388_v35 = vpop.permute.xlu0 %1387 }
 0x63b   :  { %v1405_v57 = vmul.f32 %v1388_v35, %v7097_v37  ;;  %v7121_v35 = vld [vmem:[%s8924_s7] sm:$0xff] }
 0x63c   :  { %vm1495_vm12 = vcmp.ge.s32.totalorder %v7121_v35, 2 }
 0x63d   :  { %1429 = vrot.lane.b32.xlu2 %v1406_v55, %s6231_s23  ;;  %1427 = vrot.lane.b32.xlu1 %v1405_v57, %s6231_s23 }
 0x641   :  { %v1338_v59 = vpop.permute.xlu1 %1337 }
 0x642   :  { %v1360_v1 = vmul.f32 %v1338_v59, %v6941_v58  ;;  %v1340_v2 = vpop.permute.xlu0 %1339 }
 0x643   :  { %v1361_v5 = vmul.f32 %v1340_v2, %v7009_v56 }
 0x649   :  { %v1344_v50 = vpop.permute.xlu1 %1343 }
 0x64a   :  { %v1346_v18 = vpop.permute.xlu0 %1345  ;;  %v1363_v9 = vmul.f32 %v1344_v50, %v7068_v8  ;;  %v1496_v50 = vsel %vm1495_vm12, 1, %v6233_v23 }
 0x64b   :  { %v1364_v6 = vmul.f32 %v1346_v18, %v7076_v14 }
 0x652   :  { %v1348_v3 = vpop.permute.xlu0 %1347 }
 0x653   :  { %v1365_v7 = vmul.f32 %v1348_v3, %v7097_v37 }
 0x684   :  { %v1418_v20 = vpop.permute.xlu1 %1417 }
 0x685   :  { %v1440_v51 = vadd.f32 %v1418_v20, %v1360_v1 }
 0x686   :  { %v1420_v62 = vpop.permute.xlu2 %1419 }
 0x687   :  { %5549 = vtanh.f32 %v1440_v51  ;;  %v1441_v16 = vadd.f32 %v1420_v62, %v1361_v5 }
 0x689   :  { %5551 = vtanh.f32 %v1441_v16  ;;  %v1537_v43 = vrot.slane %v1441_v16, 7 }
 0x68d   :  { %v5550_v29 = vpop.eup %5549 }
 0x68e   :  { %1465 = vrot.lane.b32.xlu2 %v5550_v29, %s6232_s25 }
 0x68f   :  { %v5552_v17 = vpop.eup %5551  ;;  %v1422_v32 = vpop.permute.xlu2 %1421 }
 0x690   :  { %1467 = vrot.lane.b32.xlu1 %v5552_v17, %s6232_s25  ;;  %v1442_v45 = vadd.f32 %v1422_v32, %v1362_v63 }
 0x692   :  { %v1539_v57 = vrot.slane %v1442_v45, 6 }
 0x697   :  { %v1430_v28 = vpop.permute.xlu2 %1429 }
 0x698   :  { %v1446_v31 = vadd.f32 %v1430_v28, %v1366_v47 }
 0x69a   :  { %v1547_v5 = vrot.slane %v1446_v31, 2 }
 0x69f   :  { %v1416_v33 = vpop.permute.xlu0 %1415 }
 0x6a0   :  { %v1439_v34 = vadd.f32 %v1416_v33, %v1359_v27 }
 0x6a2   :  { %5553 = vtanh.f32 %v1439_v34  ;;  %v1535_v46 = vrot.slane %v1439_v34, 1 }
 0x6a4   :  { %v1536_v52 = vsel %vm637_vm4, %v1440_v51, %v1535_v46 }
 0x6a5   :  { %v1538_v0 = vsel %vm640_vm5, %v1537_v43, %v1536_v52 }
 0x6a6   :  { %v1424_v39 = vpop.permute.xlu1 %1423  ;;  %v1540_v59 = vsel %vm643_vm6, %v1539_v57, %v1538_v0 }
 0x6a7   :  { %v1443_v10 = vadd.f32 %v1424_v39, %v1363_v9  ;;  %v1426_v40 = vpop.permute.xlu0 %1425 }
 0x6a8   :  { %v5554_v4 = vpop.eup %5553  ;;  %v1444_v13 = vadd.f32 %v1426_v40, %v1364_v6 }
 0x6a9   :  { %5555 = vtanh.f32 %v1443_v10  ;;  %1463 = vrot.lane.b32.xlu0 %v5554_v4, %s6232_s25  ;;  %v1541_v55 = vrot.slane %v1443_v10, 5 }
 0x6aa   :  { %5557 = vtanh.f32 %v1442_v45  ;;  %v1543_v60 = vrot.slane %v1444_v13, 4 }
 0x6ab   :  { %5559 = vtanh.f32 %v1444_v13  ;;  %v1542_v61 = vsel %vm646_vm7, %v1541_v55, %v1540_v59 }
 0x6ac   :  { %5561 = vtanh.f32 %v1446_v31  ;;  %v1544_v20 = vsel %vm649_vm8, %v1543_v60, %v1542_v61 }
 0x6af   :  { %v5556_v49 = vpop.eup %5555  ;;  %v1428_v25 = vpop.permute.xlu1 %1427 }
 0x6b0   :  { %v5558_v42 = vpop.eup %5557  ;;  %1471 = vrot.lane.b32.xlu1 %v5556_v49, %s6232_s25  ;;  %v1445_v24 = vadd.f32 %v1428_v25, %v1365_v7 }
 0x6b1   :  { %v5560_v44 = vpop.eup %5559  ;;  %1469 = vrot.lane.b32.xlu0 %v5558_v42, %s6232_s25 }
 0x6b2   :  { %1473 = vrot.lane.b32.xlu2 %v5560_v44, %s6232_s25  ;;  %5563 = vtanh.f32 %v1445_v24  ;;  %v5562_v11 = vpop.eup %5561  ;;  %v1545_v1 = vrot.slane %v1445_v24, 3 }
 0x6b4   :  { %v1546_v51 = vsel %vm652_vm9, %v1545_v1, %v1544_v20 }
 0x6b5   :  { %v1548_v62 = vsel %vm655_vm10, %v1547_v5, %v1546_v51 }
 0x6b8   :  { %1477 = vrot.lane.b32.xlu1 %v5562_v11, %s6232_s25  ;;  %v5564_v2 = vpop.eup %5563 }
 0x6b9   :  { %1475 = vrot.lane.b32.xlu0 %v5564_v2, %s6232_s25 }
 0x6ba   :  { %1498 = vperm.xlu2 %5351, %v1496_v50  }
 0x6c0   :  { %1549 = vrot.lane.b32.xlu1 %v1548_v62, %s6234_s28 }
 0x6e8   :  { %v1466_v17 = vpop.permute.xlu2 %1465 }
 0x6e9   :  { %v1488_v33 = vmul.f32 %v1466_v17, %v6941_v58 }
 0x702   :  { %v1468_v16 = vpop.permute.xlu1 %1467 }
 0x703   :  { %v1489_v32 = vmul.f32 %v1468_v16, %v7009_v56 }
 0x705   :  { %v1511_v39 = vrot.slane %v1489_v32, 7 }
 0x70c   :  { %v1474_v6 = vpop.permute.xlu2 %1473 }
 0x70d   :  { %v1492_v4 = vmul.f32 %v1474_v6, %v7076_v14 }
 0x70f   :  { %v1517_v47 = vrot.slane %v1492_v4, 4 }
 0x714   :  { %v1499_v14 = vpop.permute.xlu2 %1498 }
 0x715   :  { %vm1500_vm15 = vcmp.eq.s32.totalorder %v1499_v14, 1 }
 0x71b   :  { %v1464_v29 = vpop.permute.xlu0 %1463 }
 0x71c   :  { %v1487_v18 = vmul.f32 %v1464_v29, %v7019_v12 }
 0x71e   :  { %v1509_v3 = vrot.slane %v1487_v18, 1 }
 0x720   :  { %v1510_v45 = vsel %vm637_vm4, %v1488_v33, %v1509_v3 }
 0x721   :  { %v1512_v12 = vsel %vm640_vm5, %v1511_v39, %v1510_v45 }
 0x722   :  { %v1472_v27 = vpop.permute.xlu1 %1471 }
 0x723   :  { %v1470_v34 = vpop.permute.xlu0 %1469  ;;  %v1491_v63 = vmul.f32 %v1472_v27, %v7068_v8 }
 0x724   :  { %v1490_v9 = vmul.f32 %v1470_v34, %v7078_v53 }
 0x725   :  { %v1515_v40 = vrot.slane %v1491_v63, 5 }
 0x726   :  { %v1513_v10 = vrot.slane %v1490_v9, 6 }
 0x728   :  { %v1514_v13 = vsel %vm643_vm6, %v1513_v10, %v1512_v12 }
 0x729   :  { %v1516_v53 = vsel %vm646_vm7, %v1515_v40, %v1514_v13 }
 0x72a   :  { %v1478_v56 = vpop.permute.xlu1 %1477  ;;  %v1518_v49 = vsel %vm649_vm8, %v1517_v47, %v1516_v53 }
 0x72b   :  { %v1494_v58 = vmul.f32 %v1478_v56, %v7094_v54  ;;  %v1476_v28 = vpop.permute.xlu0 %1475 }
 0x72c   :  { %v1493_v8 = vmul.f32 %v1476_v28, %v7097_v37 }
 0x72d   :  { %v1521_v31 = vrot.slane %v1494_v58, 2 }
 0x72e   :  { %v1519_v46 = vrot.slane %v1493_v8, 3 }
 0x730   :  { %v1520_v7 = vsel %vm652_vm9, %v1519_v46, %v1518_v49 }
 0x731   :  { %v1522_v42 = vsel %vm655_vm10, %v1521_v31, %v1520_v7 }
 0x732   :  { %1523 = vrot.lane.b32.xlu0 %v1522_v42, %s6235_s5  ;;  %v1550_v29 = vpop.permute.xlu1 %1549 }
 0x733   :  { %v7179_v17 = vsel %vm1500_vm15, %v1550_v29, %v6914_v15 }
 0x734   :  { %v1761_v27 = vrot.slane %v7179_v17, 6  ;;  %v1762_v33 = vrot.slane %v7179_v17, 7  ;;  %v1764_v34 = vrot.slane %v7179_v17, 2  ;;  %v1763_v15 = vrot.slane %v7179_v17, 1 }
 0x735   :  { %v1765_v63 = vrot.slane %v7179_v17, 3  ;;  %v1766_v9 = vrot.slane %v7179_v17, 4  ;;  %v1767_v45 = vrot.slane %v7179_v17, 5 }
 0x7a4   :  { %v1524_v25 = vpop.permute.xlu0 %1523 }
 0x7a5   :  { %v7151_v54 = vsel %vm1500_vm15, %v1524_v25, %v6896_v21 }
 0x7a6   :  { %5218 = vmatmul.msk.f32.vlgmr.msra.gmra.mxu1 %vm8912_vm0, %v7151_v54 }
 0x823   :  { %v1573_v37 = vpop.f32.mrf.mxu1 }
 0x824   :  { %v1594_v44 = vadd.f32 %v1573_v37, %v6425_v26  ;;  %v1579_v52 = vrot.slane %v1573_v37, 1  ;;  %v1578_v24 = vrot.slane %v1573_v37, 7  ;;  %v1577_v0 = vrot.slane %v1573_v37, 6 }
 0x825   :  { %v1581_v57 = vrot.slane %v1573_v37, 3  ;;  %v1580_v11 = vrot.slane %v1573_v37, 2  ;;  %v1582_v50 = vrot.slane %v1573_v37, 4  ;;  %v1583_v51 = vrot.slane %v1573_v37, 5 }
 0x826   :  { %5565 = vtanh.f32 %v1594_v44  ;;  %v7157_v43 = vadd.f32 %v1579_v52, %v6427_v30  ;;  %v1593_v55 = vadd.f32 %v1578_v24, %v6421_v22  ;;  %v1592_v21 = vadd.f32 %v1577_v0, %v6419_v19 }
 0x827   :  { %v1597_v60 = vadd.f32 %v1581_v57, %v6444_v48  ;;  %v1596_v1 = vadd.f32 %v1580_v11, %v6438_v41  ;;  %v7168_v20 = vadd.f32 %v1582_v50, %v6435_v38  ;;  %v7173_v16 = vadd.f32 %v1583_v51, %v6433_v36 }
 0x828   :  { %5567 = vtanh.f32 %v7157_v43  ;;  %v5221_v39 = vmul.f32 -1.442695, %v1594_v44  ;;  %v5219_v6 = vmul.f32 -1.442695, %v1592_v21  ;;  %v5222_v58 = vmul.f32 -1.442695, %v7157_v43 }
 0x829   :  { %5569 = vtanh.f32 %v1593_v55  ;;  %v5220_v28 = vmul.f32 -1.442695, %v1593_v55  ;;  %v5224_v46 = vmul.f32 -1.442695, %v1597_v60  ;;  %v5223_v7 = vmul.f32 -1.442695, %v1596_v1 }
 0x82a   :  { %5571 = vtanh.f32 %v1592_v21  ;;  %v5225_v57 = vmul.f32 -1.442695, %v7168_v20  ;;  %v5226_v11 = vmul.f32 -1.442695, %v7173_v16 }
 0x82b   :  { %5573 = vtanh.f32 %v1597_v60 }
 0x82c   :  { %v5566_v59 = vpop.eup %5565  ;;  %5575 = vtanh.f32 %v1596_v1 }
 0x82d   :  { %1812 = vrot.lane.b32.xlu2 %v5566_v59, %s6230_s6  ;;  %5577 = vtanh.f32 %v7168_v20 }
 0x82e   :  { %v5568_v61 = vpop.eup %5567  ;;  %5579 = vtanh.f32 %v7173_v16 }
 0x82f   :  { %1814 = vrot.lane.b32.xlu1 %v5568_v61, %s6230_s6  ;;  %v5570_v2 = vpop.eup %5569  ;;  %5581 = vpow2.f32 %v5221_v39 }
 0x830   :  { %1810 = vrot.lane.b32.xlu0 %v5570_v2, %s6230_s6  ;;  %v5572_v5 = vpop.eup %5571  ;;  %5583 = vpow2.f32 %v5219_v6 }
 0x831   :  { %v5574_v62 = vpop.eup %5573 }
 0x832   :  { %v5576_v18 = vpop.eup %5575 }
 0x833   :  { %v5578_v3 = vpop.eup %5577 }
 0x834   :  { %v5580_v32 = vpop.eup %5579 }
 0x835   :  { %1808 = vrot.lane.b32.xlu2 %v5572_v5, %s6230_s6  ;;  %v5582_v10 = vpop.eup %5581 }
 0x836   :  { %v1626_v40 = vadd.f32 1.0, %v5582_v10  ;;  %v5584_v12 = vpop.eup %5583 }
 0x837   :  { %1818 = vrot.lane.b32.xlu1 %v5574_v62, %s6230_s6  ;;  %v1624_v4 = vadd.f32 1.0, %v5584_v12 }
 0x838   :  { %1816 = vrot.lane.b32.xlu0 %v5576_v18, %s6230_s6  ;;  %5585 = vrcp.f32 %v1626_v40  ;;  %v1673_v37 = vand.u32 2147483648, %v1626_v40  ;;  %vm1667_vm2 = vweird.f32 %v1626_v40  ;;  %v1671_v44 = vand.u32 2147483647, %v1626_v40 }
 0x839   :  { %5587 = vrcp.f32 %v1624_v4  ;;  %v1643_v2 = vand.u32 2147483648, %v1624_v4  ;;  %vm1637_vm14 = vweird.f32 %v1624_v4  ;;  %v1641_v20 = vand.u32 2147483647, %v1624_v4 }
 0x83a   :  { %5589 = vpow2.f32 %v5222_v58  ;;  %v1674_v55 = vor.u32 1.1754944e-38, %v1673_v37  ;;  %vm1672_vm11 = vcmp.eq.f32.partialorder %v1671_v44, 8.507059e+37 }
 0x83b   :  { %5591 = vpow2.f32 %v5220_v28  ;;  %v1644_v29 = vor.u32 1.1754944e-38, %v1643_v2  ;;  %vm1642_vm15 = vcmp.eq.f32.partialorder %v1641_v20, 8.507059e+37 }
 0x83c   :  { %5593 = vpow2.f32 %v5224_v46 }
 0x83d   :  { %1820 = vrot.lane.b32.xlu2 %v5578_v3, %s6230_s6  ;;  %5595 = vpow2.f32 %v5223_v7 }
 0x83e   :  { %v5586_v13 = vpop.eup %5585 }
 0x83f   :  { %1768 = vrot.lane.b32.xlu1 %v1761_v27, %s6231_s23  ;;  %v1663_v56 = vmul.f32 %v5586_v13, %v1626_v40  ;;  %v5588_v53 = vpop.eup %5587  ;;  %vm1668_vm1 = vweird.f32 %v5586_v13 }
 0x840   :  { %1822 = vrot.lane.b32.xlu0 %v5580_v32, %s6230_s6  ;;  %v1633_v31 = vmul.f32 %v5588_v53, %v1624_v4  ;;  %v5590_v49 = vpop.eup %5589  ;;  %vm1669_vm3 = vmor %vm1667_vm2, %vm1668_vm1  ;;  %vm1638_vm13 = vweird.f32 %v5588_v53 }
 0x841   :  { %v1664_v8 = vsub.f32 1.0, %v1663_v56  ;;  %v5592_v25 = vpop.eup %5591  ;;  %v7201_v52 = vadd.f32 1.0, %v5590_v49  ;;  %vm1639_vm12 = vmor %vm1637_vm14, %vm1638_vm13 }
 0x842   :  { %v1634_v14 = vsub.f32 1.0, %v1633_v31  ;;  %v7203_v0 = vadd.f32 1.0, %v5592_v25  ;;  %v5594_v21 = vpop.eup %5593 }
 0x843   :  { %v1665_v47 = vmul.f32 %v5586_v13, %v1664_v8  ;;  %5597 = vrcp.f32 %v7201_v52  ;;  %v5596_v1 = vpop.eup %5595  ;;  %v7213_v51 = vadd.f32 1.0, %v5594_v21  ;;  %vm1682_vm2 = vweird.f32 %v7201_v52 }
 0x844   :  { %v1635_v43 = vmul.f32 %v5588_v53, %v1634_v14  ;;  %5599 = vrcp.f32 %v7203_v0  ;;  %v7215_v16 = vadd.f32 1.0, %v5596_v1  ;;  %v1688_v8 = vand.u32 2147483648, %v7201_v52 }
 0x845   :  { %1770 = vrot.lane.b32.xlu2 %v1762_v33, %s6231_s23  ;;  %v1666_v42 = vadd.f32 %v5586_v13, %v1665_v47  ;;  %5601 = vpow2.f32 %v5225_v57  ;;  %v1686_v31 = vand.u32 2147483647, %v7201_v52  ;;  %v1656_v7 = vand.u32 2147483647, %v7203_v0 }
 0x846   :  { %v1636_v61 = vadd.f32 %v5588_v53, %v1635_v43  ;;  %5603 = vpow2.f32 %v5226_v11  ;;  %vm1652_vm13 = vweird.f32 %v7203_v0  ;;  %v1716_v2 = vand.u32 2147483647, %v7213_v51 }
 0x847   :  { %1776 = vrot.lane.b32.xlu1 %v1764_v34, %s6231_s23  ;;  %v1670_v24 = vsel %vm1669_vm3, %v5586_v13, %v1666_v42  ;;  %5605 = vrcp.f32 %v7213_v51  ;;  %v1658_v42 = vand.u32 2147483648, %v7203_v0  ;;  %v1718_v20 = vand.u32 2147483648, %v7213_v51 }
 0x848   :  { %1774 = vrot.lane.b32.xlu0 %v1763_v15, %s6231_s23  ;;  %v7208_v60 = vsel %vm1672_vm11, %v1674_v55, %v1670_v24  ;;  %v1640_v62 = vsel %vm1639_vm12, %v5588_v53, %v1636_v61  ;;  %5607 = vrcp.f32 %v7215_v16  ;;  %vm1687_vm12 = vcmp.eq.f32.partialorder %v1686_v31, 8.507059e+37 }
 0x849   :  { %v5598_v5 = vpop.eup %5597  ;;  %v7218_v27 = vsel %vm1642_vm15, %v1644_v29, %v1640_v62  ;;  %vm1657_vm15 = vcmp.eq.f32.partialorder %v1656_v7, 8.507059e+37  ;;  %v1659_v55 = vor.u32 1.1754944e-38, %v1658_v42 }
 0x84a   :  { %v5600_v18 = vpop.eup %5599  ;;  %v1678_v32 = vmul.f32 %v5598_v5, %v7201_v52  ;;  %vm1683_vm1 = vweird.f32 %v5598_v5  ;;  %v1689_v52 = vor.u32 1.1754944e-38, %v1688_v8 }
 0x84b   :  { %v5602_v33 = vpop.eup %5601  ;;  %vm1653_vm3 = vweird.f32 %v5600_v18  ;;  %vm1684_vm11 = vmor %vm1682_vm2, %vm1683_vm1  ;;  %vm1712_vm1 = vweird.f32 %v7213_v51 }
 0x84c   :  { %v5604_v15 = vpop.eup %5603  ;;  %vm7252_vm14 = vmor %vm1652_vm13, %vm1653_vm3  ;;  %vm1697_vm13 = vweird.f32 %v7215_v16 }
 0x84d   :  { %1778 = vrot.lane.b32.xlu2 %v1765_v63, %s6231_s23  ;;  %v1648_v63 = vmul.f32 %v5600_v18, %v7203_v0  ;;  %v7227_v39 = vpop.eup %5605  ;;  %v7229_v6 = vadd.f32 1.0, %v5604_v15 }
 0x84e   :  { %v7231_v40 = vpop.eup %5607  ;;  %v1708_v4 = vmul.f32 %v7227_v39, %v7213_v51  ;;  %vm1713_vm2 = vweird.f32 %v7227_v39  ;;  %v1701_v51 = vand.u32 2147483647, %v7215_v16 }
 0x84f   :  { %1780 = vrot.lane.b32.xlu1 %v1766_v9, %s6231_s23  ;;  %v7225_v9 = vadd.f32 1.0, %v5602_v33  ;;  %v1649_v10 = vsub.f32 1.0, %v1648_v63  ;;  %v1693_v56 = vmul.f32 %v7231_v40, %v7215_v16  ;;  %vm1698_vm3 = vweird.f32 %v7231_v40 }
 0x850   :  { %1772 = vrot.lane.b32.xlu0 %v7179_v17, %s6231_s23  ;;  %v1709_v28 = vsub.f32 1.0, %v1708_v4  ;;  %v1746_v8 = vand.u32 2147483647, %v7229_v6 }
 0x851   :  { %5609 = vrcp.f32 %v7225_v9  ;;  %v1650_v13 = vmul.f32 %v5600_v18, %v1649_v10  ;;  %v1694_v46 = vsub.f32 1.0, %v1693_v56  ;;  %v1733_v56 = vand.u32 2147483648, %v7225_v9 }
 0x852   :  { %5611 = vrcp.f32 %v7229_v6  ;;  %v1710_v25 = vmul.f32 %v7227_v39, %v1709_v28  ;;  %v1731_v28 = vand.u32 2147483647, %v7225_v9 }
 0x853   :  { %v1651_v47 = vadd.f32 %v5600_v18, %v1650_v13  ;;  %v1695_v43 = vmul.f32 %v7231_v40, %v1694_v46  ;;  %v1734_v46 = vor.u32 1.1754944e-38, %v1733_v56 }
 0x855   :  { %v1655_v24 = vsel %vm7252_vm14, %v5600_v18, %v1651_v47  ;;  %v1696_v62 = vadd.f32 %v7231_v40, %v1695_v43  ;;  %v1703_v18 = vand.u32 2147483648, %v7215_v16  ;;  %vm1699_vm14 = vmor %vm1697_vm13, %vm1698_vm3  ;;  %vm1727_vm3 = vweird.f32 %v7225_v9 }
 0x856   :  { %v7267_v61 = vsel %vm1657_vm15, %v1659_v55, %v1655_v24  ;;  %vm1702_vm15 = vcmp.eq.f32.partialorder %v1701_v51, 8.507059e+37  ;;  %vm1742_vm13 = vweird.f32 %v7229_v6 }
 0x857   :  { %1782 = vrot.lane.b32.xlu1 %v1767_v45, %s6231_s23  ;;  %v1679_v45 = vsub.f32 1.0, %v1678_v32  ;;  %v7241_v53 = vpop.eup %5609  ;;  %v1719_v32 = vor.u32 1.1754944e-38, %v1718_v20  ;;  %v1704_v10 = vor.u32 1.1754944e-38, %v1703_v18 }
 0x858   :  { %v7244_v49 = vpop.eup %5611  ;;  %v1723_v37 = vmul.f32 %v7241_v53, %v7225_v9 }
 0x859   :  { %v1680_v12 = vmul.f32 %v5598_v5, %v1679_v45  ;;  %v1738_v0 = vmul.f32 %v7244_v49, %v7229_v6 }
 0x85b   :  { %v1681_v58 = vadd.f32 %v5598_v5, %v1680_v12  ;;  %v1739_v29 = vsub.f32 1.0, %v1738_v0 }
 0x85d   :  { %v1685_v14 = vsel %vm1684_vm11, %v5598_v5, %v1681_v58  ;;  %vm1714_vm11 = vmor %vm1712_vm1, %vm1713_vm2  ;;  %v1740_v15 = vmul.f32 %v7244_v49, %v1739_v29  ;;  %vm1728_vm1 = vweird.f32 %v7241_v53  ;;  %vm1743_vm2 = vweird.f32 %v7244_v49 }
 0x85e   :  { %v7261_v21 = vsel %vm1687_vm12, %v1689_v52, %v1685_v14  ;;  %vm1717_vm12 = vcmp.eq.f32.partialorder %v1716_v2, 8.507059e+37  ;;  %v1748_v58 = vand.u32 2147483648, %v7229_v6 }
 0x860   :  { %v1749_v42 = vor.u32 1.1754944e-38, %v1748_v58 }
 0x887   :  { %v1813_v59 = vpop.permute.xlu2 %1812 }
 0x888   :  { %v1834_v50 = vmul.f32 %v1813_v59, %v7208_v60  ;;  %v1711_v59 = vadd.f32 %v7227_v39, %v1710_v25 }
 0x88a   :  { %1852 = vrot.lane.b32.xlu2 %v1834_v50, %s6231_s23  ;;  %v1724_v50 = vsub.f32 1.0, %v1723_v37 }
 0x88c   :  { %v1725_v33 = vmul.f32 %v7241_v53, %v1724_v50 }
 0x88e   :  { %v1726_v4 = vadd.f32 %v7241_v53, %v1725_v33 }
 0x88f   :  { %v1809_v3 = vpop.permute.xlu2 %1808 }
 0x890   :  { %v1832_v34 = vmul.f32 %v1809_v3, %v7218_v27  ;;  %v1715_v3 = vsel %vm1714_vm11, %v7227_v39, %v1711_v59  ;;  %vm1729_vm11 = vmor %vm1727_vm3, %vm1728_vm1  ;;  %vm1928_vm1 = vcmp.ge.s32.totalorder %v7121_v35, 3 }
 0x891   :  { %v7283_v63 = vsel %vm1717_vm12, %v1719_v32, %v1715_v3  ;;  %v1730_v47 = vsel %vm1729_vm11, %v7241_v53, %v1726_v4  ;;  %vm1732_vm12 = vcmp.eq.f32.partialorder %v1731_v28, 8.507059e+37 }
 0x892   :  { %1848 = vrot.lane.b32.xlu1 %v1832_v34, %s6231_s23  ;;  %v1700_v34 = vsel %vm1699_vm14, %v7231_v40, %v1696_v62  ;;  %v1741_v40 = vadd.f32 %v7244_v49, %v1740_v15  ;;  %vm1744_vm14 = vmor %vm1742_vm13, %vm1743_vm2  ;;  %v7303_v14 = vsel %vm1732_vm12, %v1734_v46, %v1730_v47 }
 0x893   :  { %v7287_v39 = vsel %vm1702_vm15, %v1704_v10, %v1700_v34  ;;  %vm1747_vm15 = vcmp.eq.f32.partialorder %v1746_v8, 8.507059e+37 }
 0x894   :  { %v1745_v31 = vsel %vm1744_vm14, %v7244_v49, %v1741_v40 }
 0x895   :  { %v7305_v9 = vsel %vm1747_vm15, %v1749_v42, %v1745_v31  ;;  %v1929_v42 = vsel %vm1928_vm1, 1, %v6233_v23 }
 0x897   :  { %v1821_v7 = vpop.permute.xlu2 %1820 }
 0x898   :  { %v1838_v37 = vmul.f32 %v1821_v7, %v7303_v14 }
 0x89f   :  { %v1771_v6 = vpop.permute.xlu2 %1770 }
 0x8a1   :  { %v1815_v57 = vpop.permute.xlu1 %1814 }
 0x8a2   :  { %v1835_v11 = vmul.f32 %v1815_v57, %v7261_v21  ;;  %v1811_v1 = vpop.permute.xlu0 %1810 }
 0x8a3   :  { %v1833_v5 = vmul.f32 %v1811_v1, %v7267_v61  ;;  %v1793_v1 = vmul.f32 %v1771_v6, %v7267_v61 }
 0x8a4   :  { %1854 = vrot.lane.b32.xlu0 %v1835_v11, %s6231_s23 }
 0x8a5   :  { %1850 = vrot.lane.b32.xlu2 %v1833_v5, %s6231_s23 }
 0x8a7   :  { %v1779_v49 = vpop.permute.xlu2 %1778 }
 0x8a8   :  { %v1797_v15 = vmul.f32 %v1779_v49, %v7283_v63 }
 0x8a9   :  { %v1819_v45 = vpop.permute.xlu1 %1818 }
 0x8aa   :  { %v1837_v12 = vmul.f32 %v1819_v45, %v7283_v63  ;;  %v1817_v16 = vpop.permute.xlu0 %1816 }
 0x8ab   :  { %v1836_v13 = vmul.f32 %v1817_v16, %v7287_v39 }
 0x8ad   :  { %1856 = vrot.lane.b32.xlu0 %v1836_v13, %s6231_s23  ;;  %1858 = vrot.lane.b32.xlu2 %v1837_v12, %s6231_s23 }
 0x8b1   :  { %v1769_v52 = vpop.permute.xlu1 %1768 }
 0x8b2   :  { %v1823_v25 = vpop.permute.xlu0 %1822  ;;  %v1792_v5 = vmul.f32 %v1769_v52, %v7218_v27 }
 0x8b3   :  { %v1839_v44 = vmul.f32 %v1823_v25, %v7305_v9 }
 0x8b5   :  { %1860 = vrot.lane.b32.xlu0 %v1838_v37, %s6231_s23  ;;  %1862 = vrot.lane.b32.xlu1 %v1839_v44, %s6231_s23 }
 0x8b9   :  { %v1777_v57 = vpop.permute.xlu1 %1776 }
 0x8ba   :  { %v1775_v53 = vpop.permute.xlu0 %1774  ;;  %v1796_v12 = vmul.f32 %v1777_v57, %v7287_v39 }
 0x8bb   :  { %v1795_v51 = vmul.f32 %v1775_v53, %v7261_v21 }
 0x8c1   :  { %v1781_v59 = vpop.permute.xlu1 %1780 }
 0x8c2   :  { %v1773_v24 = vpop.permute.xlu0 %1772  ;;  %v1798_v40 = vmul.f32 %v1781_v59, %v7303_v14 }
 0x8c3   :  { %v1794_v43 = vmul.f32 %v1773_v24, %v7208_v60 }
 0x8c9   :  { %v1783_v50 = vpop.permute.xlu1 %1782 }
 0x8ca   :  { %v1799_v56 = vmul.f32 %v1783_v50, %v7305_v9 }
 0x8e4   :  { %v1853_v0 = vpop.permute.xlu2 %1852 }
 0x8e5   :  { %v1874_v55 = vadd.f32 %v1853_v0, %v1794_v43 }
 0x8e7   :  { %5613 = vtanh.f32 %v1874_v55 }
 0x8ed   :  { %v5614_v11 = vpop.eup %5613 }
 0x8ee   :  { %1900 = vrot.lane.b32.xlu2 %v5614_v11, %s6232_s25 }
 0x8ff   :  { %v1851_v2 = vpop.permute.xlu2 %1850 }
 0x900   :  { %v1873_v20 = vadd.f32 %v1851_v2, %v1793_v1 }
 0x902   :  { %5615 = vtanh.f32 %v1873_v20  ;;  %v1969_v7 = vrot.slane %v1873_v20, 1 }
 0x904   :  { %v1849_v62 = vpop.permute.xlu1 %1848 }
 0x905   :  { %v1872_v29 = vadd.f32 %v1849_v62, %v1792_v5 }
 0x907   :  { %5617 = vtanh.f32 %v1872_v29  ;;  %v1859_v34 = vpop.permute.xlu2 %1858  ;;  %v1968_v46 = vrot.slane %v1872_v29, 2 }
 0x908   :  { %v5616_v18 = vpop.eup %5615  ;;  %v1877_v45 = vadd.f32 %v1859_v34, %v1797_v15 }
 0x909   :  { %1898 = vrot.lane.b32.xlu0 %v5616_v18, %s6232_s25  ;;  %v1970_v25 = vsel %vm637_vm4, %v1969_v7, %v1968_v46 }
 0x90a   :  { %v1971_v53 = vsel %vm640_vm5, %v1874_v55, %v1970_v25  ;;  %v1976_v43 = vrot.slane %v1877_v45, 5 }
 0x90d   :  { %v5618_v3 = vpop.eup %5617 }
 0x90e   :  { %1896 = vrot.lane.b32.xlu2 %v5618_v3, %s6232_s25 }
 0x916   :  { %v1855_v32 = vpop.permute.xlu0 %1854 }
 0x917   :  { %v1875_v33 = vadd.f32 %v1855_v32, %v1795_v51 }
 0x919   :  { %5619 = vtanh.f32 %v1875_v33  ;;  %v1972_v37 = vrot.slane %v1875_v33, 7 }
 0x91a   :  { %5621 = vtanh.f32 %v1877_v45 }
 0x91b   :  { %v1973_v52 = vsel %vm643_vm6, %v1972_v37, %v1971_v53 }
 0x91f   :  { %v5620_v10 = vpop.eup %5619  ;;  %v1857_v16 = vpop.permute.xlu0 %1856 }
 0x920   :  { %1902 = vrot.lane.b32.xlu1 %v5620_v10, %s6232_s25  ;;  %v1876_v4 = vadd.f32 %v1857_v16, %v1796_v12  ;;  %v5622_v13 = vpop.eup %5621 }
 0x922   :  { %5623 = vtanh.f32 %v1876_v4  ;;  %v1974_v44 = vrot.slane %v1876_v4, 6 }
 0x924   :  { %v1975_v35 = vsel %vm646_vm7, %v1974_v44, %v1973_v52 }
 0x925   :  { %v1977_v57 = vsel %vm649_vm8, %v1976_v43, %v1975_v35 }
 0x927   :  { %v1861_v58 = vpop.permute.xlu0 %1860  ;;  %v1863_v28 = vpop.permute.xlu1 %1862 }
 0x928   :  { %1906 = vrot.lane.b32.xlu1 %v5622_v13, %s6232_s25  ;;  %v5624_v8 = vpop.eup %5623  ;;  %v1878_v47 = vadd.f32 %v1861_v58, %v1798_v40  ;;  %v1879_v31 = vadd.f32 %v1863_v28, %v1799_v56 }
 0x929   :  { %1904 = vrot.lane.b32.xlu0 %v5624_v8, %s6232_s25 }
 0x92a   :  { %5625 = vtanh.f32 %v1878_v47  ;;  %v1978_v24 = vrot.slane %v1878_v47, 4  ;;  %v1980_v0 = vrot.slane %v1879_v31, 3 }
 0x92b   :  { %5627 = vtanh.f32 %v1879_v31 }
 0x92c   :  { %v1979_v11 = vsel %vm652_vm9, %v1978_v24, %v1977_v57 }
 0x92d   :  { %v1981_v59 = vsel %vm655_vm10, %v1980_v0, %v1979_v11 }
 0x930   :  { %1931 = vperm.xlu1 %5352, %v1929_v42   ;;  %v5626_v6 = vpop.eup %5625 }
 0x931   :  { %v5628_v49 = vpop.eup %5627  ;;  %1908 = vrot.lane.b32.xlu2 %v5626_v6, %s6232_s25 }
 0x932   :  { %1910 = vrot.lane.b32.xlu0 %v5628_v49, %s6232_s25 }
 0x93a   :  { %1982 = vrot.lane.b32.xlu0 %v1981_v59, %s6234_s28 }
 0x948   :  { %v1901_v55 = vpop.permute.xlu2 %1900 }
 0x949   :  { %v1922_v45 = vmul.f32 %v1901_v55, %v7208_v60 }
 0x968   :  { %v1897_v2 = vpop.permute.xlu2 %1896 }
 0x969   :  { %v1920_v5 = vmul.f32 %v1897_v2, %v7218_v27 }
 0x96b   :  { %v1942_v3 = vrot.slane %v1920_v5, 2 }
 0x97b   :  { %v1899_v1 = vpop.permute.xlu0 %1898 }
 0x97c   :  { %v1921_v20 = vmul.f32 %v1899_v1, %v7267_v61 }
 0x97e   :  { %v1943_v62 = vrot.slane %v1921_v20, 1 }
 0x980   :  { %v1944_v33 = vsel %vm637_vm4, %v1943_v62, %v1942_v3 }
 0x981   :  { %v1945_v61 = vsel %vm640_vm5, %v1922_v45, %v1944_v33 }
 0x98b   :  { %v1909_v12 = vpop.permute.xlu2 %1908 }
 0x992   :  { %v1903_v50 = vpop.permute.xlu1 %1902 }
 0x993   :  { %v1923_v29 = vmul.f32 %v1903_v50, %v7261_v21  ;;  %v1926_v21 = vmul.f32 %v1909_v12, %v7303_v14 }
 0x995   :  { %v1946_v34 = vrot.slane %v1923_v29, 7  ;;  %v1952_v56 = vrot.slane %v1926_v21, 4 }
 0x997   :  { %v1947_v27 = vsel %vm643_vm6, %v1946_v34, %v1945_v61 }
 0x99a   :  { %v1907_v18 = vpop.permute.xlu1 %1906 }
 0x99b   :  { %v1905_v51 = vpop.permute.xlu0 %1904  ;;  %v1925_v15 = vmul.f32 %v1907_v18, %v7283_v63 }
 0x99c   :  { %v1924_v32 = vmul.f32 %v1905_v51, %v7287_v39 }
 0x99d   :  { %v1950_v16 = vrot.slane %v1925_v15, 5 }
 0x99e   :  { %v1948_v10 = vrot.slane %v1924_v32, 6 }
 0x9a0   :  { %v1949_v4 = vsel %vm646_vm7, %v1948_v10, %v1947_v27 }
 0x9a1   :  { %v1951_v40 = vsel %vm649_vm8, %v1950_v16, %v1949_v4 }
 0x9a2   :  { %v1953_v60 = vsel %vm652_vm9, %v1952_v56, %v1951_v40  ;;  %v1932_v28 = vpop.permute.xlu1 %1931 }
 0x9a3   :  { %vm1933_vm2 = vcmp.eq.s32.totalorder %v1932_v28, 1 }
 0x9a4   :  { %v1911_v13 = vpop.permute.xlu0 %1910 }
 0x9a5   :  { %v1927_v39 = vmul.f32 %v1911_v13, %v7305_v9 }
 0x9a7   :  { %v1954_v63 = vrot.slane %v1927_v39, 3 }
 0x9a9   :  { %v1955_v58 = vsel %vm655_vm10, %v1954_v63, %v1953_v60 }
 0x9aa   :  { %1956 = vrot.lane.b32.xlu2 %v1955_v58, %s6235_s5 }
 0x9ac   :  { %v1983_v55 = vpop.permute.xlu0 %1982 }
 0x9ad   :  { %v7384_v1 = vsel %vm1933_vm2, %v1983_v55, %v7179_v17 }
 0x9ae   :  { %v2194_v20 = vrot.slane %v7384_v1, 5  ;;  %v2196_v62 = vrot.slane %v7384_v1, 7  ;;  %v2199_v29 = vrot.slane %v7384_v1, 3  ;;  %v2195_v17 = vrot.slane %v7384_v1, 6 }
 0x9af   :  { %v2197_v18 = vrot.slane %v7384_v1, 1  ;;  %v2198_v3 = vrot.slane %v7384_v1, 2  ;;  %v2200_v32 = vrot.slane %v7384_v1, 4 }
 0xa04   :  { %v1957_v8 = vpop.permute.xlu2 %1956 }
 0xa05   :  { %v7355_v14 = vsel %vm1933_vm2, %v1957_v8, %v7151_v54 }
 0xa06   :  { %5227 = vmatmul.msk.f32.vlgmr.msrb.gmra.mxu2 %vm8912_vm0, %v7355_v14 }
 0xa89   :  { %v2006_v9 = vpop.f32.mrf.mxu2 }
 0xa8a   :  { %v2028_v47 = vadd.f32 %v2006_v9, %v6427_v30  ;;  %v2012_v31 = vrot.slane %v2006_v9, 7  ;;  %v2010_v46 = vrot.slane %v2006_v9, 5  ;;  %v2011_v42 = vrot.slane %v2006_v9, 6 }
 0xa8b   :  { %v2014_v37 = vrot.slane %v2006_v9, 2  ;;  %v2013_v44 = vrot.slane %v2006_v9, 1  ;;  %v2016_v49 = vrot.slane %v2006_v9, 4  ;;  %v2015_v0 = vrot.slane %v2006_v9, 3 }
 0xa8c   :  { %5629 = vtanh.f32 %v2028_v47  ;;  %v7361_v7 = vadd.f32 %v2012_v31, %v6425_v26  ;;  %v2025_v25 = vadd.f32 %v2010_v46, %v6419_v19  ;;  %v2026_v54 = vadd.f32 %v2011_v42, %v6421_v22 }
 0xa8d   :  { %v7368_v53 = vadd.f32 %v2014_v37, %v6444_v48  ;;  %v2029_v35 = vadd.f32 %v2013_v44, %v6438_v41  ;;  %v7375_v43 = vadd.f32 %v2016_v49, %v6433_v36  ;;  %v2031_v59 = vadd.f32 %v2015_v0, %v6435_v38 }
 0xa8e   :  { %5631 = vtanh.f32 %v7361_v7  ;;  %v5231_v51 = vmul.f32 -1.442695, %v2028_v47  ;;  %v5229_v33 = vmul.f32 -1.442695, %v2026_v54  ;;  %v5228_v27 = vmul.f32 -1.442695, %v2025_v25 }
 0xa8f   :  { %5633 = vtanh.f32 %v2025_v25  ;;  %v5230_v39 = vmul.f32 -1.442695, %v7361_v7  ;;  %v5232_v40 = vmul.f32 -1.442695, %v2029_v35  ;;  %v5233_v46 = vmul.f32 -1.442695, %v7368_v53 }
 0xa90   :  { %5635 = vtanh.f32 %v2026_v54  ;;  %v5235_v7 = vmul.f32 -1.442695, %v7375_v43  ;;  %v5234_v42 = vmul.f32 -1.442695, %v2031_v59 }
 0xa91   :  { %5637 = vtanh.f32 %v7368_v53 }
 0xa92   :  { %v5630_v6 = vpop.eup %5629  ;;  %5639 = vtanh.f32 %v2029_v35 }
 0xa93   :  { %2247 = vrot.lane.b32.xlu2 %v5630_v6, %s6230_s6  ;;  %5641 = vtanh.f32 %v7375_v43 }
 0xa94   :  { %v5632_v52 = vpop.eup %5631  ;;  %5643 = vtanh.f32 %v2031_v59 }
 0xa95   :  { %2245 = vrot.lane.b32.xlu0 %v5632_v52, %s6230_s6  ;;  %v5634_v24 = vpop.eup %5633  ;;  %5645 = vpow2.f32 %v5231_v51 }
 0xa96   :  { %2241 = vrot.lane.b32.xlu1 %v5634_v24, %s6230_s6  ;;  %v5636_v57 = vpop.eup %5635  ;;  %5647 = vpow2.f32 %v5229_v33 }
 0xa97   :  { %v5638_v11 = vpop.eup %5637 }
 0xa98   :  { %v5640_v50 = vpop.eup %5639 }
 0xa99   :  { %v5642_v2 = vpop.eup %5641 }
 0xa9a   :  { %v5644_v5 = vpop.eup %5643 }
 0xa9b   :  { %2243 = vrot.lane.b32.xlu2 %v5636_v57, %s6230_s6  ;;  %v5646_v34 = vpop.eup %5645 }
 0xa9c   :  { %v2060_v15 = vadd.f32 1.0, %v5646_v34  ;;  %v5648_v45 = vpop.eup %5647 }
 0xa9d   :  { %2251 = vrot.lane.b32.xlu0 %v5638_v11, %s6230_s6  ;;  %v2058_v10 = vadd.f32 1.0, %v5648_v45 }
 0xa9e   :  { %2249 = vrot.lane.b32.xlu1 %v5640_v50, %s6230_s6  ;;  %5649 = vrcp.f32 %v2060_v15  ;;  %v2121_v58 = vand.u32 2147483648, %v2060_v15  ;;  %vm2115_vm11 = vweird.f32 %v2060_v15  ;;  %v2119_v28 = vand.u32 2147483647, %v2060_v15 }
 0xa9f   :  { %5651 = vrcp.f32 %v2058_v10  ;;  %v2091_v52 = vand.u32 2147483648, %v2058_v10  ;;  %vm2085_vm15 = vweird.f32 %v2058_v10  ;;  %v2089_v53 = vand.u32 2147483647, %v2058_v10 }
 0xaa0   :  { %5653 = vpow2.f32 %v5228_v27  ;;  %v2122_v31 = vor.u32 1.1754944e-38, %v2121_v58  ;;  %vm2120_vm14 = vcmp.eq.f32.partialorder %v2119_v28, 8.507059e+37 }
 0xaa1   :  { %5655 = vpow2.f32 %v5230_v39  ;;  %v2092_v0 = vor.u32 1.1754944e-38, %v2091_v52  ;;  %vm2090_vm2 = vcmp.eq.f32.partialorder %v2089_v53, 8.507059e+37 }
 0xaa2   :  { %5657 = vpow2.f32 %v5232_v40 }
 0xaa3   :  { %2255 = vrot.lane.b32.xlu2 %v5642_v2, %s6230_s6 }
 0xaa4   :  { %v5650_v12 = vpop.eup %5649 }
 0xaa5   :  { %2201 = vrot.lane.b32.xlu0 %v2194_v20, %s6231_s23  ;;  %v2111_v61 = vmul.f32 %v5650_v12, %v2060_v15  ;;  %v5652_v21 = vpop.eup %5651  ;;  %vm2116_vm3 = vweird.f32 %v5650_v12 }
 0xaa6   :  { %2253 = vrot.lane.b32.xlu1 %v5644_v5, %s6230_s6  ;;  %v2081_v13 = vmul.f32 %v5652_v21, %v2058_v10  ;;  %v5654_v60 = vpop.eup %5653  ;;  %vm2117_vm13 = vmor %vm2115_vm11, %vm2116_vm3  ;;  %vm2086_vm12 = vweird.f32 %v5652_v21 }
 0xaa7   :  { %v2112_v16 = vsub.f32 1.0, %v2111_v61  ;;  %v7405_v47 = vadd.f32 1.0, %v5654_v60  ;;  %v5656_v54 = vpop.eup %5655  ;;  %vm2087_vm1 = vmor %vm2085_vm15, %vm2086_vm12 }
 0xaa8   :  { %v2082_v63 = vsub.f32 1.0, %v2081_v13  ;;  %v5658_v49 = vpop.eup %5657  ;;  %v7414_v35 = vadd.f32 1.0, %v5656_v54 }
 0xaa9   :  { %v2113_v4 = vmul.f32 %v5650_v12, %v2112_v16  ;;  %5659 = vrcp.f32 %v7405_v47  ;;  %v7416_v43 = vadd.f32 1.0, %v5658_v49  ;;  %v2076_v27 = vand.u32 2147483648, %v7405_v47 }
 0xaaa   :  { %v2083_v9 = vmul.f32 %v5652_v21, %v2082_v63  ;;  %5661 = vpow2.f32 %v5233_v46  ;;  %vm2070_vm11 = vweird.f32 %v7405_v47 }
 0xaab   :  { %2205 = vrot.lane.b32.xlu2 %v2196_v62, %s6231_s23  ;;  %v2114_v56 = vadd.f32 %v5650_v12, %v2113_v4  ;;  %5663 = vpow2.f32 %v5234_v42  ;;  %v2077_v60 = vor.u32 1.1754944e-38, %v2076_v27  ;;  %v2106_v42 = vand.u32 2147483648, %v7414_v35 }
 0xaac   :  { %v2084_v6 = vadd.f32 %v5652_v21, %v2083_v9  ;;  %5665 = vpow2.f32 %v5235_v7 }
 0xaad   :  { %2213 = vrot.lane.b32.xlu0 %v2199_v29, %s6231_s23  ;;  %v2118_v8 = vsel %vm2117_vm13, %v5650_v12, %v2114_v56  ;;  %5667 = vrcp.f32 %v7414_v35 }
 0xaae   :  { %2203 = vrot.lane.b32.xlu1 %v2195_v17, %s6231_s23  ;;  %v7409_v37 = vsel %vm2120_vm14, %v2122_v31, %v2118_v8  ;;  %v2088_v24 = vsel %vm2087_vm1, %v5652_v21, %v2084_v6  ;;  %5669 = vrcp.f32 %v7416_v43  ;;  %v2074_v21 = vand.u32 2147483647, %v7405_v47 }
 0xaaf   :  { %v5660_v57 = vpop.eup %5659  ;;  %v7418_v59 = vsel %vm2090_vm2, %v2092_v0, %v2088_v24  ;;  %vm2100_vm1 = vweird.f32 %v7414_v35  ;;  %v2134_v6 = vand.u32 2147483647, %v7416_v43 }
 0xab0   :  { %v5662_v55 = vpop.eup %5661  ;;  %v2066_v20 = vmul.f32 %v5660_v57, %v7405_v47  ;;  %vm2071_vm3 = vweird.f32 %v5660_v57  ;;  %vm2075_vm14 = vcmp.eq.f32.partialorder %v2074_v21, 8.507059e+37 }
 0xab1   :  { %v5664_v2 = vpop.eup %5663  ;;  %v7425_v62 = vadd.f32 1.0, %v5662_v55  ;;  %vm2072_vm13 = vmor %vm2070_vm11, %vm2071_vm3  ;;  %vm2130_vm3 = vweird.f32 %v7416_v43 }
 0xab2   :  { %v5666_v5 = vpop.eup %5665  ;;  %v7427_v29 = vadd.f32 1.0, %v5664_v2 }
 0xab3   :  { %2209 = vrot.lane.b32.xlu2 %v2197_v18, %s6231_s23  ;;  %v5668_v17 = vpop.eup %5667  ;;  %v7429_v18 = vadd.f32 1.0, %v5666_v5  ;;  %5671 = vrcp.f32 %v7425_v62 }
 0xab4   :  { %v5670_v51 = vpop.eup %5669  ;;  %5673 = vrcp.f32 %v7427_v29  ;;  %vm2101_vm12 = vweird.f32 %v5668_v17 }
 0xab5   :  { %5675 = vrcp.f32 %v7429_v18  ;;  %v2126_v34 = vmul.f32 %v5670_v51, %v7416_v43  ;;  %vm2131_vm15 = vweird.f32 %v5670_v51  ;;  %vm7457_vm2 = vmor %vm2100_vm1, %vm2101_vm12  ;;  %vm2145_vm12 = vweird.f32 %v7425_v62 }
 0xab6   :  { %2207 = vrot.lane.b32.xlu1 %v7384_v1, %s6231_s23  ;;  %vm2132_vm11 = vmor %vm2130_vm3, %vm2131_vm15 }
 0xab7   :  { %v2127_v12 = vsub.f32 1.0, %v2126_v34 }
 0xab9   :  { %v7436_v15 = vpop.eup %5671  ;;  %v2128_v40 = vmul.f32 %v5670_v51, %v2127_v12  ;;  %v2179_v12 = vand.u32 2147483647, %v7429_v18 }
 0xaba   :  { %v7438_v61 = vpop.eup %5673  ;;  %v2141_v4 = vmul.f32 %v7436_v15, %v7425_v62  ;;  %vm2146_vm15 = vweird.f32 %v7436_v15 }
 0xabb   :  { %2211 = vrot.lane.b32.xlu2 %v2198_v3, %s6231_s23  ;;  %v2067_v3 = vsub.f32 1.0, %v2066_v20  ;;  %v7441_v16 = vpop.eup %5675  ;;  %v2156_v56 = vmul.f32 %v7438_v61, %v7427_v29  ;;  %v2129_v31 = vadd.f32 %v5670_v51, %v2128_v40  ;;  %vm2161_vm1 = vweird.f32 %v7438_v61  ;;  %vm7489_vm3 = vmor %vm2145_vm12, %vm2146_vm15 }
 0xabc   :  { %v2171_v63 = vmul.f32 %v7441_v16, %v7429_v18  ;;  %v2142_v8 = vsub.f32 1.0, %v2141_v4 }
 0xabd   :  { %v2068_v33 = vmul.f32 %v5660_v57, %v2067_v3  ;;  %v2157_v46 = vsub.f32 1.0, %v2156_v56  ;;  %v2133_v24 = vsel %vm2132_vm11, %v5670_v51, %v2129_v31  ;;  %v2151_v51 = vand.u32 2147483648, %v7425_v62 }
 0xabe   :  { %v2172_v7 = vsub.f32 1.0, %v2171_v63  ;;  %v2143_v52 = vmul.f32 %v7436_v15, %v2142_v8  ;;  %vm2160_vm11 = vweird.f32 %v7427_v29 }
 0xabf   :  { %v2069_v10 = vadd.f32 %v5660_v57, %v2068_v33  ;;  %v2158_v0 = vmul.f32 %v7438_v61, %v2157_v46  ;;  %v2181_v33 = vand.u32 2147483648, %v7429_v18 }
 0xac1   :  { %v2073_v39 = vsel %vm2072_vm13, %v5660_v57, %v2069_v10  ;;  %v2173_v57 = vmul.f32 %v7441_v16, %v2172_v7  ;;  %v2164_v10 = vand.u32 2147483647, %v7427_v29  ;;  %v2182_v40 = vor.u32 1.1754944e-38, %v2181_v33 }
 0xac2   :  { %v7451_v28 = vsel %vm2075_vm14, %v2077_v60, %v2073_v39  ;;  %vm2135_vm14 = vcmp.eq.f32.partialorder %v2134_v6, 8.507059e+37 }
 0xac3   :  { %2215 = vrot.lane.b32.xlu2 %v2200_v32, %s6231_s23  ;;  %v2096_v32 = vmul.f32 %v5668_v17, %v7414_v35  ;;  %v2174_v3 = vadd.f32 %v7441_v16, %v2173_v57  ;;  %vm2165_vm15 = vcmp.eq.f32.partialorder %v2164_v10, 8.507059e+37 }
 0xac5   :  { %v2097_v45 = vsub.f32 1.0, %v2096_v32  ;;  %v2166_v32 = vand.u32 2147483648, %v7427_v29  ;;  %v2152_v29 = vor.u32 1.1754944e-38, %v2151_v51 }
 0xac7   :  { %v2098_v13 = vmul.f32 %v5668_v17, %v2097_v45  ;;  %v2149_v45 = vand.u32 2147483647, %v7425_v62  ;;  %v2167_v39 = vor.u32 1.1754944e-38, %v2166_v32 }
 0xac9   :  { %v2099_v9 = vadd.f32 %v5668_v17, %v2098_v13  ;;  %vm2150_vm12 = vcmp.eq.f32.partialorder %v2149_v45, 8.507059e+37 }
 0xacb   :  { %v2103_v53 = vsel %vm7457_vm2, %v5668_v17, %v2099_v9  ;;  %v2159_v17 = vadd.f32 %v7438_v61, %v2158_v0  ;;  %vm2176_vm2 = vweird.f32 %v7441_v16 }
 0xaed   :  { %v2248_v25 = vpop.permute.xlu2 %2247 }
 0xaee   :  { %v2268_v44 = vmul.f32 %v2248_v25, %v7409_v37  ;;  %v2136_v25 = vand.u32 2147483648, %v7416_v43 }
 0xaf0   :  { %2287 = vrot.lane.b32.xlu0 %v2268_v44, %s6231_s23  ;;  %v2104_v44 = vand.u32 2147483647, %v7414_v35  ;;  %v2107_v35 = vor.u32 1.1754944e-38, %v2106_v42 }
 0xaf2   :  { %vm2105_vm13 = vcmp.eq.f32.partialorder %v2104_v44, 8.507059e+37 }
 0xaf3   :  { %v7472_v43 = vsel %vm2105_vm13, %v2107_v35, %v2103_v53  ;;  %vm2175_vm13 = vweird.f32 %v7429_v18 }
 0xaf4   :  { %vm7500_vm0 = vmor %vm2175_vm13, %vm2176_vm2 }
 0xaf5   :  { %v2244_v11 = vpop.permute.xlu2 %2243  ;;  %v2178_v4 = vsel %vm7500_vm0, %v7441_v16, %v2174_v3 }
 0xaf6   :  { %v2266_v50 = vmul.f32 %v2244_v11, %v7418_v59  ;;  %v2137_v11 = vor.u32 1.1754944e-38, %v2136_v25 }
 0xaf8   :  { %2283 = vrot.lane.b32.xlu1 %v2266_v50, %s6231_s23  ;;  %v7474_v55 = vsel %vm2135_vm14, %v2137_v11, %v2133_v24  ;;  %v2144_v50 = vadd.f32 %v7436_v15, %v2143_v52  ;;  %vm2162_vm14 = vmor %vm2160_vm11, %vm2161_vm1  ;;  %vm2180_vm1 = vcmp.eq.f32.partialorder %v2179_v12, 8.507059e+37 }
 0xaf9   :  { %v2163_v21 = vsel %vm2162_vm14, %v7438_v61, %v2159_v17 }
 0xafa   :  { %v2148_v62 = vsel %vm7489_vm3, %v7436_v15, %v2144_v50  ;;  %v7513_v63 = vsel %vm2165_vm15, %v2167_v39, %v2163_v21  ;;  %v7515_v15 = vsel %vm2180_vm1, %v2182_v40, %v2178_v4  ;;  %vm8953_vm3 = vcmask 130048  }
 0xafb   :  { %v7511_v56 = vsel %vm2150_vm12, %v2152_v29, %v2148_v62 }
 0xafd   :  { %v2256_v18 = vpop.permute.xlu2 %2255 }
 0xafe   :  { %v2272_v16 = vmul.f32 %v2256_v18, %v7515_v15 }
 0xb05   :  { %v2206_v25 = vpop.permute.xlu2 %2205 }
 0xb06   :  { %v2227_v50 = vmul.f32 %v2206_v25, %v7472_v43  ;;  %v7547_v25 = vld [vmem:[%s8924_s7] sm:$0xff] }
 0xb07   :  { %v2246_v49 = vpop.permute.xlu0 %2245  ;;  %vm2361_vm0 = vcmp.ge.s32.totalorder %v7547_v25, 4 }
 0xb08   :  { %v2242_v58 = vpop.permute.xlu1 %2241  ;;  %v2267_v20 = vmul.f32 %v2246_v49, %v7472_v43 }
 0xb09   :  { %v2265_v47 = vmul.f32 %v2242_v58, %v7451_v28 }
 0xb0b   :  { %2281 = vrot.lane.b32.xlu0 %v2265_v47, %s6231_s23 }
 0xb0d   :  { %v2210_v52 = vpop.permute.xlu2 %2209 }
 0xb0f   :  { %v2252_v13 = vpop.permute.xlu0 %2251 }
 0xb10   :  { %v2250_v2 = vpop.permute.xlu1 %2249  ;;  %v2270_v61 = vmul.f32 %v2252_v13, %v7511_v56 }
 0xb11   :  { %v2269_v5 = vmul.f32 %v2250_v2, %v7474_v55  ;;  %v2229_v2 = vmul.f32 %v2210_v52, %v7474_v55 }
 0xb13   :  { %2289 = vrot.lane.b32.xlu1 %v2269_v5, %s6231_s23  ;;  %2285 = vrot.lane.b32.xlu0 %v2267_v20, %s6231_s23 }
 0xb15   :  { %v2212_v24 = vpop.permute.xlu2 %2211 }
 0xb16   :  { %v2230_v45 = vmul.f32 %v2212_v24, %v7511_v56 }
 0xb17   :  { %v2202_v8 = vpop.permute.xlu0 %2201 }
 0xb18   :  { %v2254_v60 = vpop.permute.xlu1 %2253  ;;  %v2225_v0 = vmul.f32 %v2202_v8, %v7451_v28 }
 0xb19   :  { %v2271_v58 = vmul.f32 %v2254_v60, %v7513_v63 }
 0xb1b   :  { %2291 = vrot.lane.b32.xlu1 %v2270_v61, %s6231_s23  ;;  %2293 = vrot.lane.b32.xlu2 %v2271_v58, %s6231_s23 }
 0xb1c   :  { %2295 = vrot.lane.b32.xlu0 %v2272_v16, %s6231_s23 }
 0xb1d   :  { %v2216_v11 = vpop.permute.xlu2 %2215 }
 0xb1e   :  { %v2232_v10 = vmul.f32 %v2216_v11, %v7515_v15 }
 0xb1f   :  { %v2214_v47 = vpop.permute.xlu0 %2213 }
 0xb20   :  { %v2204_v9 = vpop.permute.xlu1 %2203  ;;  %v2231_v33 = vmul.f32 %v2214_v47, %v7513_v63 }
 0xb21   :  { %v2226_v54 = vmul.f32 %v2204_v9, %v7418_v59 }
 0xb28   :  { %v2208_v31 = vpop.permute.xlu1 %2207 }
 0xb29   :  { %v2228_v46 = vmul.f32 %v2208_v31, %v7409_v37 }
 0xb62   :  { %v2288_v7 = vpop.permute.xlu0 %2287 }
 0xb63   :  { %v2308_v42 = vadd.f32 %v2288_v7, %v2228_v46 }
 0xb65   :  { %5677 = vtanh.f32 %v2308_v42 }
 0xb6a   :  { %v2284_v44 = vpop.permute.xlu1 %2283 }
 0xb6b   :  { %v5678_v6 = vpop.eup %5677  ;;  %v2306_v49 = vadd.f32 %v2284_v44, %v2226_v54  ;;  %v2362_v44 = vsel %vm2361_vm0, 1, %v6233_v23 }
 0xb6c   :  { %2335 = vrot.lane.b32.xlu2 %v5678_v6, %s6232_s25 }
 0xb6d   :  { %5679 = vtanh.f32 %v2306_v49  ;;  %v2402_v39 = vrot.slane %v2306_v49, 2 }
 0xb73   :  { %v5680_v53 = vpop.eup %5679 }
 0xb74   :  { %2331 = vrot.lane.b32.xlu2 %v5680_v53, %s6232_s25 }
 0xb75   :  { %v2294_v32 = vpop.permute.xlu2 %2293 }
 0xb76   :  { %v2311_v34 = vadd.f32 %v2294_v32, %v2231_v33 }
 0xb78   :  { %v2411_v7 = vrot.slane %v2311_v34, 5 }
 0xb7d   :  { %v2282_v57 = vpop.permute.xlu0 %2281 }
 0xb7e   :  { %v2305_v35 = vadd.f32 %v2282_v57, %v2225_v0 }
 0xb80   :  { %5681 = vtanh.f32 %v2305_v35  ;;  %v2401_v12 = vrot.slane %v2305_v35, 3 }
 0xb82   :  { %v2403_v18 = vsel %vm637_vm4, %v2402_v39, %v2401_v12 }
 0xb85   :  { %v2290_v20 = vpop.permute.xlu1 %2289  ;;  %v2286_v5 = vpop.permute.xlu0 %2285 }
 0xb86   :  { %v5682_v17 = vpop.eup %5681  ;;  %v2309_v3 = vadd.f32 %v2290_v20, %v2229_v2  ;;  %v2307_v51 = vadd.f32 %v2286_v5, %v2227_v50 }
 0xb87   :  { %2329 = vrot.lane.b32.xlu1 %v5682_v17, %s6232_s25 }
 0xb88   :  { %5683 = vtanh.f32 %v2309_v3  ;;  %v2404_v21 = vrot.slane %v2307_v51, 1  ;;  %v2407_v9 = vrot.slane %v2309_v3, 7 }
 0xb89   :  { %5685 = vtanh.f32 %v2307_v51 }
 0xb8a   :  { %5687 = vtanh.f32 %v2311_v34  ;;  %v2405_v60 = vsel %vm640_vm5, %v2404_v21, %v2403_v18 }
 0xb8b   :  { %v2406_v58 = vsel %vm643_vm6, %v2308_v42, %v2405_v60 }
 0xb8c   :  { %v2408_v31 = vsel %vm646_vm7, %v2407_v9, %v2406_v58 }
 0xb8d   :  { %v2292_v27 = vpop.permute.xlu1 %2291 }
 0xb8e   :  { %v5684_v62 = vpop.eup %5683  ;;  %v2310_v4 = vadd.f32 %v2292_v27, %v2230_v45  ;;  %v2296_v29 = vpop.permute.xlu0 %2295 }
 0xb8f   :  { %v5686_v13 = vpop.eup %5685  ;;  %v2312_v40 = vadd.f32 %v2296_v29, %v2232_v10  ;;  %2337 = vrot.lane.b32.xlu1 %v5684_v62, %s6232_s25 }
 0xb90   :  { %5689 = vtanh.f32 %v2310_v4  ;;  %2333 = vrot.lane.b32.xlu0 %v5686_v13, %s6232_s25  ;;  %v5688_v61 = vpop.eup %5687  ;;  %v2409_v16 = vrot.slane %v2310_v4, 6 }
 0xb91   :  { %5691 = vtanh.f32 %v2312_v40  ;;  %v2413_v54 = vrot.slane %v2312_v40, 4 }
 0xb92   :  { %v2410_v46 = vsel %vm649_vm8, %v2409_v16, %v2408_v31 }
 0xb93   :  { %v2412_v42 = vsel %vm652_vm9, %v2411_v7, %v2410_v46 }
 0xb94   :  { %v2414_v6 = vsel %vm655_vm10, %v2413_v54, %v2412_v42 }
 0xb96   :  { %v5690_v8 = vpop.eup %5689 }
 0xb97   :  { %v5692_v47 = vpop.eup %5691  ;;  %2341 = vrot.lane.b32.xlu1 %v5688_v61, %s6232_s25 }
 0xb98   :  { %2339 = vrot.lane.b32.xlu0 %v5690_v8, %s6232_s25  ;;  %2343 = vrot.lane.b32.xlu2 %v5692_v47, %s6232_s25 }
 0xba0   :  { %2364 = vperm.xlu0 %5350, %v2362_v44   ;;  %2415 = vrot.lane.b32.xlu2 %v2414_v6, %s6234_s28 }
 0xbc6   :  { %v2336_v49 = vpop.permute.xlu2 %2335 }
 0xbc7   :  { %v2356_v32 = vmul.f32 %v2336_v49, %v7409_v37 }
 0xbce   :  { %v2332_v53 = vpop.permute.xlu2 %2331 }
 0xbcf   :  { %v2354_v0 = vmul.f32 %v2332_v53, %v7418_v59 }
 0xbd1   :  { %v2376_v2 = vrot.slane %v2354_v0, 2 }
 0xbf2   :  { %v2344_v17 = vpop.permute.xlu2 %2343 }
 0xbf3   :  { %v2360_v34 = vmul.f32 %v2344_v17, %v7515_v15 }
 0xbf5   :  { %v2387_v21 = vrot.slane %v2360_v34, 4 }
 0xbf9   :  { %v2330_v52 = vpop.permute.xlu1 %2329 }
 0xbfa   :  { %v2353_v24 = vmul.f32 %v2330_v52, %v7451_v28  ;;  %v2416_v53 = vpop.permute.xlu2 %2415 }
 0xbfc   :  { %v2375_v11 = vrot.slane %v2353_v24, 3 }
 0xbfe   :  { %v2377_v5 = vsel %vm637_vm4, %v2376_v2, %v2375_v11 }
 0xc01   :  { %v2338_v57 = vpop.permute.xlu1 %2337 }
 0xc02   :  { %v2334_v35 = vpop.permute.xlu0 %2333  ;;  %v2357_v51 = vmul.f32 %v2338_v57, %v7474_v55 }
 0xc03   :  { %v2355_v50 = vmul.f32 %v2334_v35, %v7472_v43 }
 0xc04   :  { %v2381_v10 = vrot.slane %v2357_v51, 7 }
 0xc05   :  { %v2378_v20 = vrot.slane %v2355_v50, 1 }
 0xc07   :  { %v2379_v3 = vsel %vm640_vm5, %v2378_v20, %v2377_v5 }
 0xc08   :  { %v2380_v45 = vsel %vm643_vm6, %v2356_v32, %v2379_v3 }
 0xc09   :  { %v2342_v33 = vpop.permute.xlu1 %2341  ;;  %v2382_v62 = vsel %vm646_vm7, %v2381_v10, %v2380_v45 }
 0xc0a   :  { %v2340_v28 = vpop.permute.xlu0 %2339  ;;  %v2359_v59 = vmul.f32 %v2342_v33, %v7513_v63 }
 0xc0b   :  { %v2358_v43 = vmul.f32 %v2340_v28, %v7511_v56 }
 0xc0c   :  { %v2385_v12 = vrot.slane %v2359_v59, 5 }
 0xc0d   :  { %v2383_v27 = vrot.slane %v2358_v43, 6 }
 0xc0f   :  { %v2384_v55 = vsel %vm649_vm8, %v2383_v27, %v2382_v62 }
 0xc10   :  { %v2386_v37 = vsel %vm652_vm9, %v2385_v12, %v2384_v55 }
 0xc11   :  { %v2388_v4 = vsel %vm655_vm10, %v2387_v21, %v2386_v37 }
 0xc12   :  { %2389 = vrot.lane.b32.xlu1 %v2388_v4, %s6235_s5  ;;  %v2365_v63 = vpop.permute.xlu0 %2364 }
 0xc13   :  { %vm2366_vm2 = vcmp.eq.s32.totalorder %v2365_v63, 1 }
 0xc14   :  { %v7595_v24 = vsel %vm2366_vm2, %v2416_v53, %v7384_v1 }
 0xc15   :  { %v2627_v0 = vrot.slane %v7595_v24, 4  ;;  %v2630_v11 = vrot.slane %v7595_v24, 7  ;;  %v2628_v50 = vrot.slane %v7595_v24, 5  ;;  %v2629_v1 = vrot.slane %v7595_v24, 6 }
 0xc16   :  { %v2631_v2 = vrot.slane %v7595_v24, 1  ;;  %v2633_v20 = vrot.slane %v7595_v24, 3  ;;  %v2632_v5 = vrot.slane %v7595_v24, 2 }
 0xc84   :  { %v2390_v15 = vpop.permute.xlu1 %2389 }
 0xc85   :  { %v7572_v56 = vsel %vm2366_vm2, %v2390_v15, %v7355_v14 }
 0xc86   :  { %5236 = vmatmul.msk.f32.vlgmr.msrb.gmra.mxu3 %vm8953_vm3, %v7572_v56 }
 0xd09   :  { %v2439_v29 = vpop.f32.mrf.mxu3 }
 0xd0a   :  { %v2443_v13 = vrot.slane %v2439_v29, 4  ;;  %v2444_v39 = vrot.slane %v2439_v29, 5  ;;  %v7577_v40 = vadd.f32 %v2439_v29, %v6438_v41  ;;  %v2445_v61 = vrot.slane %v2439_v29, 6 }
 0xd0b   :  { %v2446_v58 = vrot.slane %v2439_v29, 7  ;;  %v2447_v14 = vrot.slane %v2439_v29, 1  ;;  %v2448_v7 = vrot.slane %v2439_v29, 2  ;;  %v2449_v42 = vrot.slane %v2439_v29, 3 }
 0xd0c   :  { %v2458_v18 = vadd.f32 %v2443_v13, %v6419_v19  ;;  %v2459_v60 = vadd.f32 %v2444_v39, %v6421_v22  ;;  %5693 = vtanh.f32 %v7577_v40  ;;  %v2460_v16 = vadd.f32 %v2445_v61, %v6425_v26 }
 0xd0d   :  { %v2461_v8 = vadd.f32 %v2446_v58, %v6427_v30  ;;  %v2463_v47 = vadd.f32 %v2447_v14, %v6444_v48  ;;  %v2464_v54 = vadd.f32 %v2448_v7, %v6435_v38  ;;  %v2465_v6 = vadd.f32 %v2449_v42, %v6433_v36 }
 0xd0e   :  { %5695 = vtanh.f32 %v2458_v18  ;;  %v5239_v17 = vmul.f32 -1.442695, %v2460_v16  ;;  %v5237_v32 = vmul.f32 -1.442695, %v2458_v18  ;;  %v5238_v33 = vmul.f32 -1.442695, %v2459_v60 }
 0xd0f   :  { %5697 = vtanh.f32 %v2459_v60  ;;  %v5241_v59 = vmul.f32 -1.442695, %v7577_v40  ;;  %v5240_v34 = vmul.f32 -1.442695, %v2461_v8  ;;  %v5242_v45 = vmul.f32 -1.442695, %v2463_v47 }
 0xd10   :  { %5699 = vtanh.f32 %v2460_v16  ;;  %v5243_v37 = vmul.f32 -1.442695, %v2464_v54  ;;  %v5244_v15 = vmul.f32 -1.442695, %v2465_v6 }
 0xd11   :  { %5701 = vtanh.f32 %v2461_v8 }
 0xd12   :  { %v5694_v9 = vpop.eup %5693  ;;  %5703 = vtanh.f32 %v2463_v47 }
 0xd13   :  { %2682 = vrot.lane.b32.xlu2 %v5694_v9, %s6230_s6  ;;  %5705 = vtanh.f32 %v2464_v54 }
 0xd14   :  { %v5696_v31 = vpop.eup %5695  ;;  %5707 = vtanh.f32 %v2465_v6 }
 0xd15   :  { %v5698_v46 = vpop.eup %5697  ;;  %2674 = vrot.lane.b32.xlu0 %v5696_v31, %s6230_s6  ;;  %5709 = vpow2.f32 %v5239_v17 }
 0xd16   :  { %2676 = vrot.lane.b32.xlu1 %v5698_v46, %s6230_s6  ;;  %v5700_v44 = vpop.eup %5699 }
 0xd17   :  { %v5702_v49 = vpop.eup %5701 }
 0xd18   :  { %v5704_v52 = vpop.eup %5703 }
 0xd19   :  { %v5706_v57 = vpop.eup %5705 }
 0xd1a   :  { %v5708_v35 = vpop.eup %5707 }
 0xd1b   :  { %2678 = vrot.lane.b32.xlu2 %v5700_v44, %s6230_s6  ;;  %v5710_v3 = vpop.eup %5709 }
 0xd1c   :  { %v2492_v51 = vadd.f32 1.0, %v5710_v3 }
 0xd1d   :  { %2680 = vrot.lane.b32.xlu0 %v5702_v49, %s6230_s6 }
 0xd1e   :  { %2684 = vrot.lane.b32.xlu1 %v5704_v52, %s6230_s6  ;;  %5711 = vrcp.f32 %v2492_v51  ;;  %v2539_v61 = vand.u32 2147483648, %v2492_v51  ;;  %vm2533_vm13 = vweird.f32 %v2492_v51  ;;  %v2537_v14 = vand.u32 2147483647, %v2492_v51 }
 0xd1f   :  { %5713 = vpow2.f32 %v5237_v32 }
 0xd20   :  { %5715 = vpow2.f32 %v5238_v33  ;;  %v2540_v47 = vor.u32 1.1754944e-38, %v2539_v61  ;;  %vm2538_vm12 = vcmp.eq.f32.partialorder %v2537_v14, 8.507059e+37 }
 0xd21   :  { %5717 = vpow2.f32 %v5241_v59 }
 0xd22   :  { %5719 = vpow2.f32 %v5240_v34 }
 0xd23   :  { %2634 = vrot.lane.b32.xlu2 %v2627_v0, %s6231_s23  ;;  %5721 = vpow2.f32 %v5242_v45 }
 0xd24   :  { %v5712_v28 = vpop.eup %5711 }
 0xd25   :  { %2686 = vrot.lane.b32.xlu0 %v5706_v57, %s6230_s6  ;;  %v2529_v43 = vmul.f32 %v5712_v28, %v2492_v51  ;;  %v5714_v10 = vpop.eup %5713  ;;  %vm2534_vm11 = vweird.f32 %v5712_v28 }
 0xd26   :  { %2688 = vrot.lane.b32.xlu1 %v5708_v35, %s6230_s6  ;;  %v5716_v12 = vpop.eup %5715  ;;  %v7616_v62 = vadd.f32 1.0, %v5714_v10  ;;  %vm2535_vm14 = vmor %vm2533_vm13, %vm2534_vm11 }
 0xd27   :  { %v2530_v27 = vsub.f32 1.0, %v2529_v43  ;;  %v7618_v21 = vadd.f32 1.0, %v5716_v12  ;;  %v5718_v55 = vpop.eup %5717 }
 0xd28   :  { %v5720_v4 = vpop.eup %5719  ;;  %5723 = vrcp.f32 %v7616_v62  ;;  %v7622_v13 = vadd.f32 1.0, %v5718_v55  ;;  %v2507_v33 = vand.u32 2147483647, %v7616_v62  ;;  %vm2503_vm2 = vweird.f32 %v7616_v62 }
 0xd29   :  { %v2531_v63 = vmul.f32 %v5712_v28, %v2530_v27  ;;  %v5722_v29 = vpop.eup %5721  ;;  %5725 = vrcp.f32 %v7618_v21  ;;  %v7626_v40 = vadd.f32 1.0, %v5720_v4  ;;  %v2522_v45 = vand.u32 2147483647, %v7618_v21 }
 0xd2a   :  { %5727 = vpow2.f32 %v5243_v37  ;;  %v7628_v60 = vadd.f32 1.0, %v5722_v29  ;;  %vm2563_vm0 = vweird.f32 %v7622_v13  ;;  %v2524_v43 = vand.u32 2147483648, %v7618_v21 }
 0xd2b   :  { %2640 = vrot.lane.b32.xlu2 %v2630_v11, %s6231_s23  ;;  %v2532_v18 = vadd.f32 %v5712_v28, %v2531_v63  ;;  %5729 = vpow2.f32 %v5244_v15  ;;  %v2569_v12 = vand.u32 2147483648, %v7622_v13  ;;  %vm2518_vm11 = vweird.f32 %v7618_v21 }
 0xd2c   :  { %5731 = vrcp.f32 %v7622_v13  ;;  %vm2548_vm13 = vweird.f32 %v7626_v40 }
 0xd2d   :  { %2636 = vrot.lane.b32.xlu0 %v2628_v50, %s6231_s23  ;;  %5733 = vrcp.f32 %v7626_v40  ;;  %v2536_v8 = vsel %vm2535_vm14, %v5712_v28, %v2532_v18  ;;  %v2509_v28 = vand.u32 2147483648, %v7616_v62  ;;  %v2525_v18 = vor.u32 1.1754944e-38, %v2524_v43 }
 0xd2e   :  { %2638 = vrot.lane.b32.xlu1 %v2629_v1, %s6231_s23  ;;  %v7630_v58 = vpop.eup %5723  ;;  %5735 = vrcp.f32 %v7628_v60  ;;  %v7641_v54 = vsel %vm2538_vm12, %v2540_v47, %v2536_v8  ;;  %vm2508_vm12 = vcmp.eq.f32.partialorder %v2507_v33, 8.507059e+37 }
 0xd2f   :  { %v7633_v16 = vpop.eup %5725  ;;  %v2499_v31 = vmul.f32 %v7630_v58, %v7616_v62  ;;  %vm2504_vm15 = vweird.f32 %v7630_v58  ;;  %v2510_v15 = vor.u32 1.1754944e-38, %v2509_v28 }
 0xd30   :  { %v5728_v9 = vpop.eup %5727  ;;  %v2514_v7 = vmul.f32 %v7633_v16, %v7618_v21  ;;  %vm2519_vm1 = vweird.f32 %v7633_v16  ;;  %vm7681_vm3 = vmor %vm2503_vm2, %vm2504_vm15  ;;  %vm2523_vm2 = vcmp.eq.f32.partialorder %v2522_v45, 8.507059e+37 }
 0xd31   :  { %v5730_v46 = vpop.eup %5729  ;;  %v7646_v49 = vadd.f32 1.0, %v5728_v9  ;;  %v2500_v53 = vsub.f32 1.0, %v2499_v31  ;;  %vm7691_vm14 = vmor %vm2518_vm11, %vm2519_vm1 }
 0xd32   :  { %v7643_v44 = vpop.eup %5731  ;;  %v7650_v0 = vadd.f32 1.0, %v5730_v46  ;;  %v2515_v35 = vsub.f32 1.0, %v2514_v7 }
 0xd33   :  { %2642 = vrot.lane.b32.xlu2 %v7595_v24, %s6231_s23  ;;  %v7648_v52 = vpop.eup %5733  ;;  %v2559_v11 = vmul.f32 %v7643_v44, %v7622_v13  ;;  %5737 = vrcp.f32 %v7646_v49  ;;  %v2501_v1 = vmul.f32 %v7630_v58, %v2500_v53  ;;  %vm2564_vm15 = vweird.f32 %v7643_v44 }
 0xd34   :  { %v7652_v57 = vpop.eup %5735  ;;  %v2544_v50 = vmul.f32 %v7648_v52, %v7626_v40  ;;  %5739 = vrcp.f32 %v7650_v0  ;;  %vm2549_vm1 = vweird.f32 %v7648_v52  ;;  %vm7716_vm11 = vmor %vm2563_vm0, %vm2564_vm15  ;;  %v2584_v53 = vand.u32 2147483648, %v7628_v60 }
 0xd35   :  { %2644 = vrot.lane.b32.xlu0 %v2631_v2, %s6231_s23  ;;  %v2574_v2 = vmul.f32 %v7652_v57, %v7628_v60  ;;  %v2502_v3 = vadd.f32 %v7630_v58, %v2501_v1  ;;  %v2552_v1 = vand.u32 2147483647, %v7626_v40  ;;  %vm2578_vm0 = vweird.f32 %v7628_v60 }
 0xd36   :  { %2648 = vrot.lane.b32.xlu1 %v2633_v20, %s6231_s23  ;;  %v2516_v20 = vmul.f32 %v7633_v16, %v2515_v35  ;;  %v2545_v17 = vsub.f32 1.0, %v2544_v50  ;;  %v2599_v27 = vand.u32 2147483648, %v7646_v49 }
 0xd37   :  { %v2575_v51 = vsub.f32 1.0, %v2574_v2  ;;  %v2506_v62 = vsel %vm7681_vm3, %v7630_v58, %v2502_v3  ;;  %vm2579_vm3 = vweird.f32 %v7652_v57  ;;  %v2582_v2 = vand.u32 2147483647, %v7628_v60 }
 0xd38   :  { %v2517_v59 = vadd.f32 %v7633_v16, %v2516_v20  ;;  %v2546_v55 = vmul.f32 %v7648_v52, %v2545_v17  ;;  %v7706_v58 = vsel %vm2508_vm12, %v2510_v15, %v2506_v62  ;;  %vm2580_vm12 = vmor %vm2578_vm0, %vm2579_vm3  ;;  %v2570_v17 = vor.u32 1.1754944e-38, %v2569_v12 }
 0xd39   :  { %v7667_v32 = vpop.eup %5737  ;;  %v2576_v4 = vmul.f32 %v7652_v57, %v2575_v51  ;;  %v2585_v60 = vor.u32 1.1754944e-38, %v2584_v53  ;;  %vm2553_vm15 = vcmp.eq.f32.partialorder %v2552_v1, 8.507059e+37  ;;  %v2612_v62 = vand.u32 2147483647, %v7650_v0 }
 0xd3a   :  { %v7673_v34 = vpop.eup %5739  ;;  %v2589_v63 = vmul.f32 %v7667_v32, %v7646_v49  ;;  %v2521_v21 = vsel %vm7691_vm14, %v7633_v16, %v2517_v59  ;;  %v2547_v14 = vadd.f32 %v7648_v52, %v2546_v55  ;;  %vm7728_vm14 = vmor %vm2548_vm13, %vm2549_vm1  ;;  %vm2583_vm1 = vcmp.eq.f32.partialorder %v2582_v2, 8.507059e+37 }
 0xd3b   :  { %v2604_v29 = vmul.f32 %v7673_v34, %v7650_v0  ;;  %v7710_v16 = vsel %vm2523_vm2, %v2525_v18, %v2521_v21  ;;  %v2577_v31 = vadd.f32 %v7652_v57, %v2576_v4  ;;  %vm2594_vm2 = vweird.f32 %v7667_v32 }
 0xd3c   :  { %v2590_v46 = vsub.f32 1.0, %v2589_v63  ;;  %v2551_v20 = vsel %vm7728_vm14, %v7648_v52, %v2547_v14  ;;  %vm2609_vm3 = vweird.f32 %v7673_v34  ;;  %v2614_v55 = vand.u32 2147483648, %v7650_v0 }
 0xd3d   :  { %2646 = vrot.lane.b32.xlu0 %v2632_v5, %s6231_s23  ;;  %v2560_v5 = vsub.f32 1.0, %v2559_v11  ;;  %v2605_v35 = vsub.f32 1.0, %v2604_v29  ;;  %v2567_v11 = vand.u32 2147483647, %v7622_v13  ;;  %vm2608_vm14 = vweird.f32 %v7650_v0 }
 0xd3e   :  { %v2600_v63 = vor.u32 1.1754944e-38, %v2599_v27  ;;  %v2615_v15 = vor.u32 1.1754944e-38, %v2614_v55 }
 0xd3f   :  { %v2561_v10 = vmul.f32 %v7643_v44, %v2560_v5  ;;  %v2591_v5 = vmul.f32 %v7667_v32, %v2590_v46  ;;  %v2606_v51 = vmul.f32 %v7673_v34, %v2605_v35  ;;  %vm2568_vm13 = vcmp.eq.f32.partialorder %v2567_v11, 8.507059e+37 }
 0xd41   :  { %v2562_v61 = vadd.f32 %v7643_v44, %v2561_v10  ;;  %v2592_v43 = vadd.f32 %v7667_v32, %v2591_v5  ;;  %v2607_v12 = vadd.f32 %v7673_v34, %v2606_v51 }
 0xd43   :  { %v2566_v13 = vsel %vm7716_vm11, %v7643_v44, %v2562_v61  ;;  %vm2593_vm11 = vweird.f32 %v7646_v49 }
 0xd44   :  { %v7748_v33 = vsel %vm2568_vm13, %v2570_v17, %v2566_v13  ;;  %vm2595_vm0 = vmor %vm2593_vm11, %vm2594_vm2 }
 0xd45   :  { %v2596_v37 = vsel %vm2595_vm0, %v7667_v32, %v2592_v43 }
 0xd6d   :  { %v7624_v39 = vpop.permute.xlu2 %2682 }
 0xd6e   :  { %v2702_v52 = vmul.f32 %v7624_v39, %v7748_v33  ;;  %v2597_v39 = vand.u32 2147483647, %v7646_v49 }
 0xd70   :  { %vm2598_vm13 = vcmp.eq.f32.partialorder %v2597_v39, 8.507059e+37 }
 0xd71   :  { %v7773_v21 = vsel %vm2598_vm13, %v2600_v63, %v2596_v37 }
 0xd75   :  { %v2679_v42 = vpop.permute.xlu2 %2678 }
 0xd76   :  { %v2700_v6 = vmul.f32 %v2679_v42, %v7641_v54  ;;  %v2554_v42 = vand.u32 2147483648, %v7626_v40  ;;  %v2581_v40 = vsel %vm2580_vm12, %v7652_v57, %v2577_v31  ;;  %vm2610_vm12 = vmor %vm2608_vm14, %vm2609_vm3  ;;  %vm8962_vm3 = vcmask 130048  }
 0xd77   :  { %v7752_v44 = vsel %vm2583_vm1, %v2585_v60, %v2581_v40  ;;  %v2611_v4 = vsel %vm2610_vm12, %v7673_v34, %v2607_v12  ;;  %vm2794_vm1 = vcmp.ge.s32.totalorder %v7547_v25, 5 }
 0xd78   :  { %2718 = vrot.lane.b32.xlu2 %v2700_v6, %s6231_s23  ;;  %v2555_v3 = vor.u32 1.1754944e-38, %v2554_v42 }
 0xd7a   :  { %v7750_v28 = vsel %vm2553_vm15, %v2555_v3, %v2551_v20  ;;  %vm2613_vm15 = vcmp.eq.f32.partialorder %v2612_v62, 8.507059e+37 }
 0xd7b   :  { %v7775_v29 = vsel %vm2613_vm15, %v2615_v15, %v2611_v4 }
 0xd7d   :  { %v2635_v32 = vpop.permute.xlu2 %2634 }
 0xd7e   :  { %v2658_v35 = vmul.f32 %v2635_v32, %v7706_v58  ;;  %v2795_v32 = vsel %vm2794_vm1, 1, %v6233_v23 }
 0xd85   :  { %v2641_v34 = vpop.permute.xlu2 %2640 }
 0xd86   :  { %v2661_v3 = vmul.f32 %v2641_v34, %v7750_v28 }
 0xd87   :  { %v2675_v8 = vpop.permute.xlu0 %2674 }
 0xd88   :  { %v2677_v9 = vpop.permute.xlu1 %2676  ;;  %v2698_v47 = vmul.f32 %v2675_v8, %v7706_v58 }
 0xd89   :  { %v2699_v6 = vmul.f32 %v2677_v9, %v7710_v16 }
 0xd8a   :  { %2714 = vrot.lane.b32.xlu0 %v2698_v47, %s6231_s23 }
 0xd8b   :  { %2716 = vrot.lane.b32.xlu1 %v2699_v6, %s6231_s23 }
 0xd8d   :  { %v2643_v14 = vpop.permute.xlu2 %2642 }
 0xd8e   :  { %v2662_v17 = vmul.f32 %v2643_v14, %v7748_v33 }
 0xd8f   :  { %v2681_v59 = vpop.permute.xlu0 %2680 }
 0xd90   :  { %v2685_v57 = vpop.permute.xlu1 %2684  ;;  %v2701_v45 = vmul.f32 %v2681_v59, %v7750_v28 }
 0xd91   :  { %v2703_v10 = vmul.f32 %v2685_v57, %v7752_v44 }
 0xd92   :  { %2722 = vrot.lane.b32.xlu0 %v2702_v52, %s6231_s23 }
 0xd93   :  { %2724 = vrot.lane.b32.xlu2 %v2703_v10, %s6231_s23  ;;  %2720 = vrot.lane.b32.xlu1 %v2701_v45, %s6231_s23 }
 0xd97   :  { %v2687_v49 = vpop.permute.xlu0 %2686 }
 0xd98   :  { %v2689_v18 = vpop.permute.xlu1 %2688  ;;  %v2704_v61 = vmul.f32 %v2687_v49, %v7773_v21 }
 0xd99   :  { %v2705_v0 = vmul.f32 %v2689_v18, %v7775_v29 }
 0xd9b   :  { %2728 = vrot.lane.b32.xlu2 %v2705_v0, %s6231_s23  ;;  %2726 = vrot.lane.b32.xlu1 %v2704_v61, %s6231_s23 }
 0xd9f   :  { %v2637_v7 = vpop.permute.xlu0 %2636 }
 0xda0   :  { %v2639_v8 = vpop.permute.xlu1 %2638  ;;  %v2659_v11 = vmul.f32 %v2637_v7, %v7710_v16 }
 0xda1   :  { %v2660_v9 = vmul.f32 %v2639_v8, %v7641_v54 }
 0xda7   :  { %v2645_v42 = vpop.permute.xlu0 %2644 }
 0xda8   :  { %v2649_v53 = vpop.permute.xlu1 %2648  ;;  %v2663_v40 = vmul.f32 %v2645_v42, %v7752_v44 }
 0xda9   :  { %v2665_v10 = vmul.f32 %v2649_v53, %v7775_v29 }
 0xdaf   :  { %v2647_v6 = vpop.permute.xlu0 %2646 }
 0xdb0   :  { %v2664_v55 = vmul.f32 %v2647_v6, %v7773_v21 }
 0xdd2   :  { %v2719_v47 = vpop.permute.xlu2 %2718 }
 0xdd3   :  { %v2740_v31 = vadd.f32 %v2719_v47, %v2660_v9 }
 0xdd5   :  { %5741 = vtanh.f32 %v2740_v31  ;;  %v2837_v61 = vrot.slane %v2740_v31, 2 }
 0xddb   :  { %v5742_v46 = vpop.eup %5741 }
 0xddc   :  { %2766 = vrot.lane.b32.xlu2 %v5742_v46, %s6232_s25 }
 0xded   :  { %v2725_v13 = vpop.permute.xlu2 %2724 }
 0xdee   :  { %v2743_v5 = vadd.f32 %v2725_v13, %v2663_v40 }
 0xdf0   :  { %v2842_v46 = vrot.slane %v2743_v5, 7 }
 0xdf5   :  { %v2729_v43 = vpop.permute.xlu2 %2728 }
 0xdf6   :  { %v2745_v12 = vadd.f32 %v2729_v43, %v2665_v10 }
 0xdf8   :  { %v2846_v7 = vrot.slane %v2745_v12, 5 }
 0xdfc   :  { %v2715_v50 = vpop.permute.xlu0 %2714 }
 0xdfd   :  { %v2717_v1 = vpop.permute.xlu1 %2716  ;;  %v2738_v2 = vadd.f32 %v2715_v50, %v2658_v35 }
 0xdfe   :  { %v2739_v20 = vadd.f32 %v2717_v1, %v2659_v11 }
 0xdff   :  { %5743 = vtanh.f32 %v2738_v2  ;;  %v2834_v62 = vrot.slane %v2738_v2, 4 }
 0xe00   :  { %5745 = vtanh.f32 %v2739_v20  ;;  %v2835_v39 = vrot.slane %v2739_v20, 3 }
 0xe01   :  { %5747 = vtanh.f32 %v2743_v5 }
 0xe02   :  { %v2836_v49 = vsel %vm637_vm4, %v2835_v39, %v2834_v62 }
 0xe03   :  { %v2838_v0 = vsel %vm640_vm5, %v2837_v61, %v2836_v49 }
 0xe04   :  { %v2723_v60 = vpop.permute.xlu0 %2722 }
 0xe05   :  { %v5744_v51 = vpop.eup %5743  ;;  %v2721_v59 = vpop.permute.xlu1 %2720  ;;  %v2742_v52 = vadd.f32 %v2723_v60, %v2662_v17 }
 0xe06   :  { %v5746_v57 = vpop.eup %5745  ;;  %v2741_v45 = vadd.f32 %v2721_v59, %v2661_v3  ;;  %2762 = vrot.lane.b32.xlu0 %v5744_v51, %s6232_s25 }
 0xe07   :  { %5749 = vtanh.f32 %v2742_v52  ;;  %2764 = vrot.lane.b32.xlu1 %v5746_v57, %s6232_s25  ;;  %v5748_v27 = vpop.eup %5747 }
 0xe08   :  { %5751 = vtanh.f32 %v2741_v45  ;;  %v2839_v18 = vrot.slane %v2741_v45, 1 }
 0xe09   :  { %5753 = vtanh.f32 %v2745_v12 }
 0xe0a   :  { %v2840_v34 = vsel %vm643_vm6, %v2839_v18, %v2838_v0 }
 0xe0b   :  { %v2841_v9 = vsel %vm646_vm7, %v2742_v52, %v2840_v34 }
 0xe0c   :  { %v2843_v25 = vsel %vm649_vm8, %v2842_v46, %v2841_v9 }
 0xe0d   :  { %v5750_v37 = vpop.eup %5749  ;;  %v2727_v4 = vpop.permute.xlu1 %2726 }
 0xe0e   :  { %v5752_v63 = vpop.eup %5751  ;;  %v2744_v15 = vadd.f32 %v2727_v4, %v2664_v55  ;;  %2770 = vrot.lane.b32.xlu2 %v5750_v37, %s6232_s25 }
 0xe0f   :  { %2772 = vrot.lane.b32.xlu1 %v5748_v27, %s6232_s25  ;;  %2768 = vrot.lane.b32.xlu0 %v5752_v63, %s6232_s25  ;;  %v5754_v14 = vpop.eup %5753 }
 0xe10   :  { %5755 = vtanh.f32 %v2744_v15  ;;  %v2844_v47 = vrot.slane %v2744_v15, 6 }
 0xe12   :  { %v2845_v31 = vsel %vm652_vm9, %v2844_v47, %v2843_v25 }
 0xe13   :  { %v2847_v42 = vsel %vm655_vm10, %v2846_v7, %v2845_v31 }
 0xe16   :  { %v5756_v8 = vpop.eup %5755  ;;  %2797 = vperm.xlu2 %5351, %v2795_v32  }
 0xe17   :  { %2776 = vrot.lane.b32.xlu1 %v5754_v14, %s6232_s25  ;;  %2774 = vrot.lane.b32.xlu0 %v5756_v8, %s6232_s25 }
 0xe1f   :  { %2848 = vrot.lane.b32.xlu1 %v2847_v42, %s6234_s28 }
 0xe36   :  { %v2767_v50 = vpop.permute.xlu2 %2766 }
 0xe37   :  { %v2788_v13 = vmul.f32 %v2767_v50, %v7641_v54 }
 0xe39   :  { %v2811_v3 = vrot.slane %v2788_v13, 2 }
 0xe68   :  { %v2771_v51 = vpop.permute.xlu2 %2770 }
 0xe69   :  { %v2790_v52 = vmul.f32 %v2771_v51, %v7748_v33 }
 0xe70   :  { %v2798_v33 = vpop.permute.xlu2 %2797 }
 0xe71   :  { %vm2799_vm2 = vcmp.eq.s32.totalorder %v2798_v33, 1 }
 0xe78   :  { %v2763_v6 = vpop.permute.xlu0 %2762 }
 0xe79   :  { %v2765_v53 = vpop.permute.xlu1 %2764  ;;  %v2786_v11 = vmul.f32 %v2763_v6, %v7706_v58 }
 0xe7a   :  { %v2787_v35 = vmul.f32 %v2765_v53, %v7710_v16 }
 0xe7b   :  { %v2808_v2 = vrot.slane %v2786_v11, 4 }
 0xe7c   :  { %v2809_v1 = vrot.slane %v2787_v35, 3 }
 0xe7e   :  { %v2810_v17 = vsel %vm637_vm4, %v2809_v1, %v2808_v2 }
 0xe7f   :  { %v2812_v59 = vsel %vm640_vm5, %v2811_v3, %v2810_v17 }
 0xe81   :  { %v2773_v20 = vpop.permute.xlu1 %2772  ;;  %v2769_v40 = vpop.permute.xlu0 %2768 }
 0xe82   :  { %v2789_v5 = vmul.f32 %v2769_v40, %v7750_v28  ;;  %v2791_v16 = vmul.f32 %v2773_v20, %v7752_v44 }
 0xe84   :  { %v2813_v60 = vrot.slane %v2789_v5, 1  ;;  %v2816_v10 = vrot.slane %v2791_v16, 7 }
 0xe86   :  { %v2814_v58 = vsel %vm643_vm6, %v2813_v60, %v2812_v59 }
 0xe87   :  { %v2815_v54 = vsel %vm646_vm7, %v2790_v52, %v2814_v58 }
 0xe88   :  { %v2817_v55 = vsel %vm649_vm8, %v2816_v10, %v2815_v54 }
 0xe89   :  { %v2777_v57 = vpop.permute.xlu1 %2776  ;;  %v2775_v45 = vpop.permute.xlu0 %2774 }
 0xe8a   :  { %v2793_v43 = vmul.f32 %v2777_v57, %v7775_v29  ;;  %v2792_v28 = vmul.f32 %v2775_v45, %v7773_v21 }
 0xe8c   :  { %v2820_v12 = vrot.slane %v2793_v43, 5  ;;  %v2818_v27 = vrot.slane %v2792_v28, 6 }
 0xe8e   :  { %v2819_v39 = vsel %vm652_vm9, %v2818_v27, %v2817_v55 }
 0xe8f   :  { %v2821_v44 = vsel %vm655_vm10, %v2820_v12, %v2819_v39 }
 0xe90   :  { %2822 = vrot.lane.b32.xlu0 %v2821_v44, %s6235_s5 }
 0xe91   :  { %v2849_v53 = vpop.permute.xlu1 %2848 }
 0xe92   :  { %v7848_v35 = vsel %vm2799_vm2, %v2849_v53, %v7595_v24 }
 0xe93   :  { %v3060_v1 = vrot.slane %v7848_v35, 3  ;;  %v3061_v2 = vrot.slane %v7848_v35, 4  ;;  %v3062_v13 = vrot.slane %v7848_v35, 5  ;;  %v3063_v20 = vrot.slane %v7848_v35, 6 }
 0xe94   :  { %v3064_v24 = vrot.slane %v7848_v35, 7  ;;  %v3065_v40 = vrot.slane %v7848_v35, 1  ;;  %v3066_v17 = vrot.slane %v7848_v35, 2 }
 0xf02   :  { %v2823_v62 = vpop.permute.xlu0 %2822 }
 0xf03   :  { %v7825_v37 = vsel %vm2799_vm2, %v2823_v62, %v7572_v56 }
 0xf04   :  { %5245 = vmatmul.msk.f32.vlgmr.msrb.gmra.mxu1 %vm8962_vm3, %v7825_v37 }
 0xf81   :  { %v2872_v21 = vpop.f32.mrf.mxu1 }
 0xf82   :  { %v2876_v29 = vrot.slane %v2872_v21, 3  ;;  %v2877_v4 = vrot.slane %v2872_v21, 4  ;;  %v2878_v63 = vrot.slane %v2872_v21, 5  ;;  %v2879_v61 = vrot.slane %v2872_v21, 6 }
 0xf83   :  { %v2880_v0 = vrot.slane %v2872_v21, 7  ;;  %v2881_v32 = vrot.slane %v2872_v21, 1  ;;  %v2882_v46 = vrot.slane %v2872_v21, 2  ;;  %v2896_v25 = vadd.f32 %v2872_v21, %v6444_v48 }
 0xf84   :  { %v2891_v15 = vadd.f32 %v2876_v29, %v6419_v19  ;;  %v2892_v49 = vadd.f32 %v2877_v4, %v6421_v22  ;;  %v2893_v18 = vadd.f32 %v2878_v63, %v6425_v26  ;;  %v2894_v56 = vadd.f32 %v2879_v61, %v6427_v30 }
 0xf85   :  { %v2895_v34 = vadd.f32 %v2880_v0, %v6438_v41  ;;  %v7835_v8 = vadd.f32 %v2881_v32, %v6435_v38  ;;  %v2898_v31 = vadd.f32 %v2882_v46, %v6433_v36  ;;  %v5251_v44 = vmul.f32 -1.442695, %v2896_v25 }
 0xf86   :  { %5757 = vtanh.f32 %v2891_v15  ;;  %v5246_v5 = vmul.f32 -1.442695, %v2891_v15  ;;  %v5248_v59 = vmul.f32 -1.442695, %v2893_v18  ;;  %v5247_v16 = vmul.f32 -1.442695, %v2892_v49 }
 0xf87   :  { %5759 = vtanh.f32 %v2892_v49  ;;  %v5249_v57 = vmul.f32 -1.442695, %v2894_v56  ;;  %v5250_v45 = vmul.f32 -1.442695, %v2895_v34  ;;  %v5253_v33 = vmul.f32 -1.442695, %v2898_v31 }
 0xf88   :  { %5761 = vtanh.f32 %v2893_v18  ;;  %v5252_v29 = vmul.f32 -1.442695, %v7835_v8 }
 0xf89   :  { %5763 = vtanh.f32 %v2894_v56 }
 0xf8a   :  { %5765 = vtanh.f32 %v2895_v34 }
 0xf8b   :  { %5767 = vtanh.f32 %v7835_v8 }
 0xf8c   :  { %v5758_v14 = vpop.eup %5757  ;;  %5769 = vtanh.f32 %v2896_v25 }
 0xf8d   :  { %v5760_v9 = vpop.eup %5759  ;;  %3107 = vrot.lane.b32.xlu2 %v5758_v14, %s6230_s6  ;;  %5771 = vtanh.f32 %v2898_v31 }
 0xf8e   :  { %v5762_v47 = vpop.eup %5761  ;;  %3109 = vrot.lane.b32.xlu0 %v5760_v9, %s6230_s6  ;;  %5773 = vpow2.f32 %v5246_v5 }
 0xf8f   :  { %3111 = vrot.lane.b32.xlu1 %v5762_v47, %s6230_s6  ;;  %v5764_v7 = vpop.eup %5763 }
 0xf90   :  { %v5766_v42 = vpop.eup %5765 }
 0xf91   :  { %v5768_v6 = vpop.eup %5767 }
 0xf92   :  { %v5770_v11 = vpop.eup %5769 }
 0xf93   :  { %v5772_v50 = vpop.eup %5771 }
 0xf94   :  { %v5774_v3 = vpop.eup %5773 }
 0xf95   :  { %3113 = vrot.lane.b32.xlu2 %v5764_v7, %s6230_s6  ;;  %v2923_v60 = vadd.f32 1.0, %v5774_v3 }
 0xf96   :  { %3115 = vrot.lane.b32.xlu0 %v5766_v42, %s6230_s6 }
 0xf97   :  { %3119 = vrot.lane.b32.xlu1 %v5768_v6, %s6230_s6  ;;  %5775 = vrcp.f32 %v2923_v60  ;;  %v2942_v55 = vand.u32 2147483648, %v2923_v60  ;;  %vm2936_vm14 = vweird.f32 %v2923_v60  ;;  %v2940_v39 = vand.u32 2147483647, %v2923_v60 }
 0xf98   :  { %5777 = vpow2.f32 %v5248_v59 }
 0xf99   :  { %5779 = vpow2.f32 %v5247_v16  ;;  %v2943_v63 = vor.u32 1.1754944e-38, %v2942_v55  ;;  %vm2941_vm12 = vcmp.eq.f32.partialorder %v2940_v39, 8.507059e+37 }
 0xf9a   :  { %5781 = vpow2.f32 %v5249_v57 }
 0xf9b   :  { %5783 = vpow2.f32 %v5250_v45 }
 0xf9d   :  { %3117 = vrot.lane.b32.xlu2 %v5770_v11, %s6230_s6  ;;  %v5776_v51 = vpop.eup %5775 }
 0xf9e   :  { %3121 = vrot.lane.b32.xlu0 %v5772_v50, %s6230_s6  ;;  %v2932_v58 = vmul.f32 %v5776_v51, %v2923_v60  ;;  %v5778_v54 = vpop.eup %5777  ;;  %vm2937_vm11 = vweird.f32 %v5776_v51 }
 0xf9f   :  { %3067 = vrot.lane.b32.xlu1 %v3060_v1, %s6231_s23  ;;  %v5780_v28 = vpop.eup %5779  ;;  %v7868_v10 = vadd.f32 1.0, %v5778_v54  ;;  %vm2938_vm0 = vmor %vm2936_vm14, %vm2937_vm11 }
 0xfa0   :  { %v2933_v52 = vsub.f32 1.0, %v2932_v58  ;;  %v7870_v27 = vadd.f32 1.0, %v5780_v28  ;;  %v5782_v62 = vpop.eup %5781 }
 0xfa1   :  { %5785 = vrcp.f32 %v7868_v10  ;;  %v5784_v4 = vpop.eup %5783  ;;  %v7877_v18 = vadd.f32 1.0, %v5782_v62  ;;  %vm2966_vm1 = vweird.f32 %v7868_v10  ;;  %v2972_v3 = vand.u32 2147483648, %v7868_v10 }
 0xfa2   :  { %v2934_v43 = vmul.f32 %v5776_v51, %v2933_v52  ;;  %5787 = vrcp.f32 %v7870_v27  ;;  %v7880_v0 = vadd.f32 1.0, %v5784_v4  ;;  %v2957_v60 = vand.u32 2147483648, %v7870_v27 }
 0xfa3   :  { %5789 = vpow2.f32 %v5251_v44  ;;  %v2970_v16 = vand.u32 2147483647, %v7868_v10  ;;  %vm2951_vm3 = vweird.f32 %v7870_v27  ;;  %v2955_v58 = vand.u32 2147483647, %v7870_v27 }
 0xfa4   :  { %v2935_v12 = vadd.f32 %v5776_v51, %v2934_v43  ;;  %5791 = vpow2.f32 %v5253_v33  ;;  %vm2981_vm14 = vweird.f32 %v7877_v18 }
 0xfa5   :  { %3069 = vrot.lane.b32.xlu2 %v3061_v2, %s6231_s23  ;;  %5793 = vpow2.f32 %v5252_v29 }
 0xfa6   :  { %3071 = vrot.lane.b32.xlu0 %v3062_v13, %s6231_s23  ;;  %v2939_v21 = vsel %vm2938_vm0, %v5776_v51, %v2935_v12  ;;  %5795 = vrcp.f32 %v7877_v18  ;;  %v2973_v12 = vor.u32 1.1754944e-38, %v2972_v3 }
 0xfa7   :  { %3073 = vrot.lane.b32.xlu1 %v3063_v20, %s6231_s23  ;;  %v7875_v49 = vsel %vm2941_vm12, %v2943_v63, %v2939_v21  ;;  %v5786_v32 = vpop.eup %5785  ;;  %5797 = vrcp.f32 %v7880_v0  ;;  %vm2971_vm12 = vcmp.eq.f32.partialorder %v2970_v16, 8.507059e+37 }
 0xfa8   :  { %v5788_v56 = vpop.eup %5787  ;;  %v2962_v8 = vmul.f32 %v5786_v32, %v7868_v10  ;;  %vm2967_vm13 = vweird.f32 %v5786_v32 }
 0xfa9   :  { %v5790_v34 = vpop.eup %5789  ;;  %v2947_v9 = vmul.f32 %v5788_v56, %v7870_v27  ;;  %vm2952_vm15 = vweird.f32 %v5788_v56  ;;  %vm7913_vm2 = vmor %vm2966_vm1, %vm2967_vm13  ;;  %v2958_v27 = vor.u32 1.1754944e-38, %v2957_v60  ;;  %vm2956_vm13 = vcmp.eq.f32.partialorder %v2955_v58, 8.507059e+37 }
 0xfaa   :  { %v5792_v14 = vpop.eup %5791  ;;  %v7887_v46 = vadd.f32 1.0, %v5790_v34  ;;  %v2963_v7 = vsub.f32 1.0, %v2962_v8  ;;  %vm7923_vm11 = vmor %vm2951_vm3, %vm2952_vm15  ;;  %v3002_v34 = vand.u32 2147483648, %v7880_v0  ;;  %v2985_v8 = vand.u32 2147483647, %v7877_v18 }
 0xfab   :  { %v5794_v47 = vpop.eup %5793  ;;  %v7889_v25 = vadd.f32 1.0, %v5792_v14  ;;  %v2948_v42 = vsub.f32 1.0, %v2947_v9  ;;  %v3000_v9 = vand.u32 2147483647, %v7880_v0 }
 0xfac   :  { %v7891_v31 = vpop.eup %5795  ;;  %v7893_v6 = vadd.f32 1.0, %v5794_v47  ;;  %5799 = vrcp.f32 %v7887_v46  ;;  %v2964_v50 = vmul.f32 %v5786_v32, %v2963_v7  ;;  %v3017_v3 = vand.u32 2147483648, %v7887_v46 }
 0xfad   :  { %v7895_v53 = vpop.eup %5797  ;;  %v2977_v11 = vmul.f32 %v7891_v31, %v7877_v18  ;;  %5801 = vrcp.f32 %v7889_v25  ;;  %v2949_v1 = vmul.f32 %v5788_v56, %v2948_v42  ;;  %vm2982_vm0 = vweird.f32 %v7891_v31 }
 0xfae   :  { %3077 = vrot.lane.b32.xlu0 %v7848_v35, %s6231_s23  ;;  %5803 = vrcp.f32 %v7893_v6  ;;  %v2992_v2 = vmul.f32 %v7895_v53, %v7880_v0  ;;  %vm2997_vm15 = vweird.f32 %v7895_v53  ;;  %vm7953_vm1 = vmor %vm2981_vm14, %vm2982_vm0  ;;  %vm3011_vm14 = vweird.f32 %v7887_v46 }
 0xfaf   :  { %3075 = vrot.lane.b32.xlu1 %v3064_v24, %s6231_s23  ;;  %v2978_v13 = vsub.f32 1.0, %v2977_v11  ;;  %v2965_v24 = vadd.f32 %v5786_v32, %v2964_v50  ;;  %vm3001_vm0 = vcmp.eq.f32.partialorder %v3000_v9, 8.507059e+37  ;;  %v3047_v59 = vand.u32 2147483648, %v7889_v25 }
 0xfb0   :  { %v2993_v5 = vsub.f32 1.0, %v2992_v2  ;;  %v3003_v2 = vor.u32 1.1754944e-38, %v3002_v34  ;;  %v3015_v58 = vand.u32 2147483647, %v7887_v46  ;;  %v3030_v45 = vand.u32 2147483647, %v7893_v6 }
 0xfb1   :  { %v2979_v52 = vmul.f32 %v7891_v31, %v2978_v13  ;;  %v2969_v54 = vsel %vm7913_vm2, %v5786_v32, %v2965_v24  ;;  %vm2996_vm2 = vweird.f32 %v7880_v0 }
 0xfb2   :  { %v7904_v20 = vpop.eup %5799  ;;  %v2994_v28 = vmul.f32 %v7895_v53, %v2993_v5  ;;  %v7939_v33 = vsel %vm2971_vm12, %v2973_v12, %v2969_v54  ;;  %vm2998_vm3 = vmor %vm2996_vm2, %vm2997_vm15  ;;  %vm3041_vm2 = vweird.f32 %v7889_v25 }
 0xfb3   :  { %v3007_v57 = vmul.f32 %v7904_v20, %v7887_v46  ;;  %v2980_v39 = vadd.f32 %v7891_v31, %v2979_v52  ;;  %vm3012_vm12 = vweird.f32 %v7904_v20  ;;  %v3032_v52 = vand.u32 2147483648, %v7893_v6 }
 0xfb4   :  { %v2995_v63 = vadd.f32 %v7895_v53, %v2994_v28  ;;  %v3018_v28 = vor.u32 1.1754944e-38, %v3017_v3  ;;  %v8032_v3 = vld [vmem:[%s8924_s7] sm:$0xff] }
 0xfb5   :  { %v3008_v44 = vsub.f32 1.0, %v3007_v57  ;;  %v2984_v42 = vsel %vm7953_vm1, %v7891_v31, %v2980_v39  ;;  %vm7986_vm1 = vmor %vm3011_vm14, %vm3012_vm12  ;;  %v3045_v57 = vand.u32 2147483647, %v7889_v25  ;;  %v3033_v12 = vor.u32 1.1754944e-38, %v3032_v52 }
 0xfb6   :  { %v2999_v11 = vsel %vm2998_vm3, %v7895_v53, %v2995_v63  ;;  %vm3026_vm3 = vweird.f32 %v7893_v6 }
 0xfb7   :  { %3079 = vrot.lane.b32.xlu1 %v3065_v40, %s6231_s23  ;;  %v2950_v40 = vadd.f32 %v5788_v56, %v2949_v1  ;;  %v3009_v7 = vmul.f32 %v7904_v20, %v3008_v44  ;;  %v7974_v24 = vsel %vm3001_vm0, %v3003_v2, %v2999_v11  ;;  %vm3016_vm0 = vcmp.eq.f32.partialorder %v3015_v58, 8.507059e+37 }
 0xfb8   :  { %vm3046_vm12 = vcmp.eq.f32.partialorder %v3045_v57, 8.507059e+37 }
 0xfb9   :  { %v2954_v43 = vsel %vm7923_vm11, %v5788_v56, %v2950_v40  ;;  %vm2986_vm11 = vcmp.eq.f32.partialorder %v2985_v8, 8.507059e+37  ;;  %v3010_v13 = vadd.f32 %v7904_v20, %v3009_v7 }
 0xfba   :  { %v7941_v21 = vsel %vm2956_vm13, %v2958_v27, %v2954_v43 }
 0xfbb   :  { %v3014_v54 = vsel %vm7986_vm1, %v7904_v20, %v3010_v13  ;;  %vm8973_vm1 = vcmask 130048  }
 0xfbf   :  { %3081 = vrot.lane.b32.xlu1 %v3066_v17, %s6231_s23  ;;  %v7906_v17 = vpop.eup %5801 }
 0xfc0   :  { %v7911_v51 = vpop.eup %5803  ;;  %v3037_v10 = vmul.f32 %v7906_v17, %v7889_v25  ;;  %vm3042_vm13 = vweird.f32 %v7906_v17 }
 0xfc1   :  { %v3022_v55 = vmul.f32 %v7911_v51, %v7893_v6  ;;  %vm3027_vm15 = vweird.f32 %v7911_v51  ;;  %v3048_v6 = vor.u32 1.1754944e-38, %v3047_v59 }
 0xfc2   :  { %vm8001_vm14 = vmor %vm3026_vm3, %vm3027_vm15  ;;  %vm3227_vm15 = vcmp.ge.s32.totalorder %v8032_v3, 6 }
 0xfc3   :  { %v3023_v56 = vsub.f32 1.0, %v3022_v55  ;;  %v8009_v55 = vsel %vm3016_vm0, %v3018_v28, %v3014_v54  ;;  %v3228_v52 = vsel %vm3227_vm15, 1, %v6233_v23  ;;  %vm8975_vm3 = vmmov %vm8973_vm1 }
 0xfc4   :  { %vm8977_vm0 = vmmov %vm8973_vm1 }
 0xfc5   :  { %v3024_v1 = vmul.f32 %v7911_v51, %v3023_v56  ;;  %vm8980_vm15 = vmmov %vm8977_vm0 }
 0xfc7   :  { %v3025_v60 = vadd.f32 %v7911_v51, %v3024_v1 }
 0xfc9   :  { %v3029_v25 = vsel %vm8001_vm14, %v7911_v51, %v3025_v60  ;;  %vm8976_vm14 = vmmov %vm8973_vm1 }
 0xfe7   :  { %v3108_v15 = vpop.permute.xlu2 %3107 }
 0xfe8   :  { %v3131_v61 = vmul.f32 %v3108_v15, %v7875_v49  ;;  %v3038_v15 = vsub.f32 1.0, %v3037_v10 }
 0xfea   :  { %3147 = vrot.lane.b32.xlu2 %v3131_v61, %s6231_s23  ;;  %v2987_v61 = vand.u32 2147483648, %v7877_v18  ;;  %v3039_v18 = vmul.f32 %v7906_v17, %v3038_v15 }
 0xfec   :  { %v2988_v50 = vor.u32 1.1754944e-38, %v2987_v61  ;;  %v3040_v5 = vadd.f32 %v7906_v17, %v3039_v18 }
 0xfee   :  { %v7970_v0 = vsel %vm2986_vm11, %v2988_v50, %v2984_v42  ;;  %vm3043_vm11 = vmor %vm3041_vm2, %vm3042_vm13  ;;  %vm3031_vm13 = vcmp.eq.f32.partialorder %v3030_v45, 8.507059e+37 }
 0xfef   :  { %v3114_v47 = vpop.permute.xlu2 %3113  ;;  %v3044_v43 = vsel %vm3043_vm11, %v7906_v17, %v3040_v5  ;;  %v8014_v17 = vsel %vm3031_vm13, %v3033_v12, %v3029_v25  ;;  %vm8974_vm2 = vmmov %vm8973_vm1 }
 0xff0   :  { %v3134_v53 = vmul.f32 %v3114_v47, %v7970_v0  ;;  %v8011_v20 = vsel %vm3046_vm12, %v3048_v6, %v3044_v43  ;;  %vm8978_vm12 = vmmov %vm8977_vm0 }
 0xff1   :  { %vm8979_vm13 = vmmov %vm8977_vm0 }
 0xff7   :  { %v3118_v10 = vpop.permute.xlu2 %3117 }
 0xff8   :  { %v3136_v44 = vmul.f32 %v3118_v10, %v8009_v55 }
 0xfff   :  { %v3070_v51 = vpop.permute.xlu2 %3069 }
0x1000   :  { %v3110_v62 = vpop.permute.xlu0 %3109  ;;  %v3092_v13 = vmul.f32 %v3070_v51, %v7941_v21 }
0x1001   :  { %v3112_v29 = vpop.permute.xlu1 %3111  ;;  %v3132_v4 = vmul.f32 %v3110_v62, %v7941_v21 }
0x1002   :  { %v3133_v32 = vmul.f32 %v3112_v29, %v7939_v33 }
0x1003   :  { %3149 = vrot.lane.b32.xlu0 %v3132_v4, %s6231_s23 }
0x1004   :  { %3151 = vrot.lane.b32.xlu2 %v3133_v32, %s6231_s23 }
0x1008   :  { %v3116_v31 = vpop.permute.xlu0 %3115 }
0x1009   :  { %v3135_v40 = vmul.f32 %v3116_v31, %v7974_v24  ;;  %v3120_v27 = vpop.permute.xlu1 %3119 }
0x100a   :  { %v3137_v29 = vmul.f32 %v3120_v27, %v8014_v17 }
0x100b   :  { %3153 = vrot.lane.b32.xlu0 %v3134_v53, %s6231_s23 }
0x100c   :  { %3155 = vrot.lane.b32.xlu2 %v3135_v40, %s6231_s23 }
0x1010   :  { %v3122_v39 = vpop.permute.xlu0 %3121 }
0x1011   :  { %v3138_v62 = vmul.f32 %v3122_v39, %v8011_v20  ;;  %v3068_v4 = vpop.permute.xlu1 %3067 }
0x1012   :  { %v3091_v63 = vmul.f32 %v3068_v4, %v7875_v49 }
0x1013   :  { %3161 = vrot.lane.b32.xlu1 %v3138_v62, %s6231_s23  ;;  %3157 = vrot.lane.b32.xlu0 %v3136_v44, %s6231_s23 }
0x1014   :  { %3159 = vrot.lane.b32.xlu2 %v3137_v29, %s6231_s23 }
0x1018   :  { %v3072_v34 = vpop.permute.xlu0 %3071 }
0x1019   :  { %v3074_v56 = vpop.permute.xlu1 %3073  ;;  %v3093_v14 = vmul.f32 %v3072_v34, %v7939_v33 }
0x101a   :  { %v3094_v59 = vmul.f32 %v3074_v56, %v7970_v0 }
0x1020   :  { %v3078_v18 = vpop.permute.xlu0 %3077 }
0x1021   :  { %v3076_v47 = vpop.permute.xlu1 %3075  ;;  %v3096_v54 = vmul.f32 %v3078_v18, %v8009_v55 }
0x1022   :  { %v3095_v5 = vmul.f32 %v3076_v47, %v7974_v24 }
0x1029   :  { %v3080_v11 = vpop.permute.xlu1 %3079 }
0x102a   :  { %v3097_v50 = vmul.f32 %v3080_v11, %v8014_v17 }
0x1031   :  { %v3082_v16 = vpop.permute.xlu1 %3081 }
0x1032   :  { %v3098_v46 = vmul.f32 %v3082_v16, %v8011_v20 }
0x1044   :  { %v3148_v15 = vpop.permute.xlu2 %3147 }
0x1045   :  { %v3171_v61 = vadd.f32 %v3148_v15, %v3091_v63 }
0x1047   :  { %5805 = vtanh.f32 %v3171_v61  ;;  %v3267_v12 = vrot.slane %v3171_v61, 5 }
0x104d   :  { %v5806_v32 = vpop.eup %5805 }
0x104e   :  { %3195 = vrot.lane.b32.xlu2 %v5806_v32, %s6232_s25 }
0x105e   :  { %v3152_v8 = vpop.permute.xlu2 %3151 }
0x105f   :  { %v3173_v9 = vadd.f32 %v3152_v8, %v3093_v14 }
0x1061   :  { %5807 = vtanh.f32 %v3173_v9  ;;  %v3270_v29 = vrot.slane %v3173_v9, 3 }
0x1066   :  { %v3156_v7 = vpop.permute.xlu2 %3155 }
0x1067   :  { %v5808_v42 = vpop.eup %5807  ;;  %v3175_v60 = vadd.f32 %v3156_v7, %v3095_v5 }
0x1068   :  { %3199 = vrot.lane.b32.xlu1 %v5808_v42, %s6232_s25 }
0x1069   :  { %v3274_v63 = vrot.slane %v3175_v60, 1 }
0x106e   :  { %v3160_v1 = vpop.permute.xlu2 %3159 }
0x106f   :  { %v3177_v2 = vadd.f32 %v3160_v1, %v3097_v50 }
0x1071   :  { %5809 = vtanh.f32 %v3177_v2  ;;  %v3277_v34 = vrot.slane %v3177_v2, 7 }
0x1075   :  { %v3150_v31 = vpop.permute.xlu0 %3149 }
0x1076   :  { %v3172_v53 = vadd.f32 %v3150_v31, %v3092_v13 }
0x1077   :  { %v5810_v40 = vpop.eup %5809 }
0x1078   :  { %5811 = vtanh.f32 %v3172_v53  ;;  %3207 = vrot.lane.b32.xlu1 %v5810_v40, %s6232_s25  ;;  %v3268_v43 = vrot.slane %v3172_v53, 4 }
0x1079   :  { %5813 = vtanh.f32 %v3175_v60 }
0x107a   :  { %v3269_v44 = vsel %vm637_vm4, %v3268_v43, %v3267_v12  ;;  %v197_v12 = vld [vmem:[#allocation6 + $0x10] sm:$0xff] }
0x107b   :  { %v3271_v51 = vsel %vm640_vm5, %v3270_v29, %v3269_v44  ;;  %v198_v44 = vld [vmem:[#allocation6 + $0x18] sm:$0xff]  ;;  %v200_v29 = vld [vmem:[#allocation6 + $0x28] sm:$0xff] }
0x107d   :  { %v3154_v58 = vpop.permute.xlu0 %3153 }
0x107e   :  { %v5812_v57 = vpop.eup %5811  ;;  %v3174_v45 = vadd.f32 %v3154_v58, %v3094_v59 }
0x107f   :  { %3197 = vrot.lane.b32.xlu0 %v5812_v57, %s6232_s25  ;;  %v5814_v28 = vpop.eup %5813 }
0x1080   :  { %5815 = vtanh.f32 %v3174_v45  ;;  %3230 = vperm.xlu1 %5352, %v3228_v52   ;;  %v3272_v62 = vrot.slane %v3174_v45, 2 }
0x1082   :  { %v3273_v4 = vsel %vm643_vm6, %v3272_v62, %v3271_v51  ;;  %v199_v62 = vld [vmem:[#allocation6 + $0x20] sm:$0xff] }
0x1083   :  { %v3275_v61 = vsel %vm646_vm7, %v3274_v63, %v3273_v4 }
0x1085   :  { %v3162_v10 = vpop.permute.xlu1 %3161  ;;  %v3158_v25 = vpop.permute.xlu0 %3157 }
0x1086   :  { %v5816_v6 = vpop.eup %5815  ;;  %v3178_v27 = vadd.f32 %v3162_v10, %v3098_v46  ;;  %v3176_v39 = vadd.f32 %v3158_v25, %v3096_v54  ;;  %v4126_v25 = vld [vmem:[#allocation9 + $0x8] sm:$0xff] }
0x1087   :  { %3203 = vrot.lane.b32.xlu0 %v5814_v28, %s6232_s25  ;;  %3201 = vrot.lane.b32.xlu2 %v5816_v6, %s6232_s25  ;;  %v4125_v6 = vld [vmem:[#allocation9] sm:$0xff] }
0x1088   :  { %5817 = vtanh.f32 %v3178_v27  ;;  %v3276_v56 = vsel %vm649_vm8, %v3176_v39, %v3275_v61  ;;  %v3279_v14 = vrot.slane %v3178_v27, 6  ;;  %4169 = vmatpush.msra.mxu1 %v4126_v25 }
0x1089   :  { %5819 = vtanh.f32 %v3176_v39  ;;  %v3278_v8 = vsel %vm652_vm9, %v3277_v34, %v3276_v56 }
0x108a   :  { %v3280_v9 = vsel %vm655_vm10, %v3279_v14, %v3278_v8  ;;  %4170 = vmatpush.msra.mxu1 %v4125_v6 }
0x108e   :  { %v5818_v15 = vpop.eup %5817 }
0x108f   :  { %v5820_v32 = vpop.eup %5819  ;;  %3209 = vrot.lane.b32.xlu0 %v5818_v15, %s6232_s25 }
0x1090   :  { %3205 = vrot.lane.b32.xlu2 %v5820_v32, %s6232_s25  ;;  %v201_v32 = vld [vmem:[#allocation6 + $0x30] sm:$0xff] }
0x1097   :  { %3281 = vrot.lane.b32.xlu0 %v3280_v9, %s6234_s28 }
0x10a8   :  { %v3196_v47 = vpop.permute.xlu2 %3195 }
0x10a9   :  { %v3219_v42 = vmul.f32 %v3196_v47, %v7875_v49  ;;  %v202_v47 = vld [vmem:[#allocation6 + $0x38] sm:$0xff] }
0x10ab   :  { %v3241_v31 = vrot.slane %v3219_v42, 5 }
0x10da   :  { %v3200_v11 = vpop.permute.xlu1 %3199 }
0x10db   :  { %v3221_v13 = vmul.f32 %v3200_v11, %v7939_v33 }
0x10dd   :  { %v3244_v40 = vrot.slane %v3221_v13, 3 }
0x10e1   :  { %v3202_v50 = vpop.permute.xlu2 %3201 }
0x10e2   :  { %v3222_v2 = vmul.f32 %v3202_v50, %v7970_v0 }
0x10e4   :  { %v3246_v16 = vrot.slane %v3222_v2, 2 }
0x10ea   :  { %v3208_v49 = vpop.permute.xlu1 %3207  ;;  %v3206_v52 = vpop.permute.xlu2 %3205 }
0x10eb   :  { %v3225_v57 = vmul.f32 %v3208_v49, %v8014_v17  ;;  %v3224_v0 = vmul.f32 %v3206_v52, %v8009_v55  ;;  %v195_v17 = vld [vmem:[#allocation6] sm:$0xff]  ;;  %v196_v55 = vld [vmem:[#allocation6 + $0x8] sm:$0xff] }
0x10ec   :  { %5272 = vmatmul.msk.f32.vlgmr.msra.gmra.mxu1 %vm8973_vm1, %v195_v17  ;;  %vm8981_vm1 = vmmov %vm8977_vm0 }
0x10f1   :  { %v3198_v7 = vpop.permute.xlu0 %3197 }
0x10f2   :  { %v3220_v18 = vmul.f32 %v3198_v7, %v7941_v21 }
0x10f4   :  { %v3242_v1 = vrot.slane %v3220_v18, 4  ;;  %5273 = vmatmul.msk.f32.gmra.mxu1 %vm8974_vm2, %v196_v55  ;;  %v4199_v55 = vld [vmem:[#allocation11 + $0x18] sm:$0xff]  ;;  %vm4212_vm2 = vcmask 785408  }
0x10f6   :  { %v3243_v53 = vsel %vm637_vm4, %v3242_v1, %v3241_v31 }
0x10f7   :  { %v3245_v59 = vsel %vm640_vm5, %v3244_v40, %v3243_v53 }
0x10f8   :  { %v3247_v21 = vsel %vm643_vm6, %v3246_v16, %v3245_v59  ;;  %v4205_v16 = vld [vmem:[#allocation11 + $0x48] sm:$0xff] }
0x10f9   :  { %v3204_v5 = vpop.permute.xlu0 %3203 }
0x10fa   :  { %v3223_v60 = vmul.f32 %v3204_v5, %v7974_v24  ;;  %v3251_v24 = vrot.slane %v3225_v57, 7  ;;  %v4207_v5 = vld [vmem:[#allocation11 + $0x58] sm:$0xff] }
0x10fb   :  { %4241 = vmatpush.msrb.mxu2 %v4207_v5 }
0x10fc   :  { %v3248_v58 = vrot.slane %v3223_v60, 1  ;;  %5274 = vmatmul.msk.f32.gmra.mxu1 %vm8975_vm3, %v197_v12  ;;  %v4206_v60 = vld [vmem:[#allocation11 + $0x50] sm:$0xff] }
0x10fd   :  { %4242 = vmatpush.msrb.mxu2 %v4206_v60  ;;  %v4198_v12 = vld [vmem:[#allocation11 + $0x10] sm:$0xff] }
0x10fe   :  { %v3249_v33 = vsel %vm646_vm7, %v3248_v58, %v3247_v21  ;;  %v4204_v58 = vld [vmem:[#allocation11 + $0x40] sm:$0xff]  ;;  %v4203_v21 = vld [vmem:[#allocation11 + $0x38] sm:$0xff] }
0x10ff   :  { %v3250_v54 = vsel %vm649_vm8, %v3224_v0, %v3249_v33  ;;  %4243 = vmatpush.msrb.mxu2 %v4205_v16  ;;  %v4202_v0 = vld [vmem:[#allocation11 + $0x30] sm:$0xff] }
0x1100   :  { %v3252_v28 = vsel %vm652_vm9, %v3251_v24, %v3250_v54 }
0x1101   :  { %v3210_v45 = vpop.permute.xlu0 %3209  ;;  %4244 = vmatpush.msrb.mxu2 %v4204_v58 }
0x1102   :  { %v3226_v46 = vmul.f32 %v3210_v45, %v8011_v20  ;;  %v3231_v20 = vpop.permute.xlu1 %3230  ;;  %v4201_v45 = vld [vmem:[#allocation11 + $0x28] sm:$0xff] }
0x1103   :  { %vm3232_vm11 = vcmp.eq.s32.totalorder %v3231_v20, 1  ;;  %4245 = vmatpush.msrb.mxu2 %v4203_v21  ;;  %v8144_v20 = vld [vmem:[%s8900_s8] ss:$0 sm:$0xff] }
0x1104   :  { %v3253_v43 = vrot.slane %v3226_v46, 6  ;;  %5275 = vmatmul.msk.f32.gmra.mxu1 %vm8977_vm0, %v198_v44  ;;  %v4197_v44 = vld [vmem:[#allocation11 + $0x8] sm:$0xff] }
0x1105   :  { %4246 = vmatpush.msrb.mxu2 %v4202_v0 }
0x1106   :  { %v3254_v10 = vsel %vm655_vm10, %v3253_v43, %v3252_v28 }
0x1107   :  { %3255 = vrot.lane.b32.xlu2 %v3254_v10, %s6235_s5  ;;  %4247 = vmatpush.msrb.mxu2 %v4201_v45 }
0x1109   :  { %v3282_v59 = vpop.permute.xlu0 %3281 }
0x110a   :  { %v8122_v49 = vsel %vm3232_vm11, %v3282_v59, %v7848_v35  ;;  %v4200_v35 = vld [vmem:[#allocation11 + $0x20] sm:$0xff] }
0x110b   :  { %v3493_v33 = vrot.slane %v8122_v49, 2  ;;  %v3494_v54 = vrot.slane %v8122_v49, 3  ;;  %v3495_v46 = vrot.slane %v8122_v49, 4  ;;  %v3496_v24 = vrot.slane %v8122_v49, 5  ;;  %4248 = vmatpush.msrb.mxu2 %v4200_v35 }
0x110c   :  { %5276 = vmatmul.msk.f32.gmra.mxu1 %vm8978_vm12, %v199_v62  ;;  %v3498_v43 = vrot.slane %v8122_v49, 7  ;;  %v3497_v28 = vrot.slane %v8122_v49, 6  ;;  %v3499_v10 = vrot.slane %v8122_v49, 1  ;;  %v4196_v62 = vld [vmem:[#allocation11] sm:$0xff] }
0x110d   :  { %4249 = vmatpush.msrb.mxu2 %v4199_v55 }
0x110f   :  { %4250 = vmatpush.msrb.mxu2 %v4198_v12 }
0x1111   :  { %4251 = vmatpush.msrb.mxu2 %v4197_v44 }
0x1113   :  { %4252 = vmatpush.msrb.mxu2 %v4196_v62 }
0x1114   :  { %5277 = vmatmul.msk.f32.gmra.mxu1 %vm8979_vm13, %v200_v29 }
0x111c   :  { %5278 = vmatmul.msk.f32.gmra.mxu1 %vm8980_vm15, %v201_v32 }
0x1124   :  { %5279 = vmatmul.msk.f32.gmra.mxu1 %vm8981_vm1, %v202_v47 }
0x1161   :  { %v3256_v27 = vpop.permute.xlu2 %3255 }
0x1162   :  { %v8073_v39 = vsel %vm3232_vm11, %v3256_v27, %v7825_v37 }
0x1163   :  { %5254 = vmatmul.msk.f32.vlgmr.msra.gmra.mxu2 %vm8976_vm14, %v8073_v39 }
0x1169   :  { %v4172_v27 = vpop.f32.mrf.mxu1 }
0x116a   :  { %v4173_v29 = vadd.f32 %v8144_v20, %v4172_v27 }
0x116c   :  { %5280 = vmatmul.msk.f32.vlgmr.msrb.gmra.mxu2 %vm4212_vm2, %v4173_v29 }
0x11e6   :  { %v3305_v51 = vpop.f32.mrf.mxu2 }
0x11e7   :  { %v3309_v4 = vrot.slane %v3305_v51, 2  ;;  %v3310_v63 = vrot.slane %v3305_v51, 3  ;;  %v3311_v15 = vrot.slane %v3305_v51, 4  ;;  %v3312_v34 = vrot.slane %v3305_v51, 5 }
0x11e8   :  { %v3313_v14 = vrot.slane %v3305_v51, 6  ;;  %v3314_v8 = vrot.slane %v3305_v51, 7  ;;  %v3315_v1 = vrot.slane %v3305_v51, 1  ;;  %v8113_v31 = vadd.f32 %v3305_v51, %v6435_v38 }
0x11e9   :  { %v8081_v37 = vadd.f32 %v3309_v4, %v6419_v19  ;;  %v8084_v61 = vadd.f32 %v3310_v63, %v6421_v22  ;;  %v8087_v56 = vadd.f32 %v3311_v15, %v6425_v26  ;;  %v8094_v9 = vadd.f32 %v3312_v34, %v6427_v30  ;;  %v4175_v63 = vpop.f32.mrf.mxu1 }
0x11ea   :  { %v8097_v7 = vadd.f32 %v3313_v14, %v6438_v41  ;;  %v8100_v11 = vadd.f32 %v3314_v8, %v6444_v48  ;;  %v8110_v13 = vadd.f32 %v3315_v1, %v6433_v36  ;;  %v4176_v32 = vadd.f32 %v8144_v20, %v4175_v63 }
0x11eb   :  { %5821 = vtanh.f32 %v8081_v37  ;;  %v5256_v25 = vmul.f32 -1.442695, %v8084_v61  ;;  %v5255_v4 = vmul.f32 -1.442695, %v8081_v37  ;;  %v5257_v34 = vmul.f32 -1.442695, %v8087_v56 }
0x11ec   :  { %5823 = vtanh.f32 %v8084_v61  ;;  %5281 = vmatmul.msk.f32.gmra.mxu2 %vm4212_vm2, %v4176_v32  ;;  %v5258_v14 = vmul.f32 -1.442695, %v8094_v9  ;;  %v5260_v1 = vmul.f32 -1.442695, %v8100_v11 }
0x11ed   :  { %5825 = vtanh.f32 %v8087_v56  ;;  %v5262_v56 = vmul.f32 -1.442695, %v8110_v13 }
0x11ee   :  { %5827 = vtanh.f32 %v8094_v9 }
0x11ef   :  { %5829 = vtanh.f32 %v8097_v7 }
0x11f0   :  { %5831 = vtanh.f32 %v8100_v11 }
0x11f1   :  { %v5822_v42 = vpop.eup %5821  ;;  %5833 = vtanh.f32 %v8110_v13  ;;  %v4178_v8 = vpop.f32.mrf.mxu1 }
0x11f2   :  { %v5824_v18 = vpop.eup %5823  ;;  %3540 = vrot.lane.b32.xlu1 %v5822_v42, %s6230_s6  ;;  %5835 = vtanh.f32 %v8113_v31 }
0x11f3   :  { %v5826_v50 = vpop.eup %5825  ;;  %3542 = vrot.lane.b32.xlu2 %v5824_v18, %s6230_s6  ;;  %5837 = vpow2.f32 %v5256_v25  ;;  %v4179_v18 = vadd.f32 %v8144_v20, %v4178_v8 }
0x11f4   :  { %3544 = vrot.lane.b32.xlu0 %v5826_v50, %s6230_s6  ;;  %v5828_v2 = vpop.eup %5827 }
0x11f5   :  { %v5830_v53 = vpop.eup %5829  ;;  %5282 = vmatmul.msk.f32.gmra.mxu2 %vm4212_vm2, %v4179_v18 }
0x11f6   :  { %v5832_v40 = vpop.eup %5831 }
0x11f7   :  { %v5834_v52 = vpop.eup %5833 }
0x11f8   :  { %v5836_v57 = vpop.eup %5835 }
0x11f9   :  { %v5838_v6 = vpop.eup %5837 }
0x11fa   :  { %3546 = vrot.lane.b32.xlu1 %v5828_v2, %s6230_s6  ;;  %v3357_v17 = vadd.f32 1.0, %v5838_v6 }
0x11fb   :  { %3548 = vrot.lane.b32.xlu2 %v5830_v53, %s6230_s6 }
0x11fc   :  { %3550 = vrot.lane.b32.xlu0 %v5832_v40, %s6230_s6  ;;  %5839 = vrcp.f32 %v3357_v17  ;;  %v3390_v2 = vand.u32 2147483648, %v3357_v17  ;;  %vm3384_vm11 = vweird.f32 %v3357_v17  ;;  %v3388_v9 = vand.u32 2147483647, %v3357_v17 }
0x11fd   :  { %5841 = vpow2.f32 %v5255_v4  ;;  %v5259_v40 = vmul.f32 -1.442695, %v8097_v7 }
0x11fe   :  { %5843 = vpow2.f32 %v5257_v34  ;;  %v3391_v59 = vor.u32 1.1754944e-38, %v3390_v2  ;;  %vm3389_vm0 = vcmp.eq.f32.partialorder %v3388_v9, 8.507059e+37 }
0x11ff   :  { %5845 = vpow2.f32 %v5258_v14 }
0x1202   :  { %3554 = vrot.lane.b32.xlu1 %v5834_v52, %s6230_s6  ;;  %v5840_v51 = vpop.eup %5839  ;;  %v5261_v52 = vmul.f32 -1.442695, %v8113_v31 }
0x1203   :  { %3552 = vrot.lane.b32.xlu2 %v5836_v57, %s6230_s6  ;;  %v3380_v15 = vmul.f32 %v5840_v51, %v3357_v17  ;;  %v5842_v47 = vpop.eup %5841  ;;  %vm3385_vm3 = vweird.f32 %v5840_v51  ;;  %v4181_v57 = vpop.f32.mrf.mxu1 }
0x1204   :  { %3500 = vrot.lane.b32.xlu0 %v3493_v33, %s6231_s23  ;;  %v8154_v37 = vadd.f32 1.0, %v5842_v47  ;;  %v5844_v53 = vpop.eup %5843  ;;  %vm3386_vm14 = vmor %vm3384_vm11, %vm3385_vm3  ;;  %v4182_v0 = vadd.f32 %v8144_v20, %v4181_v57 }
0x1205   :  { %v3381_v61 = vsub.f32 1.0, %v3380_v15  ;;  %v5846_v5 = vpop.eup %5845  ;;  %v8161_v16 = vadd.f32 1.0, %v5844_v53 }
0x1206   :  { %5847 = vrcp.f32 %v8154_v37  ;;  %v8163_v11 = vadd.f32 1.0, %v5846_v5  ;;  %5283 = vmatmul.msk.f32.gmra.mxu2 %vm4212_vm2, %v4182_v0  ;;  %v3375_v15 = vand.u32 2147483648, %v8154_v37  ;;  %vm3369_vm13 = vweird.f32 %v8154_v37 }
0x1207   :  { %v3382_v42 = vmul.f32 %v5840_v51, %v3381_v61  ;;  %5849 = vpow2.f32 %v5260_v1  ;;  %v3373_v61 = vand.u32 2147483647, %v8154_v37 }
0x1208   :  { %5851 = vpow2.f32 %v5262_v56  ;;  %v3376_v2 = vor.u32 1.1754944e-38, %v3375_v15  ;;  %v3418_v0 = vand.u32 2147483647, %v8163_v11 }
0x1209   :  { %v3383_v50 = vadd.f32 %v5840_v51, %v3382_v42  ;;  %5853 = vpow2.f32 %v5259_v40  ;;  %vm3374_vm1 = vcmp.eq.f32.partialorder %v3373_v61, 8.507059e+37 }
0x120a   :  { %3502 = vrot.lane.b32.xlu1 %v3494_v54, %s6231_s23  ;;  %5855 = vrcp.f32 %v8161_v16 }
0x120b   :  { %3504 = vrot.lane.b32.xlu2 %v3495_v46, %s6231_s23  ;;  %v3387_v60 = vsel %vm3386_vm14, %v5840_v51, %v3383_v50  ;;  %5857 = vrcp.f32 %v8163_v11  ;;  %v4184_v6 = vpop.f32.mrf.mxu1  ;;  %vm3399_vm14 = vweird.f32 %v8161_v16 }
0x120c   :  { %3506 = vrot.lane.b32.xlu0 %v3496_v24, %s6231_s23  ;;  %v8165_v58 = vsel %vm3389_vm0, %v3391_v59, %v3387_v60  ;;  %v5848_v7 = vpop.eup %5847  ;;  %5859 = vpow2.f32 %v5261_v52  ;;  %v4185_v55 = vadd.f32 %v8144_v20, %v4184_v6  ;;  %v3405_v52 = vand.u32 2147483648, %v8161_v16 }
0x120d   :  { %v5850_v33 = vpop.eup %5849  ;;  %v3365_v35 = vmul.f32 %v5848_v7, %v8154_v37  ;;  %vm3370_vm12 = vweird.f32 %v5848_v7 }
0x120e   :  { %v5852_v45 = vpop.eup %5851  ;;  %v8175_v31 = vadd.f32 1.0, %v5850_v33  ;;  %5284 = vmatmul.msk.f32.gmra.mxu2 %vm4212_vm2, %v4185_v55  ;;  %vm3371_vm15 = vmor %vm3369_vm13, %vm3370_vm12  ;;  %v3403_v33 = vand.u32 2147483647, %v8161_v16  ;;  %vm3414_vm12 = vweird.f32 %v8163_v11  ;;  %v3406_v55 = vor.u32 1.1754944e-38, %v3405_v52 }
0x120f   :  { %v5854_v54 = vpop.eup %5853  ;;  %v8177_v46 = vadd.f32 1.0, %v5852_v45 }
0x1210   :  { %v8179_v24 = vpop.eup %5855  ;;  %5861 = vrcp.f32 %v8175_v31 }
0x1211   :  { %v3395_v17 = vmul.f32 %v8179_v24, %v8161_v16  ;;  %5863 = vrcp.f32 %v8177_v46  ;;  %vm3400_vm3 = vweird.f32 %v8179_v24 }
0x1212   :  { %vm8230_vm0 = vmor %vm3399_vm14, %vm3400_vm3  ;;  %vm3419_vm3 = vcmp.eq.f32.partialorder %v3418_v0, 8.507059e+37 }
0x1213   :  { %3510 = vrot.lane.b32.xlu2 %v3498_v43, %s6231_s23  ;;  %v8181_v43 = vadd.f32 1.0, %v5854_v54  ;;  %v3396_v62 = vsub.f32 1.0, %v3395_v17  ;;  %v4187_v34 = vpop.f32.mrf.mxu1 }
0x1214   :  { %3508 = vrot.lane.b32.xlu0 %v3497_v28, %s6231_s23  ;;  %v3366_v28 = vsub.f32 1.0, %v3365_v35  ;;  %v4188_v47 = vadd.f32 %v8144_v20, %v4187_v34 }
0x1215   :  { %5865 = vrcp.f32 %v8181_v43  ;;  %v3397_v14 = vmul.f32 %v8179_v24, %v3396_v62 }
0x1216   :  { %v3367_v12 = vmul.f32 %v5848_v7, %v3366_v28  ;;  %5285 = vmatmul.msk.f32.gmra.mxu2 %vm4212_vm2, %v4188_v47  ;;  %v3435_v47 = vand.u32 2147483648, %v8181_v43 }
0x1217   :  { %v3398_v56 = vadd.f32 %v8179_v24, %v3397_v14  ;;  %v3450_v14 = vand.u32 2147483648, %v8175_v31 }
0x1218   :  { %v3368_v51 = vadd.f32 %v5848_v7, %v3367_v12  ;;  %v3436_v52 = vor.u32 1.1754944e-38, %v3435_v47 }
0x1219   :  { %v3402_v16 = vsel %vm8230_vm0, %v8179_v24, %v3398_v56  ;;  %vm3444_vm0 = vweird.f32 %v8175_v31 }
0x121a   :  { %v3372_v42 = vsel %vm3371_vm15, %v5848_v7, %v3368_v51  ;;  %v3420_v7 = vand.u32 2147483648, %v8163_v11 }
0x121b   :  { %3514 = vrot.lane.b32.xlu2 %v3499_v10, %s6231_s23  ;;  %v8183_v10 = vpop.eup %5857  ;;  %v8220_v9 = vsel %vm3374_vm1, %v3376_v2, %v3372_v42  ;;  %v4190_v45 = vpop.f32.mrf.mxu1  ;;  %vm3404_vm1 = vcmp.eq.f32.partialorder %v3403_v33, 8.507059e+37  ;;  %v3433_v2 = vand.u32 2147483647, %v8181_v43 }
0x121c   :  { %v5860_v25 = vpop.eup %5859  ;;  %v3410_v27 = vmul.f32 %v8183_v10, %v8163_v11  ;;  %vm3415_vm11 = vweird.f32 %v8183_v10  ;;  %v3421_v12 = vor.u32 1.1754944e-38, %v3420_v7  ;;  %v8256_v62 = vsel %vm3404_vm1, %v3406_v55, %v3402_v16 }
0x121d   :  { %v8193_v44 = vadd.f32 1.0, %v5860_v25  ;;  %v8196_v29 = vpop.eup %5861  ;;  %vm8241_vm13 = vmor %vm3414_vm12, %vm3415_vm11  ;;  %v4191_v25 = vadd.f32 %v8144_v20, %v4190_v45  ;;  %vm3429_vm1 = vweird.f32 %v8181_v43 }
0x121e   :  { %v3411_v4 = vsub.f32 1.0, %v3410_v27  ;;  %v8198_v63 = vpop.eup %5863  ;;  %v3440_v8 = vmul.f32 %v8196_v29, %v8175_v31  ;;  %vm3445_vm11 = vweird.f32 %v8196_v29 }
0x121f   :  { %5867 = vrcp.f32 %v8193_v44  ;;  %v8202_v32 = vpop.eup %5865  ;;  %v3470_v50 = vmul.f32 %v8198_v63, %v8177_v46  ;;  %5286 = vmatmul.msk.f32.gmra.mxu2 %vm4212_vm2, %v4191_v25  ;;  %vm3475_vm14 = vweird.f32 %v8198_v63  ;;  %vm8271_vm12 = vmor %vm3444_vm0, %vm3445_vm11  ;;  %vm3434_vm0 = vcmp.eq.f32.partialorder %v3433_v2, 8.507059e+37 }
0x1220   :  { %v3412_v18 = vmul.f32 %v8183_v10, %v3411_v4  ;;  %v3425_v1 = vmul.f32 %v8202_v32, %v8181_v43  ;;  %v3441_v40 = vsub.f32 1.0, %v3440_v8  ;;  %vm3430_vm15 = vweird.f32 %v8202_v32 }
0x1221   :  { %v3471_v59 = vsub.f32 1.0, %v3470_v50  ;;  %v3480_v8 = vand.u32 2147483648, %v8177_v46  ;;  %v3478_v50 = vand.u32 2147483647, %v8177_v46  ;;  %vm8291_vm11 = vmor %vm3429_vm1, %vm3430_vm15  ;;  %v3465_v45 = vand.u32 2147483648, %v8193_v44 }
0x1222   :  { %v3413_v60 = vadd.f32 %v8183_v10, %v3412_v18  ;;  %v3442_v54 = vmul.f32 %v8196_v29, %v3441_v40  ;;  %v3448_v18 = vand.u32 2147483647, %v8175_v31 }
0x1223   :  { %v3472_v6 = vmul.f32 %v8198_v63, %v3471_v59  ;;  %v3466_v28 = vor.u32 1.1754944e-38, %v3465_v45 }
0x1224   :  { %v3417_v11 = vsel %vm8241_vm13, %v8183_v10, %v3413_v60  ;;  %v3443_v24 = vadd.f32 %v8196_v29, %v3442_v54  ;;  %vm3474_vm13 = vweird.f32 %v8177_v46  ;;  %v3451_v60 = vor.u32 1.1754944e-38, %v3450_v14 }
0x1225   :  { %v8216_v37 = vpop.eup %5867  ;;  %v8260_v10 = vsel %vm3419_vm3, %v3421_v12, %v3417_v11  ;;  %v3473_v61 = vadd.f32 %v8198_v63, %v3472_v6  ;;  %vm8284_vm3 = vmor %vm3474_vm13, %vm3475_vm14  ;;  %vm3449_vm15 = vcmp.eq.f32.partialorder %v3448_v18, 8.507059e+37  ;;  %vm3479_vm14 = vcmp.eq.f32.partialorder %v3478_v50, 8.507059e+37 }
0x1226   :  { %v3447_v43 = vsel %vm8271_vm12, %v8196_v29, %v3443_v24  ;;  %vm3460_vm13 = vweird.f32 %v8216_v37 }
0x1227   :  { %v8307_v29 = vsel %vm3449_vm15, %v3451_v60, %v3447_v43 }
0x124d   :  { %v3543_v13 = vpop.permute.xlu2 %3542 }
0x124e   :  { %v3565_v21 = vmul.f32 %v3543_v13, %v8165_v58  ;;  %v3426_v13 = vsub.f32 1.0, %v3425_v1  ;;  %v4193_v1 = vpop.f32.mrf.mxu1 }
0x124f   :  { %v4194_v31 = vadd.f32 %v8144_v20, %v4193_v1 }
0x1250   :  { %3582 = vrot.lane.b32.xlu2 %v3565_v21, %s6231_s23  ;;  %v3455_v21 = vmul.f32 %v8216_v37, %v8193_v44  ;;  %v3427_v17 = vmul.f32 %v8202_v32, %v3426_v13  ;;  %v3481_v13 = vor.u32 1.1754944e-38, %v3480_v8 }
0x1251   :  { %5287 = vmatmul.msk.f32.gmra.mxu2 %vm4212_vm2, %v4194_v31  ;;  %vm3459_vm2 = vweird.f32 %v8193_v44 }
0x1252   :  { %v3456_v27 = vsub.f32 1.0, %v3455_v21  ;;  %v3428_v34 = vadd.f32 %v8202_v32, %v3427_v17  ;;  %vm3461_vm12 = vmor %vm3459_vm2, %vm3460_vm13  ;;  %vm4552_vm13 = vcmask 64512  }
0x1254   :  { %v3457_v46 = vmul.f32 %v8216_v37, %v3456_v27  ;;  %v3432_v20 = vsel %vm8291_vm11, %v8202_v32, %v3428_v34  ;;  %vm4281_vm11 = vcmask 261120  }
0x1255   :  { %v3549_v56 = vpop.permute.xlu2 %3548  ;;  %v8311_v21 = vsel %vm3434_vm0, %v3436_v52, %v3432_v20 }
0x1256   :  { %v3458_v32 = vadd.f32 %v8216_v37, %v3457_v46  ;;  %v3568_v0 = vmul.f32 %v3549_v56, %v8311_v21 }
0x1258   :  { %v3462_v54 = vsel %vm3461_vm12, %v8216_v37, %v3458_v32 }
0x125d   :  { %v3553_v25 = vpop.permute.xlu2 %3552 }
0x1264   :  { %v3541_v53 = vpop.permute.xlu1 %3540 }
0x1265   :  { %v3564_v5 = vmul.f32 %v3541_v53, %v8220_v9 }
0x1266   :  { %v3545_v35 = vpop.permute.xlu0 %3544 }
0x1267   :  { %3580 = vrot.lane.b32.xlu1 %v3564_v5, %s6231_s23  ;;  %v3566_v4 = vmul.f32 %v3545_v35, %v8256_v62  ;;  %v3477_v5 = vsel %vm8284_vm3, %v8198_v63, %v3473_v61  ;;  %v3463_v35 = vand.u32 2147483647, %v8193_v44  ;;  %v3505_v44 = vpop.permute.xlu2 %3504  ;;  %v8339_v61 = vld [vmem:[%s8902_s10] ss:$0 sm:$0xff]  ;;  %vm3660_vm3 = vcmp.ge.s32.totalorder %v8032_v3, 7 }
0x1268   :  { %v8309_v7 = vsel %vm3479_vm14, %v3481_v13, %v3477_v5  ;;  %v3526_v40 = vmul.f32 %v3505_v44, %v8256_v62  ;;  %vm8992_vm14 = vcmask 130048  }
0x1269   :  { %vm3464_vm1 = vcmp.eq.f32.partialorder %v3463_v35, 8.507059e+37 }
0x126a   :  { %v8324_v16 = vsel %vm3464_vm1, %v3466_v28, %v3462_v54 }
0x126b   :  { %v3570_v11 = vmul.f32 %v3553_v25, %v8324_v16 }
0x126c   :  { %v3547_v51 = vpop.permute.xlu1 %3546 }
0x126d   :  { %v3567_v15 = vmul.f32 %v3547_v51, %v8260_v10  ;;  %v8332_v51 = vpop.f32.mrf.mxu2 }
0x126e   :  { %v3551_v59 = vpop.permute.xlu0 %3550 }
0x126f   :  { %3586 = vrot.lane.b32.xlu0 %v3567_v15, %s6231_s23  ;;  %3584 = vrot.lane.b32.xlu1 %v3566_v4, %s6231_s23  ;;  %v3569_v57 = vmul.f32 %v3551_v59, %v8307_v29  ;;  %v3511_v6 = vpop.permute.xlu2 %3510 }
0x1270   :  { %v3529_v54 = vmul.f32 %v3511_v6, %v8307_v29 }
0x1274   :  { %v3555_v63 = vpop.permute.xlu1 %3554 }
0x1275   :  { %v3571_v33 = vmul.f32 %v3555_v63, %v8309_v7  ;;  %v8334_v4 = vpop.f32.mrf.mxu2 }
0x1276   :  { %v3501_v15 = vpop.permute.xlu0 %3500 }
0x1277   :  { %3590 = vrot.lane.b32.xlu0 %v3569_v57, %s6231_s23  ;;  %3594 = vrot.lane.b32.xlu2 %v3571_v33, %s6231_s23  ;;  %v3515_v17 = vpop.permute.xlu2 %3514  ;;  %v3524_v42 = vmul.f32 %v3501_v15, %v8220_v9 }
0x1278   :  { %3588 = vrot.lane.b32.xlu1 %v3568_v0, %s6231_s23  ;;  %v3531_v32 = vmul.f32 %v3515_v17, %v8309_v7 }
0x127c   :  { %v3503_v55 = vpop.permute.xlu1 %3502 }
0x127d   :  { %v3525_v12 = vmul.f32 %v3503_v55, %v8165_v58  ;;  %v4260_v34 = vpop.f32.mrf.mxu2 }
0x127e   :  { %v8342_v14 = vadd.f32 %v8339_v61, %v4260_v34  ;;  %v3507_v8 = vpop.permute.xlu0 %3506 }
0x127f   :  { %3592 = vrot.lane.b32.xlu0 %v3570_v11, %s6231_s23  ;;  %v3527_v46 = vmul.f32 %v3507_v8, %v8260_v10 }
0x1280   :  { %3512 = vrot.lane.b32.xlu1 %v8122_v49, %s6231_s23 }
0x1286   :  { %v3509_v18 = vpop.permute.xlu0 %3508 }
0x1287   :  { %v3528_v28 = vmul.f32 %v3509_v18, %v8311_v21 }
0x1289   :  { %v8344_v47 = vpop.f32.mrf.mxu2 }
0x1291   :  { %v4266_v53 = vpop.f32.mrf.mxu2 }
0x1299   :  { %v4269_v57 = vpop.f32.mrf.mxu2 }
0x129a   :  { %v8354_v0 = vadd.f32 %v8339_v61, %v4269_v57 }
0x12a2   :  { %v4272_v3 = vpop.f32.mrf.mxu2 }
0x12aa   :  { %v3583_v27 = vpop.permute.xlu2 %3582 }
0x12ab   :  { %v3605_v37 = vadd.f32 %v3583_v27, %v3525_v12 }
0x12ad   :  { %5869 = vtanh.f32 %v3605_v37  ;;  %v3701_v2 = vrot.slane %v3605_v37, 5 }
0x12b3   :  { %v5870_v24 = vpop.eup %5869 }
0x12b4   :  { %3630 = vrot.lane.b32.xlu2 %v5870_v24, %s6232_s25 }
0x12d1   :  { %v3595_v13 = vpop.permute.xlu2 %3594 }
0x12d2   :  { %v3611_v45 = vadd.f32 %v3595_v13, %v3531_v32 }
0x12d9   :  { %v3581_v50 = vpop.permute.xlu1 %3580 }
0x12da   :  { %v3604_v1 = vadd.f32 %v3581_v50, %v3524_v42 }
0x12dc   :  { %5871 = vtanh.f32 %v3604_v1  ;;  %v3700_v56 = vrot.slane %v3604_v1, 6 }
0x12de   :  { %v3702_v31 = vsel %vm637_vm4, %v3701_v2, %v3700_v56  ;;  %v3712_v2 = vrot.slane %v3611_v45, 7 }
0x12e1   :  { %v3587_v43 = vpop.permute.xlu0 %3586  ;;  %v3585_v5 = vpop.permute.xlu1 %3584 }
0x12e2   :  { %v5872_v20 = vpop.eup %5871  ;;  %v3607_v60 = vadd.f32 %v3587_v43, %v3527_v46  ;;  %v3606_v59 = vadd.f32 %v3585_v5, %v3526_v40  ;;  %v3661_v40 = vsel %vm3660_vm3, 1, %v6233_v23  ;;  %v8376_v43 = vadd.f32 %v8339_v61, %v8334_v4  ;;  %v4275_v4 = vpop.f32.mrf.mxu2 }
0x12e3   :  { %3628 = vrot.lane.b32.xlu1 %v5872_v20, %s6232_s25  ;;  %v8380_v5 = vadd.f32 %v8339_v61, %v8332_v51  ;;  %v8387_v20 = vadd.f32 %v8339_v61, %v4266_v53  ;;  %v8398_v51 = vadd.f32 %v8339_v61, %v4275_v4  ;;  %v8406_v53 = vadd.f32 %v8339_v61, %v4272_v3 }
0x12e4   :  { %5873 = vtanh.f32 %v3607_v60  ;;  %v3705_v52 = vrot.slane %v3607_v60, 3  ;;  %v3703_v63 = vrot.slane %v3606_v59, 4  ;;  %v8391_v60 = vadd.f32 %v8339_v61, %v8344_v47 }
0x12e5   :  { %5875 = vtanh.f32 %v3606_v59  ;;  %v8403_v59 = vld [vmem:[%s8895_s3] sm:$0xff]  ;;  %s6236_s3 = smov 64  }
0x12e6   :  { %v3704_v33 = vsel %vm640_vm5, %v3703_v63, %v3702_v31  ;;  %5877 = vtanh.f32 %v3611_v45  ;;  %v4497_v47 = vrot.slane %v8403_v59, 1  ;;  %v4498_v13 = vrot.slane %v8403_v59, 2 }
0x12e7   :  { %v3706_v35 = vsel %vm643_vm6, %v3705_v52, %v3704_v33  ;;  %v4499_v32 = vrot.slane %v8403_v59, 3  ;;  %v4501_v61 = vrot.slane %v8403_v59, 5  ;;  %v4503_v45 = vrot.slane %v8403_v59, 7 }
0x12e8   :  { %v8414_v52 = vperm.slane %v4497_v47, 0  ;;  %v8416_v63 = vperm.slane %v4498_v13, 0 }
0x12e9   :  { %v3591_v25 = vpop.permute.xlu0 %3590  ;;  %v8422_v57 = vperm.slane %v4499_v32, 0  ;;  %v8424_v33 = vperm.slane %v4501_v61, 0  ;;  %v4500_v61 = vrot.slane %v8403_v59, 4 }
0x12ea   :  { %v5874_v11 = vpop.eup %5873  ;;  %v3609_v44 = vadd.f32 %v3591_v25, %v3529_v54  ;;  %v3589_v55 = vpop.permute.xlu1 %3588 }
0x12eb   :  { %v5876_v12 = vpop.eup %5875  ;;  %v3608_v17 = vadd.f32 %v3589_v55, %v3528_v28  ;;  %3634 = vrot.lane.b32.xlu1 %v5874_v11, %s6232_s25 }
0x12ec   :  { %5879 = vtanh.f32 %v3609_v44  ;;  %v3709_v27 = vrot.slane %v3609_v44, 1  ;;  %3632 = vrot.lane.b32.xlu0 %v5876_v12, %s6232_s25  ;;  %v5878_v15 = vpop.eup %5877 }
0x12ed   :  { %5881 = vtanh.f32 %v3608_v17  ;;  %v3707_v37 = vrot.slane %v3608_v17, 2 }
0x12ef   :  { %v3708_v24 = vsel %vm646_vm7, %v3707_v37, %v3706_v35  ;;  %v8429_v35 = vperm.slane %v4503_v45, 0  ;;  %v8462_v45 = vperm.slane %v4500_v61, 0 }
0x12f0   :  { %v3710_v6 = vsel %vm649_vm8, %v3709_v27, %v3708_v24 }
0x12f1   :  { %v3593_v50 = vpop.permute.xlu0 %3592 }
0x12f2   :  { %v5880_v34 = vpop.eup %5879  ;;  %v3513_v8 = vpop.permute.xlu1 %3512 }
0x12f3   :  { %v5882_v42 = vpop.eup %5881  ;;  %v3530_v18 = vmul.f32 %v3513_v8, %v8324_v16  ;;  %3642 = vrot.lane.b32.xlu1 %v5878_v15, %s6232_s25 }
0x12f4   :  { %3638 = vrot.lane.b32.xlu0 %v5880_v34, %s6232_s25  ;;  %3636 = vrot.lane.b32.xlu2 %v5882_v42, %s6232_s25 }
0x12f5   :  { %v3610_v1 = vadd.f32 %v3593_v50, %v3530_v18 }
0x12f7   :  { %5883 = vtanh.f32 %v3610_v1  ;;  %v3711_v56 = vsel %vm652_vm9, %v3610_v1, %v3710_v6 }
0x12f8   :  { %v8370_v31 = vsel %vm655_vm10, %v3712_v2, %v3711_v56 }
0x12fc   :  { %3663 = vperm.xlu0 %5350, %v3661_v40  }
0x12fd   :  { %v5884_v46 = vpop.eup %5883 }
0x12fe   :  { %3640 = vrot.lane.b32.xlu2 %v5884_v46, %s6232_s25 }
0x1304   :  { %4307 = vrot.lane.b32.xlu0 %v8376_v43, %s6230_s6 }
0x1306   :  { %4279 = vrot.lane.b32.xlu2 %v8380_v5, %s6230_s6 }
0x130c   :  { %4388 = vrot.lane.b32.xlu0 %v8387_v20, %s6230_s6 }
0x130e   :  { %4361 = vrot.lane.b32.xlu2 %v8391_v60, %s6230_s6  ;;  %v3631_v54 = vpop.permute.xlu2 %3630 }
0x130f   :  { %v3653_v55 = vmul.f32 %v3631_v54, %v8165_v58  ;;  %v4502_v54 = vrot.slane %v8403_v59, 6 }
0x1311   :  { %v3675_v6 = vrot.slane %v3653_v55, 5 }
0x1314   :  { %4469 = vrot.lane.b32.xlu0 %v8398_v51, %s6230_s6 }
0x1316   :  { %4442 = vrot.lane.b32.xlu2 %v8406_v53, %s6230_s6 }
0x131c   :  { %4516 = vperm.xlu0 %5350, %v8414_v52  }
0x131e   :  { %4519 = vperm.xlu2 %5351, %v8416_v63  }
0x1324   :  { %4522 = vperm.xlu0 %5350, %v8422_v57  }
0x1326   :  { %4528 = vperm.xlu2 %5351, %v8424_v33  }
0x132e   :  { %4534 = vperm.xlu2 %5351, %v8429_v35  }
0x134e   :  { %v3637_v28 = vpop.permute.xlu2 %3636 }
0x134f   :  { %v3656_v42 = vmul.f32 %v3637_v28, %v8311_v21  ;;  %v8466_v28 = vperm.slane %v4502_v54, 0  ;;  %v5353_v54 = vpack.i.bf16 %v8342_v14, %v8380_v5 }
0x1355   :  { %v3629_v25 = vpop.permute.xlu1 %3628 }
0x1356   :  { %v3652_v11 = vmul.f32 %v3629_v25, %v8220_v9 }
0x1358   :  { %v3641_v44 = vpop.permute.xlu2 %3640  ;;  %v3674_v27 = vrot.slane %v3652_v11, 6 }
0x1359   :  { %v3658_v40 = vmul.f32 %v3641_v44, %v8324_v16  ;;  %v4504_v16 = vperm.slane %v8403_v59, 0 }
0x135a   :  { %v3676_v34 = vsel %vm637_vm4, %v3675_v6, %v3674_v27 }
0x135d   :  { %v3635_v12 = vpop.permute.xlu1 %3634 }
0x135e   :  { %v3633_v17 = vpop.permute.xlu0 %3632  ;;  %v3655_v24 = vmul.f32 %v3635_v12, %v8260_v10  ;;  %v3681_v10 = vrot.slane %v3656_v42, 2 }
0x135f   :  { %v3654_v37 = vmul.f32 %v3633_v17, %v8256_v62 }
0x1360   :  { %v3679_v8 = vrot.slane %v3655_v24, 3  ;;  %v4280_v50 = vpop.permute.xlu2 %4279 }
0x1361   :  { %v3677_v15 = vrot.slane %v3654_v37, 4  ;;  %5288 = vmatpush.xpose.msk.msrb.mxu3 %vm4281_vm11, %v4280_v50  ;;  %v4495_v37 = vlaneseq }
0x1363   :  { %v3678_v18 = vsel %vm640_vm5, %v3677_v15, %v3676_v34  ;;  %v8500_v6 = vand.u32 127, %v4495_v37 }
0x1364   :  { %v3680_v58 = vsel %vm643_vm6, %v3679_v8, %v3678_v18 }
0x1365   :  { %v3643_v9 = vpop.permute.xlu1 %3642  ;;  %v3682_v21 = vsel %vm646_vm7, %v3681_v10, %v3680_v58 }
0x1366   :  { %v3639_v1 = vpop.permute.xlu0 %3638  ;;  %v3659_v62 = vmul.f32 %v3643_v9, %v8309_v7 }
0x1367   :  { %v3657_v2 = vmul.f32 %v3639_v1, %v8307_v29 }
0x1368   :  { %v3686_v3 = vrot.slane %v3659_v62, 7  ;;  %v4362_v12 = vpop.permute.xlu2 %4361 }
0x1369   :  { %v3683_v56 = vrot.slane %v3657_v2, 1 }
0x136b   :  { %v3684_v46 = vsel %vm649_vm8, %v3683_v56, %v3682_v21 }
0x136c   :  { %v3685_v4 = vsel %vm652_vm9, %v3658_v40, %v3684_v46 }
0x136d   :  { %v3687_v47 = vsel %vm655_vm10, %v3686_v3, %v3685_v4 }
0x136e   :  { %v8448_v13 = vpop.permute.xlu0 %3663  ;;  %3688 = vrot.lane.b32.xlu1 %v3687_v47, %s6235_s5 }
0x136f   :  { %vm3665_vm15 = vcmp.eq.s32.totalorder %v8448_v13, 1 }
0x1376   :  { %v4308_v29 = vpop.permute.xlu0 %4307  ;;  %4334 = vrot.lane.b32.xlu1 %v8342_v14, %s6230_s6 }
0x137e   :  { %v4389_v7 = vpop.permute.xlu0 %4388  ;;  %4415 = vrot.lane.b32.xlu1 %v8354_v0, %s6230_s6 }
0x1386   :  { %v4470_v32 = vpop.permute.xlu0 %4469  ;;  %4513 = vperm.xlu1 %5352, %v4504_v16  }
0x1387   :  { %5302 = vmatpush.xpose.msk.msrb.mxu0 %vm4281_vm11, %v4470_v32 }
0x138a   :  { %5303 = vmatmul.msk.f32.vlgmr.msrb.gmra.mxu0 %vm4281_vm11, %v8398_v51 }
0x138e   :  { %4525 = vperm.xlu1 %5352, %v8462_v45   ;;  %v4517_v18 = vpop.permute.xlu0 %4516 }
0x138f   :  { %vm4537_vm2 = vcmp.lt.s32.totalorder %v8500_v6, %v4517_v18 }
0x1396   :  { %4531 = vperm.xlu1 %5352, %v8466_v28  }
0x13e0   :  { %v3689_v25 = vpop.permute.xlu1 %3688 }
0x13e1   :  { %v8473_v11 = vsel %vm3665_vm15, %v3689_v25, %v8073_v39  ;;  %v4443_v39 = vpop.permute.xlu2 %4442 }
0x13e2   :  { %5263 = vmatmul.msk.f32.vlgmr.msra.gmra.mxu3 %vm8992_vm14, %v8473_v11 }
0x13e3   :  { %5290 = vmatpush.xpose.msk.msra.mxu3 %vm4281_vm11, %v4308_v29 }
0x13e8   :  { %v4335_v44 = vpop.permute.xlu1 %4334 }
0x13e9   :  { %v4520_v27 = vpop.permute.xlu2 %4519 }
0x13ea   :  { %5289 = vmatmul.msk.f32.vlgmr.msrb.gmra.mxu3 %vm4281_vm11, %v8380_v5  ;;  %vm4538_vm1 = vcmp.lt.s32.totalorder %v8500_v6, %v4520_v27 }
0x13eb   :  { %5292 = vmatpush.xpose.msk.msrb.mxu3 %vm4281_vm11, %v4335_v44 }
0x13f0   :  { %v4416_v55 = vpop.permute.xlu1 %4415 }
0x13f1   :  { %5298 = vmatpush.xpose.msk.msra.mxu2 %vm4281_vm11, %v4416_v55  ;;  %v4529_v42 = vpop.permute.xlu2 %4528 }
0x13f2   :  { %5291 = vmatmul.msk.f32.vlgmr.msra.gmra.mxu3 %vm4281_vm11, %v8376_v43  ;;  %vm4541_vm12 = vcmp.lt.s32.totalorder %v8500_v6, %v4529_v42 }
0x13f3   :  { %5294 = vmatpush.xpose.msk.msra.mxu3 %vm4281_vm11, %v4362_v12  ;;  %v5363_v12 = vpack.i.bf16 %v8391_v60, %v8354_v0 }
0x13f4   :  { %5299 = vmatmul.msk.f32.vlgmr.msra.gmra.mxu2 %vm4281_vm11, %v8354_v0 }
0x13f8   :  { %v4514_v24 = vpop.permute.xlu1 %4513 }
0x13f9   :  { %vm4536_vm0 = vcmp.lt.s32.totalorder %v8500_v6, %v4514_v24  ;;  %v4535_v10 = vpop.permute.xlu2 %4534 }
0x13fa   :  { %5293 = vmatmul.msk.f32.vlgmr.msrb.gmra.mxu3 %vm4281_vm11, %v8342_v14  ;;  %vm4543_vm3 = vcmp.lt.s32.totalorder %v8500_v6, %v4535_v10 }
0x13fb   :  { %5296 = vmatpush.xpose.msk.msrb.mxu3 %vm4281_vm11, %v4389_v7 }
0x1400   :  { %v4526_v47 = vpop.permute.xlu1 %4525 }
0x1401   :  { %vm4540_vm14 = vcmp.lt.s32.totalorder %v8500_v6, %v4526_v47 }
0x1402   :  { %5295 = vmatmul.msk.f32.vlgmr.msra.gmra.mxu3 %vm4281_vm11, %v8391_v60 }
0x1403   :  { %5300 = vmatpush.xpose.msk.msra.mxu3 %vm4281_vm11, %v4443_v39  ;;  %v4523_v39 = vpop.permute.xlu0 %4522 }
0x1407   :  { %v4492_v56 = vpop.f32.mrf.mxu0 }
0x1408   :  { %v4551_v21 = vsel %vm4543_vm3, %v4492_v56, -1e+30  ;;  %v4532_v61 = vpop.permute.xlu1 %4531 }
0x1409   :  { %v4574_v3 = vsel %vm4552_vm13, %v4551_v21, -inf }
0x140a   :  { %5297 = vmatmul.msk.f32.vlgmr.msrb.gmra.mxu3 %vm4281_vm11, %v8387_v20 }
0x1412   :  { %5301 = vmatmul.msk.f32.vlgmr.msra.gmra.mxu3 %vm4281_vm11, %v8406_v53 }
0x1465   :  { %v8497_v17 = vpop.f32.mrf.mxu3 }
0x146d   :  { %v4303_v15 = vpop.f32.mrf.mxu3 }
0x146e   :  { %v8503_v34 = vsel %vm4536_vm0, %v4303_v15, -1e+30  ;;  %vm4542_vm0 = vcmp.lt.s32.totalorder %v8500_v6, %v4532_v61 }
0x146f   :  { %v4553_v8 = vsel %vm4552_vm13, %v8503_v34, -inf }
0x1470   :  { %4554 = vmax.xlane.f32.xlu0 %v4553_v8 }
0x1475   :  { %v4330_v9 = vpop.f32.mrf.mxu3 }
0x1476   :  { %v8508_v50 = vsel %vm4537_vm2, %v4330_v9, -1e+30  ;;  %vm4539_vm2 = vcmp.lt.s32.totalorder %v8500_v6, %v4523_v39  ;;  %v5358_v6 = vpack.i.bf16 %v8387_v20, %v8376_v43  ;;  %v3745_v39 = vrot.slane %v8497_v17, 4 }
0x1477   :  { %v4556_v1 = vsel %vm4552_vm13, %v8508_v50, -inf  ;;  %v4438_v58 = vpop.f32.mrf.mxu2 }
0x1478   :  { %v4549_v2 = vsel %vm4541_vm12, %v4438_v58, -1e+30  ;;  %4557 = vmax.xlane.f32.xlu2 %v4556_v1 }
0x1479   :  { %v4568_v62 = vsel %vm4552_vm13, %v4549_v2, -inf }
0x147a   :  { %4569 = vmax.xlane.f32.xlu0 %v4568_v62 }
0x147d   :  { %v4357_v40 = vpop.f32.mrf.mxu3 }
0x147e   :  { %v8516_v46 = vsel %vm4538_vm1, %v4357_v40, -1e+30 }
0x147f   :  { %v4559_v0 = vsel %vm4552_vm13, %v8516_v46, -inf }
0x1482   :  { %4575 = vmax.xlane.f32.xlu0 %v4574_v3 }
0x1485   :  { %v4384_v4 = vpop.f32.mrf.mxu3 }
0x1486   :  { %v4547_v58 = vsel %vm4539_vm2, %v4384_v4, -1e+30 }
0x1487   :  { %v4562_v10 = vsel %vm4552_vm13, %v4547_v58, -inf }
0x148d   :  { %v4411_v29 = vpop.f32.mrf.mxu3 }
0x148e   :  { %v8520_v7 = vsel %vm4540_vm14, %v4411_v29, -1e+30 }
0x148f   :  { %v4565_v32 = vsel %vm4552_vm13, %v8520_v7, -inf }
0x1490   :  { %4566 = vmax.xlane.f32.xlu2 %v4565_v32 }
0x1495   :  { %v4465_v25 = vpop.f32.mrf.mxu3 }
0x1496   :  { %v8527_v44 = vsel %vm4542_vm0, %v4465_v25, -1e+30  ;;  %5354 = vrot.lane.b32.xlu0 %v5353_v54, %s6236_s3 }
0x1497   :  { %v4571_v55 = vsel %vm4552_vm13, %v8527_v44, -inf }
0x1498   :  { %4572 = vmax.xlane.f32.xlu2 %v4571_v55 }
0x149e   :  { %5364 = vrot.lane.b32.xlu0 %v5363_v12, %s6236_s3 }
0x14e3   :  { %v4555_v27 = vpop.xlane.xlu0 %4554 }
0x14e4   :  { %v4577_v4 = vsub.f32 %v8503_v34, %v4555_v27  ;;  %v3743_v34 = vrot.slane %v8497_v17, 2 }
0x14e6   :  { %v4585_v47 = vmul.f32 1.442695, %v4577_v4 }
0x14eb   :  { %v4558_v29 = vpop.xlane.xlu2 %4557 }
0x14ed   :  { %v4570_v14 = vpop.xlane.xlu0 %4569 }
0x14ee   :  { %v4582_v5 = vsub.f32 %v4549_v2, %v4570_v14  ;;  %v3746_v2 = vrot.slane %v8497_v17, 5  ;;  %v8580_v14 = vadd.f32 %v3745_v39, %v6427_v30 }
0x14f0   :  { %v4595_v24 = vmul.f32 1.442695, %v4582_v5 }
0x14f2   :  { %5885 = vpow2.f32 %v4595_v24 }
0x14f5   :  { %v4576_v15 = vpop.xlane.xlu0 %4575 }
0x14f6   :  { %v4584_v8 = vsub.f32 %v4551_v21, %v4576_v15  ;;  %v8549_v21 = vadd.f32 %v3746_v2, %v6438_v41  ;;  %v4578_v41 = vsub.f32 %v8508_v50, %v4558_v29  ;;  %v8572_v50 = vadd.f32 %v3743_v34, %v6421_v22 }
0x14f8   :  { %v8535_v42 = vpop.eup %5885  ;;  %v4599_v18 = vmul.f32 1.442695, %v4584_v8  ;;  %v4587_v32 = vmul.f32 1.442695, %v4578_v41  ;;  %v3742_v41 = vrot.slane %v8497_v17, 1 }
0x14f9   :  { %v4616_v9 = vsel %vm4552_vm13, %v8535_v42, 0.0 }
0x14fa   :  { %5887 = vpow2.f32 %v4599_v18  ;;  %4617 = vadd.xlane.f32.xlu1 %v4616_v9 }
0x14fb   :  { %5889 = vtanh.f32 %v8549_v21 }
0x14fc   :  { %5891 = vpow2.f32 %v4585_v47 }
0x14fd   :  { %5893 = vpow2.f32 %v4587_v32  ;;  %v8611_v32 = vadd.f32 %v3742_v41, %v6419_v19 }
0x14fe   :  { %5895 = vtanh.f32 %v8572_v50 }
0x1500   :  { %v8539_v1 = vpop.eup %5887 }
0x1501   :  { %v4622_v60 = vsel %vm4552_vm13, %v8539_v1, 0.0  ;;  %v5890_v3 = vpop.eup %5889 }
0x1502   :  { %4560 = vmax.xlane.f32.xlu1 %v4559_v0  ;;  %4623 = vadd.xlane.f32.xlu0 %v4622_v60  ;;  %v8558_v61 = vpop.eup %5891 }
0x1503   :  { %v4601_v54 = vsel %vm4552_vm13, %v8558_v61, 0.0  ;;  %v8562_v25 = vpop.eup %5893 }
0x1504   :  { %v4604_v43 = vsel %vm4552_vm13, %v8562_v25, 0.0  ;;  %v5896_v5 = vpop.eup %5895 }
0x1508   :  { %v5355_v62 = vpop.permute.xlu0 %5354 }
0x1509   :  { %v5357_v56 = vunpack.i.h.bf16 %v5355_v62  ;;  %v5356_v40 = vunpack.i.l.bf16 %v5355_v62 }
0x150a   :  { %4563 = vmax.xlane.f32.xlu1 %v4562_v10 }
0x150b   :  { %4662 = vmatpush.msrb.mxu3 %v5356_v40 }
0x150d   :  { %4714 = vmatpush.msra.mxu3 %v5357_v56 }
0x1510   :  { %v5365_v40 = vpop.permute.xlu0 %5364 }
0x1511   :  { %v5367_v47 = vunpack.i.h.bf16 %v5365_v40 }
0x1516   :  { %3981 = vrot.lane.b32.xlu0 %v5890_v3, %s6230_s6 }
0x1523   :  { %5359 = vrot.lane.b32.xlu1 %v5358_v6, %s6236_s3 }
0x154d   :  { %4602 = vadd.xlane.f32.xlu1 %v4601_v54  ;;  %v3744_v54 = vrot.slane %v8497_v17, 3 }
0x1555   :  { %4605 = vadd.xlane.f32.xlu1 %v4604_v43  ;;  %v8618_v43 = vadd.f32 %v3744_v54, %v6425_v26  ;;  %v8630_v26 = vadd.f32 %v8497_v17, %v6433_v36 }
0x156d   :  { %v8566_v20 = vpop.xlane.xlu1 %4617 }
0x156e   :  { %4823 = vrot.lane.b32.xlu1 %v8398_v51, %s6236_s3  ;;  %v4567_v51 = vpop.xlane.xlu2 %4566 }
0x156f   :  { %v4581_v15 = vsub.f32 %v8520_v7, %v4567_v51 }
0x1571   :  { %v4593_v9 = vmul.f32 1.442695, %v4581_v15 }
0x1575   :  { %v4561_v55 = vpop.xlane.xlu1 %4560 }
0x1576   :  { %v4579_v12 = vsub.f32 %v8516_v46, %v4561_v55  ;;  %3714 = vrot.lane.b32.xlu1 %v8370_v31, %s6234_s28  ;;  %v3748_v46 = vrot.slane %v8497_v17, 7  ;;  %v4573_v60 = vpop.xlane.xlu2 %4572  ;;  %v3747_v55 = vrot.slane %v8497_v17, 6 }
0x1577   :  { %v4583_v7 = vsub.f32 %v8527_v44, %v4573_v60 }
0x1578   :  { %v4589_v27 = vmul.f32 1.442695, %v4579_v12  ;;  %v8591_v30 = vadd.f32 %v3748_v46, %v6435_v38  ;;  %v8624_v19 = vadd.f32 %v3747_v55, %v6444_v48  ;;  %v5267_v48 = vmul.f32 -1.442695, %v8580_v14 }
0x1579   :  { %v4597_v62 = vmul.f32 1.442695, %v4583_v7 }
0x157a   :  { %5897 = vpow2.f32 %v4589_v27 }
0x157b   :  { %5899 = vtanh.f32 %v8580_v14 }
0x157d   :  { %v4564_v24 = vpop.xlane.xlu1 %4563 }
0x157e   :  { %v4580_v22 = vsub.f32 %v4547_v58, %v4564_v24  ;;  %3975 = vrot.lane.b32.xlu1 %v5896_v5, %s6230_s6  ;;  %v5366_v24 = vunpack.i.l.bf16 %v5365_v40 }
0x1580   :  { %v8585_v31 = vpop.eup %5897  ;;  %v4591_v8 = vmul.f32 1.442695, %v4580_v22  ;;  %v5265_v22 = vmul.f32 -1.442695, %v8572_v50 }
0x1581   :  { %v4607_v18 = vsel %vm4552_vm13, %v8585_v31, 0.0  ;;  %v5900_v0 = vpop.eup %5899 }
0x1582   :  { %5901 = vpow2.f32 %v4591_v8  ;;  %4608 = vadd.xlane.f32.xlu2 %v4607_v18 }
0x1583   :  { %5903 = vtanh.f32 %v8591_v30 }
0x1584   :  { %5905 = vpow2.f32 %v4593_v9  ;;  %v5268_v9 = vmul.f32 -1.442695, %v8549_v21 }
0x1585   :  { %5907 = vpow2.f32 %v4597_v62 }
0x1586   :  { %3979 = vrot.lane.b32.xlu1 %v5900_v0, %s6230_s6  ;;  %5909 = vtanh.f32 %v8611_v32 }
0x1587   :  { %5911 = vtanh.f32 %v8618_v43 }
0x1588   :  { %v8595_v58 = vpop.eup %5901 }
0x1589   :  { %v4610_v2 = vsel %vm4552_vm13, %v8595_v58, 0.0  ;;  %v5904_v10 = vpop.eup %5903 }
0x158a   :  { %4611 = vadd.xlane.f32.xlu2 %v4610_v2  ;;  %v8600_v38 = vpop.eup %5905 }
0x158b   :  { %v4613_v56 = vsel %vm4552_vm13, %v8600_v38, 0.0  ;;  %v8605_v6 = vpop.eup %5907 }
0x158c   :  { %v4619_v29 = vsel %vm4552_vm13, %v8605_v6, 0.0  ;;  %v5910_v34 = vpop.eup %5909 }
0x158d   :  { %v5912_v39 = vpop.eup %5911 }
0x158e   :  { %3985 = vrot.lane.b32.xlu1 %v5904_v10, %s6230_s6 }
0x1592   :  { %4614 = vadd.xlane.f32.xlu2 %v4613_v56 }
0x1595   :  { %v5360_v3 = vpop.permute.xlu1 %5359 }
0x1596   :  { %v5362_v44 = vunpack.i.h.bf16 %v5360_v3  ;;  %v5361_v4 = vunpack.i.l.bf16 %v5360_v3 }
0x1598   :  { %4688 = vmatpush.msra.mxu0 %v5361_v4  ;;  %4766 = vmatpush.msrb.mxu1 %v5362_v44 }
0x159a   :  { %4740 = vmatpush.msrb.mxu0 %v5367_v47  ;;  %4620 = vadd.xlane.f32.xlu2 %v4619_v29  ;;  %v5264_v47 = vmul.f32 -1.442695, %v8611_v32 }
0x15b2   :  { %4797 = vrot.lane.b32.xlu2 %v8406_v53, %s6236_s3 }
0x15ba   :  { %3973 = vrot.lane.b32.xlu2 %v5910_v34, %s6230_s6 }
0x15c0   :  { %v4603_v12 = vpop.xlane.xlu1 %4602 }
0x15c1   :  { %5913 = vrcp.f32 %v4603_v12 }
0x15c2   :  { %3977 = vrot.lane.b32.xlu2 %v5912_v39, %s6230_s6  ;;  %5915 = vtanh.f32 %v8624_v19 }
0x15c7   :  { %v5914_v53 = vpop.eup %5913 }
0x15c8   :  { %v4633_v27 = vmul.f32 %v5914_v53, %v8558_v61  ;;  %v4606_v51 = vpop.xlane.xlu1 %4605  ;;  %v5916_v5 = vpop.eup %5915 }
0x15c9   :  { %5917 = vrcp.f32 %v4606_v51 }
0x15ca   :  { %3983 = vrot.lane.b32.xlu2 %v5916_v5, %s6230_s6  ;;  %5304 = vmatmul.msk.f32.vlgmr.msrb.gmra.mxu3 %vm4552_vm13, %v4633_v27  ;;  %5919 = vtanh.f32 %v8630_v26 }
0x15cb   :  { %4792 = vmatpush.msrb.mxu3 %v5366_v24  ;;  %5921 = vpow2.f32 %v5267_v48 }
0x15cc   :  { %5923 = vpow2.f32 %v5265_v22 }
0x15cf   :  { %v5918_v46 = vpop.eup %5917 }
0x15d0   :  { %v4634_v36 = vmul.f32 %v5918_v46, %v8562_v25  ;;  %v5920_v17 = vpop.eup %5919  ;;  %v5266_v46 = vmul.f32 -1.442695, %v8618_v43 }
0x15d1   :  { %v5922_v61 = vpop.eup %5921 }
0x15d2   :  { %3987 = vrot.lane.b32.xlu2 %v5920_v17, %s6230_s6  ;;  %5305 = vmatmul.msk.f32.vlgmr.msra.gmra.mxu0 %vm4552_vm13, %v4634_v36  ;;  %v5924_v15 = vpop.eup %5923  ;;  %v3792_v8 = vadd.f32 1.0, %v5922_v61 }
0x15d3   :  { %v3790_v18 = vadd.f32 1.0, %v5924_v15 }
0x15d4   :  { %5925 = vrcp.f32 %v3792_v8  ;;  %vm3847_vm12 = vweird.f32 %v3792_v8  ;;  %v3853_v54 = vand.u32 2147483648, %v3792_v8  ;;  %v3851_v12 = vand.u32 2147483647, %v3792_v8 }
0x15d5   :  { %5927 = vrcp.f32 %v3790_v18  ;;  %v3823_v53 = vand.u32 2147483648, %v3790_v18  ;;  %vm3817_vm14 = vweird.f32 %v3790_v18  ;;  %v3821_v32 = vand.u32 2147483647, %v3790_v18 }
0x15d6   :  { %5929 = vpow2.f32 %v5268_v9  ;;  %v3854_v24 = vor.u32 1.1754944e-38, %v3853_v54  ;;  %vm3852_vm2 = vcmp.eq.f32.partialorder %v3851_v12, 8.507059e+37 }
0x15d7   :  { %v3824_v36 = vor.u32 1.1754944e-38, %v3823_v53 }
0x15da   :  { %v5926_v50 = vpop.eup %5925 }
0x15db   :  { %v5928_v0 = vpop.eup %5927  ;;  %v3843_v25 = vmul.f32 %v5926_v50, %v3792_v8 }
0x15dc   :  { %v5930_v60 = vpop.eup %5929  ;;  %v3813_v7 = vmul.f32 %v5928_v0, %v3790_v18  ;;  %vm3818_vm1 = vweird.f32 %v5928_v0 }
0x15dd   :  { %v3844_v10 = vsub.f32 1.0, %v3843_v25  ;;  %v8647_v56 = vadd.f32 1.0, %v5930_v60  ;;  %vm3819_vm0 = vmor %vm3817_vm14, %vm3818_vm1 }
0x15de   :  { %v3814_v44 = vsub.f32 1.0, %v3813_v7  ;;  %v4624_v7 = vpop.xlane.xlu0 %4623 }
0x15df   :  { %v3845_v4 = vmul.f32 %v5926_v50, %v3844_v10  ;;  %5931 = vrcp.f32 %v8647_v56  ;;  %vm3862_vm1 = vweird.f32 %v8647_v56 }
0x15e0   :  { %v4824_v14 = vpop.permute.xlu1 %4823  ;;  %5933 = vpow2.f32 %v5264_v47  ;;  %v5270_v47 = vmul.f32 -1.442695, %v8591_v30 }
0x15e1   :  { %4844 = vmatpush.msra.mxu1 %v4824_v14  ;;  %v3846_v29 = vadd.f32 %v5926_v50, %v3845_v4 }
0x15e5   :  { %v8659_v39 = vpop.eup %5931 }
0x15e6   :  { %v3858_v48 = vmul.f32 %v8659_v39, %v8647_v56  ;;  %v5934_v8 = vpop.eup %5933 }
0x15e7   :  { %v8682_v25 = vadd.f32 1.0, %v5934_v8 }
0x15e8   :  { %v3715_v2 = vpop.permute.xlu1 %3714  ;;  %v3859_v9 = vsub.f32 1.0, %v3858_v48 }
0x15e9   :  { %v8645_v62 = vsel %vm3665_vm15, %v3715_v2, %v8122_v49  ;;  %v3815_v49 = vmul.f32 %v5928_v0, %v3814_v44  ;;  %vm3848_vm15 = vweird.f32 %v5926_v50  ;;  %v5269_v2 = vmul.f32 -1.442695, %v8624_v19 }
0x15ea   :  { %v3929_v21 = vrot.slane %v8645_v62, 4  ;;  %v3927_v40 = vrot.slane %v8645_v62, 2  ;;  %v3926_v3 = vrot.slane %v8645_v62, 1  ;;  %v3930_v41 = vrot.slane %v8645_v62, 5  ;;  %vm8662_vm3 = vmor %vm3847_vm12, %vm3848_vm15 }
0x15eb   :  { %v3816_v34 = vadd.f32 %v5928_v0, %v3815_v49  ;;  %v3928_v55 = vrot.slane %v8645_v62, 3  ;;  %v3850_v5 = vsel %vm8662_vm3, %v5926_v50, %v3846_v29  ;;  %vm3822_vm15 = vcmp.eq.f32.partialorder %v3821_v32, 8.507059e+37 }
0x15ec   :  { %3939 = vrot.lane.b32.xlu0 %v3929_v21, %s6231_s23  ;;  %3935 = vrot.lane.b32.xlu2 %v3927_v40, %s6231_s23  ;;  %v8672_v17 = vsel %vm3852_vm2, %v3854_v24, %v3850_v5  ;;  %v3860_v60 = vmul.f32 %v8659_v39, %v3859_v9  ;;  %vm3863_vm12 = vweird.f32 %v8659_v39  ;;  %v3866_v19 = vand.u32 2147483647, %v8647_v56 }
0x15ed   :  { %3933 = vrot.lane.b32.xlu1 %v3926_v3, %s6231_s23  ;;  %v3820_v22 = vsel %vm3819_vm0, %v5928_v0, %v3816_v34  ;;  %v3868_v3 = vand.u32 2147483648, %v8647_v56  ;;  %vm3864_vm3 = vmor %vm3862_vm1, %vm3863_vm12  ;;  %vm3802_vm2 = vweird.f32 %v8682_v25 }
0x15ee   :  { %v8675_v18 = vsel %vm3822_vm15, %v3824_v36, %v3820_v22  ;;  %v3861_v21 = vadd.f32 %v8659_v39, %v3860_v60  ;;  %vm3867_vm14 = vcmp.eq.f32.partialorder %v3866_v19, 8.507059e+37 }
0x15ef   :  { %v3869_v56 = vor.u32 1.1754944e-38, %v3868_v3 }
0x15f0   :  { %v3976_v13 = vpop.permute.xlu1 %3975 }
0x15f1   :  { %v3998_v14 = vmul.f32 %v3976_v13, %v8675_v18 }
0x15f4   :  { %3941 = vrot.lane.b32.xlu0 %v3930_v41, %s6231_s23  ;;  %v3865_v41 = vsel %vm3864_vm3, %v8659_v39, %v3861_v21 }
0x15f5   :  { %3937 = vrot.lane.b32.xlu1 %v3928_v55, %s6231_s23  ;;  %v4609_v51 = vpop.xlane.xlu2 %4608  ;;  %v8705_v34 = vsel %vm3867_vm14, %v3869_v56, %v3865_v41 }
0x15f6   :  { %5935 = vrcp.f32 %v4609_v51 }
0x15f7   :  { %5937 = vpow2.f32 %v5266_v46 }
0x15f8   :  { %v3980_v61 = vpop.permute.xlu1 %3979  ;;  %5939 = vrcp.f32 %v8566_v20 }
0x15f9   :  { %v4000_v15 = vmul.f32 %v3980_v61, %v8672_v17 }
0x15fc   :  { %v5936_v50 = vpop.eup %5935  ;;  %4019 = vrot.lane.b32.xlu0 %v4000_v15, %s6231_s23 }
0x15fd   :  { %v4635_v43 = vmul.f32 %v5936_v50, %v8585_v31  ;;  %4015 = vrot.lane.b32.xlu1 %v3998_v14, %s6231_s23  ;;  %v4612_v0 = vpop.xlane.xlu2 %4611  ;;  %v5938_v10 = vpop.eup %5937  ;;  %v3931_v31 = vrot.slane %v8645_v62, 6 }
0x15fe   :  { %5941 = vrcp.f32 %v4612_v0  ;;  %v5940_v20 = vpop.eup %5939  ;;  %v8697_v13 = vadd.f32 1.0, %v5938_v10 }
0x15ff   :  { %5306 = vmatmul.msk.f32.vlgmr.msra.gmra.mxu3 %vm4552_vm13, %v4635_v43  ;;  %5943 = vrcp.f32 %v8682_v25  ;;  %v4638_v44 = vmul.f32 %v5940_v20, %v8535_v42  ;;  %v5271_v42 = vmul.f32 -1.442695, %v8630_v26  ;;  %v3808_v43 = vand.u32 2147483648, %v8682_v25 }
0x1600   :  { %5945 = vpow2.f32 %v5269_v2  ;;  %v3838_v3 = vand.u32 2147483648, %v8697_v13  ;;  %vm3832_vm1 = vweird.f32 %v8697_v13 }
0x1604   :  { %v5942_v40 = vpop.eup %5941 }
0x1605   :  { %v4636_v4 = vmul.f32 %v5942_v40, %v8595_v58  ;;  %3943 = vrot.lane.b32.xlu1 %v3931_v31, %s6231_s23  ;;  %v4615_v49 = vpop.xlane.xlu2 %4614  ;;  %v5944_v29 = vpop.eup %5943 }
0x1606   :  { %5947 = vrcp.f32 %v4615_v49  ;;  %v3982_v58 = vpop.permute.xlu0 %3981  ;;  %v5946_v54 = vpop.eup %5945  ;;  %v3798_v30 = vmul.f32 %v5944_v29, %v8682_v25  ;;  %vm3803_vm0 = vweird.f32 %v5944_v29 }
0x1607   :  { %5307 = vmatmul.msk.f32.vlgmr.msrb.gmra.mxu0 %vm4552_vm13, %v4636_v4  ;;  %5309 = vmatmul.msk.f32.vlgmr.msrb.gmra.mxu3 %vm4552_vm13, %v4638_v44  ;;  %5949 = vrcp.f32 %v8697_v13  ;;  %v4001_v55 = vmul.f32 %v3982_v58, %v8705_v34  ;;  %v8711_v53 = vadd.f32 1.0, %v5946_v54  ;;  %vm3804_vm15 = vmor %vm3802_vm2, %vm3803_vm0  ;;  %v3836_v44 = vand.u32 2147483647, %v8697_v13 }
0x1608   :  { %5951 = vpow2.f32 %v5270_v47  ;;  %v3799_v27 = vsub.f32 1.0, %v3798_v30 }
0x1609   :  { %5953 = vpow2.f32 %v5271_v42  ;;  %vm3837_vm14 = vcmp.eq.f32.partialorder %v3836_v44, 8.507059e+37  ;;  %v3883_v30 = vand.u32 2147483648, %v8711_v53  ;;  %vm3877_vm2 = vweird.f32 %v8711_v53 }
0x160a   :  { %5955 = vrcp.f32 %v4624_v7  ;;  %v3800_v48 = vmul.f32 %v5944_v29, %v3799_v27  ;;  %v3809_v7 = vor.u32 1.1754944e-38, %v3808_v43  ;;  %v4850_v27 = vld [vmem:[#allocation12 + $0x8] sm:$0xff] }
0x160c   :  { %v5948_v12 = vpop.eup %5947  ;;  %v3801_v9 = vadd.f32 %v5944_v29, %v3800_v48 }
0x160d   :  { %v4637_v39 = vmul.f32 %v5948_v12, %v8600_v38  ;;  %4021 = vrot.lane.b32.xlu1 %v4001_v55, %s6231_s23  ;;  %v4621_v26 = vpop.xlane.xlu2 %4620  ;;  %v5950_v32 = vpop.eup %5949  ;;  %v4852_v55 = vld [vmem:[#allocation12 + $0x18] sm:$0xff]  ;;  %v4851_v12 = vld [vmem:[#allocation12 + $0x10] sm:$0xff] }
0x160e   :  { %5957 = vrcp.f32 %v4621_v26  ;;  %v5952_v51 = vpop.eup %5951  ;;  %v3828_v22 = vmul.f32 %v5950_v32, %v8697_v13  ;;  %5327 = vmatpush.msra.mxu3 %v4852_v55 }
0x160f   :  { %5308 = vmatmul.msk.f32.vlgmr.msrb.gmra.mxu1 %vm4552_vm13, %v4637_v39  ;;  %v5954_v5 = vpop.eup %5953  ;;  %5959 = vrcp.f32 %v8711_v53  ;;  %v8716_v38 = vadd.f32 1.0, %v5952_v51  ;;  %v3881_v39 = vand.u32 2147483647, %v8711_v53 }
0x1610   :  { %v5956_v24 = vpop.eup %5955  ;;  %v8722_v8 = vadd.f32 1.0, %v5954_v5  ;;  %v3829_v14 = vsub.f32 1.0, %v3828_v22  ;;  %v3884_v5 = vor.u32 1.1754944e-38, %v3883_v30  ;;  %5328 = vmatpush.msra.mxu3 %v4851_v12  ;;  %v4849_v22 = vld [vmem:[#allocation12] sm:$0xff] }
0x1611   :  { %v4640_v36 = vmul.f32 %v5956_v24, %v8539_v1  ;;  %5961 = vrcp.f32 %v8716_v38  ;;  %v3806_v1 = vand.u32 2147483647, %v8682_v25 }
0x1612   :  { %5963 = vrcp.f32 %v8722_v8  ;;  %v3830_v0 = vmul.f32 %v5950_v32, %v3829_v14  ;;  %5329 = vmatpush.msra.mxu3 %v4850_v27  ;;  %v3896_v14 = vand.u32 2147483647, %v8716_v38 }
0x1613   :  { %vm3807_vm12 = vcmp.eq.f32.partialorder %v3806_v1, 8.507059e+37 }
0x1614   :  { %v5958_v46 = vpop.eup %5957  ;;  %v3831_v31 = vadd.f32 %v5950_v32, %v3830_v0  ;;  %5330 = vmatpush.msra.mxu3 %v4849_v22 }
0x1615   :  { %v4639_v61 = vmul.f32 %v5958_v46, %v8605_v6  ;;  %3947 = vrot.lane.b32.xlu1 %v8645_v62, %s6231_s23  ;;  %v4798_v15 = vpop.permute.xlu2 %4797  ;;  %v5960_v50 = vpop.eup %5959  ;;  %v3805_v6 = vsel %vm3804_vm15, %v5944_v29, %v3801_v9  ;;  %v3839_v29 = vor.u32 1.1754944e-38, %v3838_v3  ;;  %v3913_v9 = vand.u32 2147483648, %v8722_v8 }
0x1616   :  { %4818 = vmatpush.msra.mxu0 %v4798_v15  ;;  %v3873_v60 = vmul.f32 %v5960_v50, %v8711_v53  ;;  %v8732_v2 = vsel %vm3807_vm12, %v3809_v7, %v3805_v6  ;;  %vm3878_vm0 = vweird.f32 %v5960_v50  ;;  %vm3882_vm12 = vcmp.eq.f32.partialorder %v3881_v39, 8.507059e+37  ;;  %v3986_v6 = vpop.permute.xlu1 %3985 }
0x1617   :  { %5310 = vmatmul.msk.f32.vlgmr.msra.gmra.mxu0 %vm4552_vm13, %v4639_v61  ;;  %5311 = vmatmul.msk.f32.vlgmr.msra.gmra.mxu1 %vm4552_vm13, %v4640_v36  ;;  %v8734_v20 = vpop.eup %5961  ;;  %vm3833_vm13 = vweird.f32 %v5950_v32  ;;  %vm3879_vm15 = vmor %vm3877_vm2, %vm3878_vm0  ;;  %v3932_v36 = vrot.slane %v8645_v62, 7  ;;  %v3898_v15 = vand.u32 2147483648, %v8716_v38  ;;  %vm3907_vm0 = vweird.f32 %v8722_v8 }
0x1618   :  { %v3874_v40 = vsub.f32 1.0, %v3873_v60  ;;  %v8737_v25 = vpop.eup %5963  ;;  %v3888_v19 = vmul.f32 %v8734_v20, %v8716_v38  ;;  %vm3834_vm3 = vmor %vm3832_vm1, %vm3833_vm13  ;;  %4893 = vmatpush.msrb.mxu0 %v4852_v55  ;;  %vm3893_vm13 = vweird.f32 %v8734_v20  ;;  %v3911_v62 = vand.u32 2147483647, %v8722_v8 }
0x1619   :  { %v3835_v4 = vsel %vm3834_vm3, %v5950_v32, %v3831_v31  ;;  %v3903_v47 = vmul.f32 %v8737_v25, %v8722_v8  ;;  %vm3908_vm1 = vweird.f32 %v8737_v25  ;;  %vm3892_vm3 = vweird.f32 %v8716_v38 }
0x161a   :  { %v3875_v49 = vmul.f32 %v5960_v50, %v3874_v40  ;;  %v3889_v41 = vsub.f32 1.0, %v3888_v19  ;;  %v8747_v42 = vsel %vm3837_vm14, %v3839_v29, %v3835_v4  ;;  %4894 = vmatpush.msrb.mxu0 %v4851_v12  ;;  %vm3894_vm14 = vmor %vm3892_vm3, %vm3893_vm13  ;;  %v3899_v1 = vor.u32 1.1754944e-38, %v3898_v15 }
0x161b   :  { %v3904_v13 = vsub.f32 1.0, %v3903_v47  ;;  %vm3909_vm2 = vmor %vm3907_vm0, %vm3908_vm1  ;;  %v3914_v0 = vor.u32 1.1754944e-38, %v3913_v9 }
0x161c   :  { %v3876_v54 = vadd.f32 %v5960_v50, %v3875_v49  ;;  %v3890_v26 = vmul.f32 %v8734_v20, %v3889_v41  ;;  %4895 = vmatpush.msrb.mxu0 %v4850_v27 }
0x161d   :  { %v3974_v10 = vpop.permute.xlu2 %3973  ;;  %v3905_v51 = vmul.f32 %v8737_v25, %v3904_v13 }
0x161e   :  { %v3997_v21 = vmul.f32 %v3974_v10, %v8732_v2  ;;  %v3880_v32 = vsel %vm3879_vm15, %v5960_v50, %v3876_v54  ;;  %v3891_v24 = vadd.f32 %v8734_v20, %v3890_v26  ;;  %4896 = vmatpush.msrb.mxu0 %v4849_v22  ;;  %vm3897_vm15 = vcmp.eq.f32.partialorder %v3896_v14, 8.507059e+37 }
0x161f   :  { %v8758_v48 = vsel %vm3882_vm12, %v3884_v5, %v3880_v32  ;;  %v3906_v61 = vadd.f32 %v8737_v25, %v3905_v51  ;;  %vm3912_vm12 = vcmp.eq.f32.partialorder %v3911_v62, 8.507059e+37 }
0x1620   :  { %4013 = vrot.lane.b32.xlu2 %v3997_v21, %s6231_s23  ;;  %v3895_v50 = vsel %vm3894_vm14, %v8734_v20, %v3891_v24 }
0x1621   :  { %v3910_v43 = vsel %vm3909_vm2, %v8737_v25, %v3906_v61  ;;  %v8774_v60 = vsel %vm3897_vm15, %v3899_v1, %v3895_v50  ;;  %v4923_v50 = vshrl.u32 %v4495_v37, 7 }
0x1622   :  { %v8776_v38 = vsel %vm3912_vm12, %v3914_v0, %v3910_v43  ;;  %v4003_v10 = vmul.f32 %v3986_v6, %v8774_v60 }
0x1623   :  { %vm4925_vm13 = vcmp.lt.s32.totalorder %v4923_v50, %v8414_v52  ;;  %vm4928_vm1 = vcmp.lt.s32.totalorder %v4923_v50, %v8462_v45  ;;  %vm4931_vm3 = vcmp.lt.s32.totalorder %v4923_v50, %v8429_v35  ;;  %vm4924_vm14 = vcmp.lt.s32.totalorder %v4923_v50, %v4504_v16 }
0x1624   :  { %v4933_v0 = vsel %vm4925_vm13, 1, %v6233_v23  ;;  %v4932_v45 = vsel %vm4924_vm14, 1, %v6233_v23  ;;  %vm4927_vm0 = vcmp.lt.s32.totalorder %v4923_v50, %v8422_v57  ;;  %vm4926_vm2 = vcmp.lt.s32.totalorder %v4923_v50, %v8416_v63  ;;  %v5990_v63 = vld [vmem:[%s8924_s7] sm:$0xff] }
0x1625   :  { %v3978_v56 = vpop.permute.xlu2 %3977  ;;  %v4934_v35 = vsel %vm4926_vm2, 1, %v6233_v23  ;;  %vm4930_vm15 = vcmp.lt.s32.totalorder %v4923_v50, %v8466_v28  ;;  %vm4929_vm12 = vcmp.lt.s32.totalorder %v4923_v50, %v8424_v33  ;;  %vm4093_vm13 = vcmp.ge.s32.totalorder %v5990_v63, 8  ;;  %v5041_v50 = vld [vmem:[#allocation15 + $0x18] sm:$0xff] }
0x1626   :  { %v3999_v58 = vmul.f32 %v3978_v56, %v8747_v42  ;;  %v4938_v59 = vsel %vm4930_vm15, 1, %v6233_v23  ;;  %v4937_v16 = vsel %vm4929_vm12, 1, %v6233_v23  ;;  %v4094_v57 = vsel %vm4093_vm13, 1, %v6233_v23  ;;  %5071 = vmatpush.msra.mxu0 %v5041_v50 }
0x1628   :  { %4017 = vrot.lane.b32.xlu2 %v3999_v58, %s6231_s23 }
0x162d   :  { %v3984_v53 = vpop.permute.xlu2 %3983 }
0x162e   :  { %v4002_v46 = vmul.f32 %v3984_v53, %v8758_v48 }
0x1630   :  { %3945 = vrot.lane.b32.xlu2 %v3932_v36, %s6231_s23  ;;  %4023 = vrot.lane.b32.xlu0 %v4002_v46, %s6231_s23 }
0x1635   :  { %v3988_v7 = vpop.permute.xlu2 %3987 }
0x1636   :  { %v4004_v21 = vmul.f32 %v3988_v7, %v8776_v38 }
0x1638   :  { %4027 = vrot.lane.b32.xlu0 %v4004_v21, %s6231_s23  ;;  %4025 = vrot.lane.b32.xlu2 %v4003_v10, %s6231_s23 }
0x1646   :  { %v3936_v3 = vpop.permute.xlu2 %3935 }
0x1647   :  { %v3958_v44 = vmul.f32 %v3936_v3, %v8675_v18 }
0x164d   :  { %v4664_v8 = vpop.f32.mrf.mxu3 }
0x164e   :  { %5312 = vmatmul.msk.f32.vlgmr.msrb.gmra.mxu0 %vm4281_vm11, %v4664_v8 }
0x164f   :  { %v4690_v20 = vpop.f32.mrf.mxu0 }
0x1656   :  { %5313 = vmatmul.msk.f32.gmra.mxu0 %vm4281_vm11, %v4690_v20  ;;  %v4936_v20 = vsel %vm4928_vm1, 1, %v6233_v23 }
0x165e   :  { %v3940_v25 = vpop.permute.xlu0 %3939 }
0x165f   :  { %v3934_v31 = vpop.permute.xlu1 %3933  ;;  %v3960_v13 = vmul.f32 %v3940_v25, %v8672_v17  ;;  %v4939_v25 = vsel %vm4931_vm3, 1, %v6233_v23 }
0x1660   :  { %v3957_v41 = vmul.f32 %v3934_v31, %v8732_v2 }
0x1666   :  { %v3942_v49 = vpop.permute.xlu0 %3941 }
0x1667   :  { %v3938_v40 = vpop.permute.xlu1 %3937  ;;  %v3961_v30 = vmul.f32 %v3942_v49, %v8705_v34 }
0x1668   :  { %v3959_v26 = vmul.f32 %v3938_v40, %v8747_v42 }
0x166e   :  { %v4020_v54 = vpop.permute.xlu0 %4019 }
0x166f   :  { %v4016_v19 = vpop.permute.xlu1 %4015  ;;  %v4040_v12 = vadd.f32 %v4020_v54, %v3960_v13 }
0x1670   :  { %v4038_v4 = vadd.f32 %v4016_v19, %v3958_v44  ;;  %v5109_v44 = vld [vmem:[#allocation2] sm:$0x1]  ;;  %v4935_v19 = vsel %vm4927_vm0, 1, %v6233_v23 }
0x1672   :  { %5965 = vtanh.f32 %v4038_v4 }
0x1677   :  { %v3944_v47 = vpop.permute.xlu1 %3943 }
0x1678   :  { %v5966_v29 = vpop.eup %5965  ;;  %v3962_v6 = vmul.f32 %v3944_v47, %v8758_v48 }
0x1679   :  { %4063 = vrot.lane.b32.xlu1 %v5966_v29, %s6232_s25 }
0x167a   :  { %v4014_v56 = vpop.permute.xlu2 %4013 }
0x167b   :  { %v4037_v58 = vadd.f32 %v4014_v56, %v3957_v41 }
0x167d   :  { %5967 = vtanh.f32 %v4037_v58 }
0x167f   :  { %v4022_v55 = vpop.permute.xlu1 %4021 }
0x1680   :  { %v4041_v39 = vadd.f32 %v4022_v55, %v3961_v30 }
0x1682   :  { %5969 = vtanh.f32 %v4041_v39  ;;  %v4716_v27 = vpop.f32.mrf.mxu3  ;;  %v4018_v32 = vpop.permute.xlu2 %4017 }
0x1683   :  { %v5968_v51 = vpop.eup %5967  ;;  %v4039_v5 = vadd.f32 %v4018_v32, %v3959_v26  ;;  %5314 = vmatmul.msk.f32.gmra.mxu0 %vm4281_vm11, %v4716_v27  ;;  %5971 = vtanh.f32 %v4040_v12  ;;  %v8837_v32 = vld [vmem:[%s8904_s12] ss:$0 sm:$0xff] }
0x1684   :  { %4061 = vrot.lane.b32.xlu2 %v5968_v51, %s6232_s25  ;;  %v4742_v22 = vpop.f32.mrf.mxu0 }
0x1685   :  { %5973 = vtanh.f32 %v4039_v5 }
0x1687   :  { %v3948_v37 = vpop.permute.xlu1 %3947 }
0x1688   :  { %v5970_v24 = vpop.eup %5969  ;;  %v3964_v8 = vmul.f32 %v3948_v37, %v8776_v38 }
0x1689   :  { %4069 = vrot.lane.b32.xlu1 %v5970_v24, %s6232_s25  ;;  %v5972_v53 = vpop.eup %5971 }
0x168a   :  { %v3946_v46 = vpop.permute.xlu2 %3945  ;;  %v4794_v62 = vpop.f32.mrf.mxu3 }
0x168b   :  { %v5974_v36 = vpop.eup %5973  ;;  %5315 = vmatmul.msk.f32.gmra.mxu0 %vm4281_vm11, %v4742_v22  ;;  %v3963_v15 = vmul.f32 %v3946_v46, %v8774_v60 }
0x168c   :  { %4067 = vrot.lane.b32.xlu2 %v5972_v53, %s6232_s25  ;;  %4065 = vrot.lane.b32.xlu0 %v5974_v36, %s6232_s25  ;;  %v4768_v61 = vpop.f32.mrf.mxu1 }
0x168d   :  { %5316 = vmatmul.msk.f32.vlgmr.msra.gmra.mxu3 %vm4281_vm11, %v4768_v61 }
0x1692   :  { %v4026_v9 = vpop.permute.xlu2 %4025 }
0x1693   :  { %v4043_v14 = vadd.f32 %v4026_v9, %v3963_v15 }
0x1694   :  { %v4820_v1 = vpop.f32.mrf.mxu0  ;;  %v4846_v21 = vpop.f32.mrf.mxu1 }
0x1695   :  { %5975 = vtanh.f32 %v4043_v14  ;;  %5317 = vmatmul.msk.f32.gmra.mxu3 %vm4281_vm11, %v4794_v62 }
0x169b   :  { %v5976_v43 = vpop.eup %5975 }
0x169c   :  { %4073 = vrot.lane.b32.xlu2 %v5976_v43, %s6232_s25  ;;  %v5040_v43 = vld [vmem:[#allocation15 + $0x10] sm:$0xff] }
0x169d   :  { %5318 = vmatmul.msk.f32.gmra.mxu3 %vm4281_vm11, %v4820_v1  ;;  %5072 = vmatpush.msra.mxu0 %v5040_v43 }
0x16a2   :  { %v4024_v7 = vpop.permute.xlu0 %4023 }
0x16a3   :  { %v4042_v10 = vadd.f32 %v4024_v7, %v3962_v6 }
0x16a4   :  { %4944 = vperm.xlu2 %5351, %v4933_v0  }
0x16a5   :  { %5977 = vtanh.f32 %v4042_v10  ;;  %5319 = vmatmul.msk.f32.gmra.mxu3 %vm4281_vm11, %v4846_v21  ;;  %v5039_v21 = vld [vmem:[#allocation15 + $0x8] sm:$0xff] }
0x16a6   :  { %5073 = vmatpush.msra.mxu0 %v5039_v21 }
0x16aa   :  { %v4028_v31 = vpop.permute.xlu0 %4027 }
0x16ab   :  { %v5978_v52 = vpop.eup %5977  ;;  %v4044_v40 = vadd.f32 %v4028_v31, %v3964_v8 }
0x16ac   :  { %4953 = vperm.xlu2 %5351, %v4936_v20   ;;  %4071 = vrot.lane.b32.xlu0 %v5978_v52, %s6232_s25 }
0x16ad   :  { %5979 = vtanh.f32 %v4044_v40 }
0x16b3   :  { %v5980_v3 = vpop.eup %5979 }
0x16b4   :  { %4962 = vperm.xlu2 %5351, %v4939_v25   ;;  %4941 = vperm.xlu0 %5350, %v4932_v45   ;;  %v5038_v45 = vld [vmem:[#allocation15] sm:$0xff] }
0x16b5   :  { %4075 = vrot.lane.b32.xlu1 %v5980_v3, %s6232_s25  ;;  %5074 = vmatpush.msra.mxu0 %v5038_v45 }
0x16bc   :  { %5112 = vperm.xlu2 %5351, %v5109_v44   ;;  %4950 = vperm.xlu0 %5350, %v4935_v19  }
0x16bd   :  { %4947 = vperm.xlu1 %5352, %v4934_v35   ;;  %v5037_v35 = vld [vmem:[#allocation14 + $0x8] sm:$0xff] }
0x16be   :  { %5096 = vmatpush.msrb.mxu1 %v5037_v35 }
0x16c4   :  { %4959 = vperm.xlu0 %5350, %v4938_v59  }
0x16c5   :  { %4956 = vperm.xlu1 %5352, %v4937_v16  }
0x16cb   :  { %v4898_v28 = vpop.f32.mrf.mxu0 }
0x16cd   :  { %4096 = vperm.xlu1 %5352, %v4094_v57  }
0x16d3   :  { %v4901_v55 = vpop.f32.mrf.mxu0 }
0x16d4   :  { %v4902_v53 = vadd.f32 %v8837_v32, %v4901_v55 }
0x16de   :  { %v4062_v4 = vpop.permute.xlu2 %4061 }
0x16df   :  { %v4085_v13 = vmul.f32 %v4062_v4, %v8732_v2 }
0x16e1   :  { %v4107_v39 = vrot.slane %v4085_v13, 7 }
0x16e6   :  { %v4068_v49 = vpop.permute.xlu2 %4067 }
0x16e7   :  { %v4088_v26 = vmul.f32 %v4068_v49, %v8672_v17 }
0x16e9   :  { %v4112_v17 = vrot.slane %v4088_v26, 4 }
0x16eb   :  { %v4064_v33 = vpop.permute.xlu1 %4063 }
0x16ec   :  { %v4086_v58 = vmul.f32 %v4064_v33, %v8675_v18 }
0x16ee   :  { %v4108_v12 = vrot.slane %v4086_v58, 6 }
0x16f0   :  { %v4109_v18 = vsel %vm637_vm4, %v4108_v12, %v4107_v39 }
0x16f6   :  { %v4074_v47 = vpop.permute.xlu2 %4073 }
0x16f7   :  { %v4091_v9 = vmul.f32 %v4074_v47, %v8774_v60 }
0x16f9   :  { %v4118_v7 = vrot.slane %v4091_v9, 1 }
0x16fb   :  { %v4070_v27 = vpop.permute.xlu1 %4069 }
0x16fc   :  { %v4089_v2 = vmul.f32 %v4070_v27, %v8705_v34 }
0x16fe   :  { %v4945_v41 = vpop.permute.xlu2 %4944  ;;  %v4066_v56 = vpop.permute.xlu0 %4065  ;;  %v4114_v14 = vrot.slane %v4089_v2, 3 }
0x16ff   :  { %v4087_v54 = vmul.f32 %v4066_v56, %v8747_v42  ;;  %vm4965_vm1 = vcmp.eq.s32.totalorder %v4945_v41, 1 }
0x1700   :  { %v4904_v46 = vpop.f32.mrf.mxu0  ;;  %v4973_v36 = vsel %vm4965_vm1, %v4902_v53, -1e+30 }
0x1701   :  { %v4110_v23 = vrot.slane %v4087_v54, 5  ;;  %v4987_v34 = vsel %vm4281_vm11, %v4973_v36, -inf  ;;  %v4905_v47 = vadd.f32 %v8837_v32, %v4904_v46 }
0x1702   :  { %v4988_v60 = vrot.slane %v4987_v34, 4 }
0x1703   :  { %v4111_v5 = vsel %vm640_vm5, %v4110_v23, %v4109_v18 }
0x1704   :  { %v4113_v61 = vsel %vm643_vm6, %v4112_v17, %v4111_v5  ;;  %v4989_v63 = vmax.f32 %v4987_v34, %v4988_v60 }
0x1705   :  { %v4115_v62 = vsel %vm646_vm7, %v4114_v14, %v4113_v61 }
0x1706   :  { %v4954_v51 = vpop.permute.xlu2 %4953  ;;  %v4990_v58 = vrot.slane %v4989_v63, 2 }
0x1707   :  { %vm4968_vm14 = vcmp.eq.s32.totalorder %v4954_v51, 1 }
0x1708   :  { %v4907_v59 = vpop.f32.mrf.mxu0  ;;  %v4991_v51 = vmax.f32 %v4989_v63, %v4990_v58 }
0x1709   :  { %v4908_v4 = vadd.f32 %v8837_v32, %v4907_v59 }
0x170a   :  { %v4992_v34 = vrot.slane %v4991_v51, 1 }
0x170c   :  { %v4993_v21 = vmax.f32 %v4991_v51, %v4992_v34 }
0x170e   :  { %v4963_v37 = vpop.permute.xlu2 %4962 }
0x170f   :  { %vm4971_vm0 = vcmp.eq.s32.totalorder %v4963_v37, 1 }
0x1710   :  { %v4910_v29 = vpop.f32.mrf.mxu3 }
0x1711   :  { %v4911_v1 = vadd.f32 %v8837_v32, %v4910_v29 }
0x1713   :  { %v4976_v3 = vsel %vm4968_vm14, %v4911_v1, -1e+30 }
0x1714   :  { %v5008_v57 = vsel %vm4281_vm11, %v4976_v3, -inf }
0x1715   :  { %v5009_v41 = vrot.slane %v5008_v57, 4 }
0x1717   :  { %v5010_v27 = vmax.f32 %v5008_v57, %v5009_v41 }
0x1718   :  { %v8831_v30 = vpop.f32.mrf.mxu3 }
0x1719   :  { %v4914_v17 = vadd.f32 %v8837_v32, %v8831_v30 }
0x171e   :  { %v4072_v42 = vpop.permute.xlu0 %4071 }
0x171f   :  { %v4090_v24 = vmul.f32 %v4072_v42, %v8758_v48  ;;  %v4899_v48 = vadd.f32 %v8837_v32, %v4898_v28 }
0x1720   :  { %v8844_v22 = vpop.f32.mrf.mxu3 }
0x1721   :  { %v4116_v15 = vrot.slane %v4090_v24, 2  ;;  %v4917_v2 = vadd.f32 %v8837_v32, %v8844_v22 }
0x1723   :  { %v4117_v6 = vsel %vm649_vm8, %v4116_v15, %v4115_v62  ;;  %v5011_v15 = vrot.slane %v5010_v27, 2 }
0x1724   :  { %v4119_v25 = vsel %vm652_vm9, %v4118_v7, %v4117_v6 }
0x1725   :  { %v5012_v7 = vmax.f32 %v5010_v27, %v5011_v15 }
0x1726   :  { %v4942_v0 = vpop.permute.xlu0 %4941 }
0x1727   :  { %vm4964_vm3 = vcmp.eq.s32.totalorder %v4942_v0, 1  ;;  %v4076_v10 = vpop.permute.xlu1 %4075 }
0x1728   :  { %v4972_v8 = vsel %vm4964_vm3, %v4899_v48, -1e+30  ;;  %v4092_v20 = vmul.f32 %v4076_v10, %v8776_v38  ;;  %v4919_v31 = vpop.f32.mrf.mxu3 }
0x1729   :  { %v4980_v52 = vsel %vm4281_vm11, %v4972_v8, -inf  ;;  %v4920_v40 = vadd.f32 %v8837_v32, %v4919_v31 }
0x172a   :  { %v4981_v44 = vrot.slane %v4980_v52, 4  ;;  %v4120_v19 = vsel %vm655_vm10, %v4092_v20, %v4119_v25  ;;  %v5013_v25 = vrot.slane %v5012_v7, 1 }
0x172b   :  { %4121 = vrot.lane.b32.xlu0 %v4120_v19, %s6235_s5  ;;  %v4979_v16 = vsel %vm4971_vm0, %v4920_v40, -1e+30 }
0x172c   :  { %v4982_v38 = vmax.f32 %v4980_v52, %v4981_v44  ;;  %v5029_v29 = vsel %vm4281_vm11, %v4979_v16, -inf  ;;  %v5014_v16 = vmax.f32 %v5012_v7, %v5013_v25 }
0x172d   :  { %v5030_v55 = vrot.slane %v5029_v29, 4 }
0x172e   :  { %v4951_v49 = vpop.permute.xlu0 %4950  ;;  %v4983_v28 = vrot.slane %v4982_v38, 2 }
0x172f   :  { %vm4967_vm2 = vcmp.eq.s32.totalorder %v4951_v49, 1  ;;  %v4948_v33 = vpop.permute.xlu1 %4947  ;;  %v5031_v5 = vmax.f32 %v5029_v29, %v5030_v55 }
0x1730   :  { %v4975_v56 = vsel %vm4967_vm2, %v4908_v4, -1e+30  ;;  %vm4966_vm15 = vcmp.eq.s32.totalorder %v4948_v33, 1  ;;  %v4984_v39 = vmax.f32 %v4982_v38, %v4983_v28  ;;  %v5036_v33 = vld [vmem:[#allocation14] sm:$0xff] }
0x1731   :  { %v5001_v54 = vsel %vm4281_vm11, %v4975_v56, -inf  ;;  %v4974_v13 = vsel %vm4966_vm15, %v4905_v47, -1e+30  ;;  %v5032_v22 = vrot.slane %v5031_v5, 2  ;;  %5097 = vmatpush.msrb.mxu1 %v5036_v33 }
0x1732   :  { %v5002_v12 = vrot.slane %v5001_v54, 4  ;;  %v4994_v23 = vsel %vm4281_vm11, %v4974_v13, -inf  ;;  %v4985_v46 = vrot.slane %v4984_v39, 1 }
0x1733   :  { %v4995_v26 = vrot.slane %v4994_v23, 4  ;;  %v5033_v31 = vmax.f32 %v5031_v5, %v5032_v22 }
0x1734   :  { %v5003_v18 = vmax.f32 %v5001_v54, %v5002_v12  ;;  %v4986_v6 = vmax.f32 %v4984_v39, %v4985_v46  ;;  %v5372_v54 = vld [vmem:[%s8907_s15] ss:$0 sm:$0xff]  ;;  %s6237_s15 = smov [#allocation17]  }
0x1735   :  { %v4996_v42 = vmax.f32 %v4994_v23, %v4995_v26  ;;  %v5034_v35 = vrot.slane %v5033_v31, 1  ;;  %v5108_v26 = vld [vmem:[%s8908_s16] sm:$0x1]  ;;  %s5168_s16 = sshll.u32 %s6237_s15, 4  ;;  %s5169_s16 = int_to_ptr.vmem [resolvable:$true] %s5168_s16 }
0x1736   :  { %v5004_v24 = vrot.slane %v5003_v18, 2  ;;  %v4960_v53 = vpop.permute.xlu0 %4959  ;;  %v5050_v20 = vsel %vm637_vm4, %v4993_v21, %v4986_v6 }
0x1737   :  { %v4997_v36 = vrot.slane %v4996_v42, 2  ;;  %vm4970_vm12 = vcmp.eq.s32.totalorder %v4960_v53, 1  ;;  %v4957_v61 = vpop.permute.xlu1 %4956  ;;  %v5035_v49 = vmax.f32 %v5033_v31, %v5034_v35 }
0x1738   :  { %v5005_v9 = vmax.f32 %v5003_v18, %v5004_v24  ;;  %v4978_v14 = vsel %vm4970_vm12, %v4917_v2, -1e+30  ;;  %vm4969_vm13 = vcmp.eq.s32.totalorder %v4957_v61, 1 }
0x1739   :  { %v4998_v62 = vmax.f32 %v4996_v42, %v4997_v36  ;;  %v5022_v50 = vsel %vm4281_vm11, %v4978_v14, -inf  ;;  %v4977_v43 = vsel %vm4969_vm13, %v4914_v17, -1e+30 }
0x173a   :  { %v5023_v48 = vrot.slane %v5022_v50, 4  ;;  %v5015_v1 = vsel %vm4281_vm11, %v4977_v43, -inf  ;;  %v5006_v0 = vrot.slane %v5005_v9, 1 }
0x173b   :  { %v4999_v30 = vrot.slane %v4998_v62, 1  ;;  %v5016_v32 = vrot.slane %v5015_v1, 4 }
0x173c   :  { %v5024_v10 = vmax.f32 %v5022_v50, %v5023_v48  ;;  %v5007_v52 = vmax.f32 %v5005_v9, %v5006_v0 }
0x173d   :  { %v5000_v60 = vmax.f32 %v4998_v62, %v4999_v30  ;;  %v5017_v37 = vmax.f32 %v5015_v1, %v5016_v32 }
0x173e   :  { %v5025_v8 = vrot.slane %v5024_v10, 2 }
0x173f   :  { %v5018_v40 = vrot.slane %v5017_v37, 2  ;;  %v5051_v45 = vsel %vm640_vm5, %v5000_v60, %v5050_v20  ;;  %v4097_v41 = vpop.permute.xlu1 %4096  ;;  %vm8995_vm5 = vcmask 130048  }
0x1740   :  { %v5026_v3 = vmax.f32 %v5024_v10, %v5025_v8  ;;  %v5052_v59 = vsel %vm643_vm6, %v5007_v52, %v5051_v45  ;;  %vm4098_vm4 = vcmp.eq.s32.totalorder %v4097_v41, 1 }
0x1741   :  { %v5019_v44 = vmax.f32 %v5017_v37, %v5018_v40  ;;  %v5053_v4 = vsel %vm646_vm7, %v5014_v16, %v5052_v59 }
0x1742   :  { %v5027_v19 = vrot.slane %v5026_v3, 1 }
0x1743   :  { %v5020_v38 = vrot.slane %v5019_v44, 1 }
0x1744   :  { %v5028_v63 = vmax.f32 %v5026_v3, %v5027_v19 }
0x1745   :  { %v5021_v57 = vmax.f32 %v5019_v44, %v5020_v38 }
0x1747   :  { %v5054_v47 = vsel %vm649_vm8, %v5021_v57, %v5053_v4 }
0x1748   :  { %v5055_v28 = vsel %vm652_vm9, %v5028_v63, %v5054_v47  ;;  %vm5161_vm9 = vcmask 57344  }
0x1749   :  { %v5056_v29 = vsel %vm655_vm10, %v5035_v49, %v5055_v28 }
0x174a   :  { %5320 = vmatmul.msk.f32.vlgmr.msra.gmra.mxu0 %vm4281_vm11, %v5056_v29 }
0x179d   :  { %v4122_v56 = vpop.permute.xlu0 %4121 }
0x179e   :  { %v4124_v58 = vsel %vm4098_vm4, %v4122_v56, %v8473_v11  ;;  %v5113_v11 = vpop.permute.xlu2 %5112 }
0x179f   :  { %5321 = vmatmul.msk.f32.vlgmr.msrb.gmra.mxu1 %vm8995_vm5, %v4124_v58  ;;  %v5115_v27 = vperm.slane %v5113_v11, 0 }
0x17c7   :  { %v5076_v13 = vpop.f32.mrf.mxu0 }
0x181c   :  { %v5099_v55 = vpop.f32.mrf.mxu1 }
0x181d   :  { %v5100_v12 = vadd.f32 %v5099_v55, %v5076_v13 }
0x181f   :  { %v5106_v23 = vadd.f32 %v5372_v54, %v5100_v12 }
0x1821   :  { %v5107_v39 = vmax.f32 %v5106_v23, 0.0 }
0x1823   :  { %5322 = vmatpush.xpose.msk.msrb.mxu2 %vm4281_vm11, %v5107_v39 }
0x1826   :  { %5323 = vmatmul.msk.f32.vlgmr.msrb.gmra.mxu2 %vm4281_vm11, %v5108_v26 }
0x18a9   :  { %v5139_v18 = vpop.f32.mrf.mxu2 }
0x18aa   :  { %v5140_v51 = vadd.f32 %v5139_v18, %v5115_v27 }
0x18ac   :  { %v5324_v42 = vmul.f32 -1.442695, %v5140_v51 }
0x18ae   :  { %5981 = vpow2.f32 %v5324_v42 }
0x18b4   :  { %v5982_v2 = vpop.eup %5981 }
0x18b5   :  { %v5145_v5 = vadd.f32 1.0, %v5982_v2 }
0x18b7   :  { %5983 = vrcp.f32 %v5145_v5  ;;  %v5157_v46 = vand.u32 2147483648, %v5145_v5  ;;  %v5155_v61 = vand.u32 2147483647, %v5145_v5  ;;  %vm5151_vm7 = vweird.f32 %v5145_v5 }
0x18b9   :  { %v5158_v9 = vor.u32 1.1754944e-38, %v5157_v46  ;;  %vm5156_vm10 = vcmp.eq.f32.partialorder %v5155_v61, 8.507059e+37 }
0x18bd   :  { %v5984_v24 = vpop.eup %5983 }
0x18be   :  { %v5147_v53 = vmul.f32 %v5984_v24, %v5145_v5  ;;  %vm5152_vm6 = vweird.f32 %v5984_v24 }
0x18bf   :  { %vm5153_vm8 = vmor %vm5151_vm7, %vm5152_vm6 }
0x18c0   :  { %v5148_v17 = vsub.f32 1.0, %v5147_v53 }
0x18c2   :  { %v5149_v36 = vmul.f32 %v5984_v24, %v5148_v17 }
0x18c4   :  { %v5150_v15 = vadd.f32 %v5984_v24, %v5149_v36 }
0x18c6   :  { %v5154_v14 = vsel %vm5153_vm8, %v5984_v24, %v5150_v15 }
0x18c7   :  { %v5159_v34 = vsel %vm5156_vm10, %v5158_v9, %v5154_v14 }
0x18c8   :  { %5162 = vst.msk [vmem:[#allocation17] sm:$0x1] %vm5161_vm9, %v5159_v34 }
0x18c9   :  { %5173 = dma.vmem_to_hbm [thread:$0]  %s5169_s16, 16, %s5171_s26, [#allocation5]  }
0x18ca   :  { %6217 = dma.done.wait [#allocation5], 16  }
0x18cb   :  { %6218 = vsyncadd [#allocation5], 4294967280 }
0x18cc   :  { %5178 = vsyncpa [#allocation4], 1 }
0x18cd   :  { %5179 = vsyncpa [#allocation7], 1 }
0x18ce   :  { %5180 = vsyncpa [#allocation10], 1 }
0x18cf   :  { %5181 = vsyncpa [#allocation13], 1 }
0x18d0   :  { %5182 = vsyncpa [#allocation16], 1 }
0x18d1   :  { %5183 = vsyncpa [#allocation5], 1 }

</bundles_post_ra>
